<compile_context>
chip_gen: v6e
topology: v6e:2x2x1
jax: 0.10.0
libtpu: 0.0.40
codegen_flags: <defaults>
</compile_context>

<pallas_src>
import math

import numpy as np

import jax
import jax.numpy as jnp
from jax.experimental import pallas as pl
from jax.experimental.pallas import tpu as pltpu


# ---------------------------------------------------------------------------
# Fused forward kernel (one image per grid step)
# ---------------------------------------------------------------------------
def _convnet_kernel(x_ref, w1b_ref, b1_ref, w2b_ref, b2_ref,
                    w3_ref, b3_ref, w4_ref, b4_ref, w5_ref, b5_ref, out_ref):
    bf16 = jnp.bfloat16

    # ---- conv1 (5x5, 3->6) + bias + relu + 2x2 max pool, fully fused ------
    # x_ref block: (1, 2, 16, 96) f32, x_ref[0, p, q, w*3+c] = image[2q+p, w, c].
    # e1[s][hp, :] = image row (2*hp + s), (w, c) folded on lanes;  s = ph+dh.
    e1 = [x_ref[0, s % 2, s // 2:s // 2 + 14, :].astype(bf16) for s in range(6)]
    quads = []
    for ph in range(2):            # output-row parity inside the 2x2 pool window
        for pw in range(2):        # output-col parity inside the 2x2 pool window
            acc = jnp.zeros((14, 84), jnp.float32)
            for dh in range(5):
                acc = acc + jnp.dot(e1[ph + dh], w1b_ref[pw, dh],
                                    preferred_element_type=jnp.float32)
            quads.append(acc)
    m1 = jnp.maximum(jnp.maximum(quads[0], quads[1]),
                     jnp.maximum(quads[2], quads[3]))
    # pooled1: (14, 84) f32, lane layout = w*6 + c  (channels-last, folded)
    p1 = jnp.maximum(m1 + b1_ref[...], 0.0)

    # ---- conv2 (5x5, 6->16) + bias + relu + 2x2 max pool, fully fused -----
    # e2[s][hp, :] = pooled1 row (2*hp + s); built from static row slices.
    e2 = [jnp.concatenate([p1[s + 2 * i:s + 2 * i + 1, :] for i in range(5)],
                          axis=0).astype(bf16) for s in range(6)]
    quads2 = []
    for ph in range(2):
        for pw in range(2):
            acc = jnp.zeros((5, 80), jnp.float32)
            for dh in range(5):
                acc = acc + jnp.dot(e2[ph + dh], w2b_ref[pw, dh],
                                    preferred_element_type=jnp.float32)
            quads2.append(acc)
    m2 = jnp.maximum(jnp.maximum(quads2[0], quads2[1]),
                     jnp.maximum(quads2[2], quads2[3]))
    # pooled2: (5, 80), lane layout = w*16 + c
    p2 = jnp.maximum(m2 + b2_ref[...], 0.0).astype(bf16)

    # ---- fc1 + relu: contract over (h, w, c) as 5 accumulated matmuls -----
    h1 = jnp.zeros((1, 128), jnp.float32)
    for h in range(5):
        h1 = h1 + jnp.dot(p2[h:h + 1, :], w3_ref[h],
                          preferred_element_type=jnp.float32)
    h1 = jnp.maximum(h1 + b3_ref[...], 0.0).astype(bf16)

    # ---- fc2 + relu --------------------------------------------------------
    h2 = jnp.dot(h1, w4_ref[...], preferred_element_type=jnp.float32)
    h2 = jnp.maximum(h2 + b4_ref[...], 0.0).astype(bf16)

    # ---- fc3 ---------------------------------------------------------------
    logits = jnp.dot(h2, w5_ref[...], preferred_element_type=jnp.float32)
    out_ref[0] = logits + b5_ref[...]


# ---------------------------------------------------------------------------
# Parameter preparation (one-time, host side)
# ---------------------------------------------------------------------------
def _banded_conv_weight(w, out_w_half):
    """Precompute the pool-parity-split, W-folded ("banded") conv weights.

    w: (cout, cin, k, k) PyTorch layout.
    Returns B of shape (2, k, w_in*cin, out_w_half*cout) such that
      conv[2*hp+ph, 2*wp+pw, co] = sum_dh  row(2*hp+ph+dh) @ B[pw, dh]
    where row(r) is the image row r with (w, c) folded on the last axis.
    """
    w = np.asarray(w, np.float32)
    cout, cin, k, _ = w.shape
    w_in = 2 * out_w_half + k - 1
    B = np.zeros((2, k, w_in * cin, out_w_half * cout), np.float32)
    for pw in range(2):
        for dh in range(k):
            for wp in range(out_w_half):
                for dw in range(k):
                    win = 2 * wp + pw + dw
                    B[pw, dh, win * cin:(win + 1) * cin,
                      wp * cout:(wp + 1) * cout] = w[:, :, dh, dw].T
    return B


def init_params(key):
    """PyTorch-default-style init, PyTorch layouts."""
    def uni(k, shape, fan_in):
        bound = 1.0 / math.sqrt(fan_in)
        return jax.random.uniform(k, shape, jnp.float32, -bound, bound)

    ks = jax.random.split(key, 10)
    return {
        "conv1_w": uni(ks[0], (6, 3, 5, 5), 3 * 5 * 5),
        "conv1_b": uni(ks[1], (6,), 3 * 5 * 5),
        "conv2_w": uni(ks[2], (16, 6, 5, 5), 6 * 5 * 5),
        "conv2_b": uni(ks[3], (16,), 6 * 5 * 5),
        "fc1_w": uni(ks[4], (120, 400), 400),
        "fc1_b": uni(ks[5], (120,), 400),
        "fc2_w": uni(ks[6], (84, 120), 120),
        "fc2_b": uni(ks[7], (84,), 120),
        "fc3_w": uni(ks[8], (10, 84), 84),
        "fc3_b": uni(ks[9], (10,), 84),
    }


def prepare_params(p):
    """One-time conversion of PyTorch-layout params to kernel layouts (bf16)."""
    f32 = np.float32
    conv1_b = np.asarray(p["conv1_b"], f32)
    conv2_b = np.asarray(p["conv2_b"], f32)
    fc1_w = np.asarray(p["fc1_w"], f32)
    fc2_w = np.asarray(p["fc2_w"], f32)
    fc3_w = np.asarray(p["fc3_w"], f32)

    w1b = _banded_conv_weight(p["conv1_w"], out_w_half=14)   # (2,5,96,84)
    w2b = _banded_conv_weight(p["conv2_w"], out_w_half=5)    # (2,5,84,80)

    # fc1: permute columns from PyTorch (c,h,w) flattening to our (h,[w,c])
    # activation layout, pad the 120 output lanes to 128, split the h axis.
    fc1_hwc = fc1_w.reshape(120, 16, 5, 5).transpose(0, 2, 3, 1).reshape(120, 400)
    w3 = np.zeros((400, 128), f32)
    w3[:, :120] = fc1_hwc.T
    w3 = w3.reshape(5, 80, 128)

    w4 = np.zeros((128, 128), f32)
    w4[:120, :84] = fc2_w.T
    w5 = np.zeros((128, 128), f32)
    w5[:84, :10] = fc3_w.T

    b3 = np.zeros((1, 128), f32); b3[0, :120] = np.asarray(p["fc1_b"], f32)
    b4 = np.zeros((1, 128), f32); b4[0, :84] = np.asarray(p["fc2_b"], f32)
    b5 = np.zeros((1, 128), f32); b5[0, :10] = np.asarray(p["fc3_b"], f32)

    bf = jnp.bfloat16
    return {
        "w1b": jnp.asarray(w1b, bf),
        "b1": jnp.asarray(np.tile(conv1_b, 14).reshape(1, 84), jnp.float32),
        "w2b": jnp.asarray(w2b, bf),
        "b2": jnp.asarray(np.tile(conv2_b, 5).reshape(1, 80), jnp.float32),
        "w3": jnp.asarray(w3, bf), "b3": jnp.asarray(b3),
        "w4": jnp.asarray(w4, bf), "b4": jnp.asarray(b4),
        "w5": jnp.asarray(w5, bf), "b5": jnp.asarray(b5),
    }


# ---------------------------------------------------------------------------
# Forward pass
# ---------------------------------------------------------------------------
def convnet_forward(params, x):
    """x: (N, 3, 32, 32) f32 NCHW (PyTorch convention) -> (N, 10) logits."""
    n = x.shape[0]
    # NCHW -> NHWC, deinterleave H by parity, fold (W, C) on the last axis.
    # One tiny XLA copy of the raw input (replaces the NCHW->NHWC transpose).
    xr = jnp.transpose(x, (0, 2, 3, 1)).reshape(n, 16, 2, 96).transpose(0, 2, 1, 3)

    flops_img = (20 * 2 * 14 * 96 * 84) + (20 * 2 * 5 * 84 * 80) \
        + (5 * 2 * 80 * 128) + 2 * (2 * 128 * 128)
    w_bytes = sum(int(v.size) * v.dtype.itemsize for v in params.values())

    out = pl.pallas_call(
        _convnet_kernel,
        out_shape=jax.ShapeDtypeStruct((n, 1, 128), jnp.float32),
        grid=(n,),
        in_specs=[
            pl.BlockSpec((1, 2, 16, 96), lambda i: (i, 0, 0, 0)),   # image
            pl.BlockSpec((2, 5, 96, 84), lambda i: (0, 0, 0, 0)),   # conv1 banded
            pl.BlockSpec((1, 84), lambda i: (0, 0)),                # conv1 bias row
            pl.BlockSpec((2, 5, 84, 80), lambda i: (0, 0, 0, 0)),   # conv2 banded
            pl.BlockSpec((1, 80), lambda i: (0, 0)),                # conv2 bias row
            pl.BlockSpec((5, 80, 128), lambda i: (0, 0, 0)),        # fc1
            pl.BlockSpec((1, 128), lambda i: (0, 0)),               # fc1 bias
            pl.BlockSpec((128, 128), lambda i: (0, 0)),             # fc2
            pl.BlockSpec((1, 128), lambda i: (0, 0)),               # fc2 bias
            pl.BlockSpec((128, 128), lambda i: (0, 0)),             # fc3
            pl.BlockSpec((1, 128), lambda i: (0, 0)),               # fc3 bias
        ],
        out_specs=pl.BlockSpec((1, 1, 128), lambda i: (i, 0, 0)),
        compiler_params=pltpu.CompilerParams(
            dimension_semantics=("parallel",),
            vmem_limit_bytes=32 * 1024 * 1024,
        ),
        cost_estimate=pl.CostEstimate(
            flops=n * flops_img, transcendentals=0,
            bytes_accessed=n * (2 * 16 * 96 * 4 + 128 * 4) + w_bytes),
    )(xr, params["w1b"], params["b1"], params["w2b"], params["b2"],
      params["w3"], params["b3"], params["w4"], params["b4"],
      params["w5"], params["b5"])

    return out.reshape(n, 128)[:, :10]


# ---------------------------------------------------------------------------
# Pure-JAX f32 reference (semantics check only)
# ---------------------------------------------------------------------------
def convnet_reference(p, x):
    def conv(x, w, b):
        y = jax.lax.conv_general_dilated(
            x, w, (1, 1), "VALID", dimension_numbers=("NCHW", "OIHW", "NCHW"))
        return y + b.reshape(1, -1, 1, 1)

    def pool(x):
        return jax.lax.reduce_window(x, -jnp.inf, jax.lax.max,
                                     (1, 1, 2, 2), (1, 1, 2, 2), "VALID")

    x = pool(jnp.maximum(conv(x, p["conv1_w"], p["conv1_b"]), 0.0))
    x = pool(jnp.maximum(conv(x, p["conv2_w"], p["conv2_b"]), 0.0))
    x = x.reshape(x.shape[0], 400)
    x = jnp.maximum(x @ p["fc1_w"].T + p["fc1_b"], 0.0)
    x = jnp.maximum(x @ p["fc2_w"].T + p["fc2_b"], 0.0)
    return x @ p["fc3_w"].T + p["fc3_b"]


if __name__ == "__main__":
    key = jax.random.PRNGKey(0)
    pkey, xkey = jax.random.split(key)
    raw = init_params(pkey)
    params = prepare_params(raw)
    # ConvNet's fc1 dimensionality (16*5*5) implies 32x32 spatial input.
    x = jax.random.normal(xkey, (2, 3, 32, 32), dtype=jnp.float32)

    out = jax.jit(convnet_forward)(params, x)
    out = jax.block_until_ready(out)
    assert out.shape == (2, 10), out.shape

    # Sanity check vs f32 reference (bf16 matmul tolerance).
    ref = convnet_reference(raw, x)
    err = float(jnp.max(jnp.abs(out - ref)))
    tol = 0.05 * float(jnp.max(jnp.abs(ref))) + 0.02
    assert err < tol, (err, tol)

    print("KERNEL_OK")
</pallas_src>

<mosaic_0001>
module attributes {stable_mosaic.version = 11 : i64} {
  func.func @_convnet_kernel(%arg0: i32, %arg1: memref<1x2x16x96xf32, #tpu.memory_space<vmem>>, %arg2: memref<2x5x96x84xbf16, #tpu.memory_space<vmem>>, %arg3: memref<1x84xf32, #tpu.memory_space<vmem>>, %arg4: memref<2x5x84x80xbf16, #tpu.memory_space<vmem>>, %arg5: memref<1x80xf32, #tpu.memory_space<vmem>>, %arg6: memref<5x80x128xbf16, #tpu.memory_space<vmem>>, %arg7: memref<1x128xf32, #tpu.memory_space<vmem>>, %arg8: memref<128x128xbf16, #tpu.memory_space<vmem>>, %arg9: memref<1x128xf32, #tpu.memory_space<vmem>>, %arg10: memref<128x128xbf16, #tpu.memory_space<vmem>>, %arg11: memref<1x128xf32, #tpu.memory_space<vmem>>, %arg12: memref<1x1x128xf32, #tpu.memory_space<vmem>>) attributes {dimension_semantics = [#tpu.dimension_semantics<parallel>], iteration_bounds = array<i64: 2>, scalar_prefetch = 0 : i64, scratch_operands = 0 : i64, tpu.core_type = #tpu.core_type<tc>, window_params = [{transform_indices = @transform_0, window_bounds = array<i64: 1, 2, 16, 96>}, {pipeline_mode = #tpu.pipeline_mode<synchronous>, transform_indices = @transform_1, window_bounds = array<i64: 2, 5, 96, 84>}, {pipeline_mode = #tpu.pipeline_mode<synchronous>, transform_indices = @transform_2, window_bounds = array<i64: 1, 84>}, {pipeline_mode = #tpu.pipeline_mode<synchronous>, transform_indices = @transform_3, window_bounds = array<i64: 2, 5, 84, 80>}, {pipeline_mode = #tpu.pipeline_mode<synchronous>, transform_indices = @transform_4, window_bounds = array<i64: 1, 80>}, {pipeline_mode = #tpu.pipeline_mode<synchronous>, transform_indices = @transform_5, window_bounds = array<i64: 5, 80, 128>}, {pipeline_mode = #tpu.pipeline_mode<synchronous>, transform_indices = @transform_6, window_bounds = array<i64: 1, 128>}, {pipeline_mode = #tpu.pipeline_mode<synchronous>, transform_indices = @transform_7, window_bounds = array<i64: 128, 128>}, {pipeline_mode = #tpu.pipeline_mode<synchronous>, transform_indices = @transform_8, window_bounds = array<i64: 1, 128>}, {pipeline_mode = #tpu.pipeline_mode<synchronous>, transform_indices = @transform_9, window_bounds = array<i64: 128, 128>}, {pipeline_mode = #tpu.pipeline_mode<synchronous>, transform_indices = @transform_10, window_bounds = array<i64: 1, 128>}, {transform_indices = @transform_11, window_bounds = array<i64: 1, 1, 128>}]} {
    %c0 = arith.constant 0 : index
    %c0_0 = arith.constant 0 : index
    %c0_1 = arith.constant 0 : index
    %c0_2 = arith.constant 0 : index
    %0 = vector.load %arg1[%c0, %c0_0, %c0_1, %c0_2] : memref<1x2x16x96xf32, #tpu.memory_space<vmem>>, vector<1x1x14x96xf32>
    %1 = vector.shape_cast %0 : vector<1x1x14x96xf32> to vector<14x96xf32>
    %2 = arith.truncf %1 : vector<14x96xf32> to vector<14x96xbf16>
    %c0_3 = arith.constant 0 : index
    %c1 = arith.constant 1 : index
    %c0_4 = arith.constant 0 : index
    %c0_5 = arith.constant 0 : index
    %3 = vector.load %arg1[%c0_3, %c1, %c0_4, %c0_5] : memref<1x2x16x96xf32, #tpu.memory_space<vmem>>, vector<1x1x14x96xf32>
    %4 = vector.shape_cast %3 : vector<1x1x14x96xf32> to vector<14x96xf32>
    %5 = arith.truncf %4 : vector<14x96xf32> to vector<14x96xbf16>
    %c0_6 = arith.constant 0 : index
    %c0_7 = arith.constant 0 : index
    %c1_8 = arith.constant 1 : index
    %c0_9 = arith.constant 0 : index
    %6 = vector.load %arg1[%c0_6, %c0_7, %c1_8, %c0_9] : memref<1x2x16x96xf32, #tpu.memory_space<vmem>>, vector<1x1x14x96xf32>
    %7 = vector.shape_cast %6 : vector<1x1x14x96xf32> to vector<14x96xf32>
    %8 = arith.truncf %7 : vector<14x96xf32> to vector<14x96xbf16>
    %c0_10 = arith.constant 0 : index
    %c1_11 = arith.constant 1 : index
    %c1_12 = arith.constant 1 : index
    %c0_13 = arith.constant 0 : index
    %9 = vector.load %arg1[%c0_10, %c1_11, %c1_12, %c0_13] : memref<1x2x16x96xf32, #tpu.memory_space<vmem>>, vector<1x1x14x96xf32>
    %10 = vector.shape_cast %9 : vector<1x1x14x96xf32> to vector<14x96xf32>
    %11 = arith.truncf %10 : vector<14x96xf32> to vector<14x96xbf16>
    %c0_14 = arith.constant 0 : index
    %c0_15 = arith.constant 0 : index
    %c2 = arith.constant 2 : index
    %c0_16 = arith.constant 0 : index
    %12 = vector.load %arg1[%c0_14, %c0_15, %c2, %c0_16] : memref<1x2x16x96xf32, #tpu.memory_space<vmem>>, vector<1x1x14x96xf32>
    %13 = vector.shape_cast %12 : vector<1x1x14x96xf32> to vector<14x96xf32>
    %14 = arith.truncf %13 : vector<14x96xf32> to vector<14x96xbf16>
    %c0_17 = arith.constant 0 : index
    %c1_18 = arith.constant 1 : index
    %c2_19 = arith.constant 2 : index
    %c0_20 = arith.constant 0 : index
    %15 = vector.load %arg1[%c0_17, %c1_18, %c2_19, %c0_20] : memref<1x2x16x96xf32, #tpu.memory_space<vmem>>, vector<1x1x14x96xf32>
    %16 = vector.shape_cast %15 : vector<1x1x14x96xf32> to vector<14x96xf32>
    %17 = arith.truncf %16 : vector<14x96xf32> to vector<14x96xbf16>
    %cst = arith.constant 0.000000e+00 : f32
    %18 = vector.broadcast %cst : f32 to vector<14x84xf32>
    %c0_21 = arith.constant 0 : index
    %c0_22 = arith.constant 0 : index
    %c0_23 = arith.constant 0 : index
    %c0_24 = arith.constant 0 : index
    %19 = vector.load %arg2[%c0_21, %c0_22, %c0_23, %c0_24] : memref<2x5x96x84xbf16, #tpu.memory_space<vmem>>, vector<1x1x96x84xbf16>
    %20 = vector.shape_cast %19 : vector<1x1x96x84xbf16> to vector<96x84xbf16>
    %cst_25 = arith.constant dense<0.000000e+00> : vector<14x84xf32>
    %21 = tpu.matmul %2, %20, %cst_25 {dimension_numbers = #tpu.dot_dimension_numbers<[1], [0], [0], [1], [0, 0, 1, 1], [], []>} : vector<14x96xbf16>, vector<96x84xbf16>, vector<14x84xf32> -> vector<14x84xf32>
    %22 = arith.addf %18, %21 : vector<14x84xf32>
    %c0_26 = arith.constant 0 : index
    %c1_27 = arith.constant 1 : index
    %c0_28 = arith.constant 0 : index
    %c0_29 = arith.constant 0 : index
    %23 = vector.load %arg2[%c0_26, %c1_27, %c0_28, %c0_29] : memref<2x5x96x84xbf16, #tpu.memory_space<vmem>>, vector<1x1x96x84xbf16>
    %24 = vector.shape_cast %23 : vector<1x1x96x84xbf16> to vector<96x84xbf16>
    %cst_30 = arith.constant dense<0.000000e+00> : vector<14x84xf32>
    %25 = tpu.matmul %5, %24, %cst_30 {dimension_numbers = #tpu.dot_dimension_numbers<[1], [0], [0], [1], [0, 0, 1, 1], [], []>} : vector<14x96xbf16>, vector<96x84xbf16>, vector<14x84xf32> -> vector<14x84xf32>
    %26 = arith.addf %22, %25 : vector<14x84xf32>
    %c0_31 = arith.constant 0 : index
    %c2_32 = arith.constant 2 : index
    %c0_33 = arith.constant 0 : index
    %c0_34 = arith.constant 0 : index
    %27 = vector.load %arg2[%c0_31, %c2_32, %c0_33, %c0_34] : memref<2x5x96x84xbf16, #tpu.memory_space<vmem>>, vector<1x1x96x84xbf16>
    %28 = vector.shape_cast %27 : vector<1x1x96x84xbf16> to vector<96x84xbf16>
    %cst_35 = arith.constant dense<0.000000e+00> : vector<14x84xf32>
    %29 = tpu.matmul %8, %28, %cst_35 {dimension_numbers = #tpu.dot_dimension_numbers<[1], [0], [0], [1], [0, 0, 1, 1], [], []>} : vector<14x96xbf16>, vector<96x84xbf16>, vector<14x84xf32> -> vector<14x84xf32>
    %30 = arith.addf %26, %29 : vector<14x84xf32>
    %c0_36 = arith.constant 0 : index
    %c3 = arith.constant 3 : index
    %c0_37 = arith.constant 0 : index
    %c0_38 = arith.constant 0 : index
    %31 = vector.load %arg2[%c0_36, %c3, %c0_37, %c0_38] : memref<2x5x96x84xbf16, #tpu.memory_space<vmem>>, vector<1x1x96x84xbf16>
    %32 = vector.shape_cast %31 : vector<1x1x96x84xbf16> to vector<96x84xbf16>
    %cst_39 = arith.constant dense<0.000000e+00> : vector<14x84xf32>
    %33 = tpu.matmul %11, %32, %cst_39 {dimension_numbers = #tpu.dot_dimension_numbers<[1], [0], [0], [1], [0, 0, 1, 1], [], []>} : vector<14x96xbf16>, vector<96x84xbf16>, vector<14x84xf32> -> vector<14x84xf32>
    %34 = arith.addf %30, %33 : vector<14x84xf32>
    %c0_40 = arith.constant 0 : index
    %c4 = arith.constant 4 : index
    %c0_41 = arith.constant 0 : index
    %c0_42 = arith.constant 0 : index
    %35 = vector.load %arg2[%c0_40, %c4, %c0_41, %c0_42] : memref<2x5x96x84xbf16, #tpu.memory_space<vmem>>, vector<1x1x96x84xbf16>
    %36 = vector.shape_cast %35 : vector<1x1x96x84xbf16> to vector<96x84xbf16>
    %cst_43 = arith.constant dense<0.000000e+00> : vector<14x84xf32>
    %37 = tpu.matmul %14, %36, %cst_43 {dimension_numbers = #tpu.dot_dimension_numbers<[1], [0], [0], [1], [0, 0, 1, 1], [], []>} : vector<14x96xbf16>, vector<96x84xbf16>, vector<14x84xf32> -> vector<14x84xf32>
    %38 = arith.addf %34, %37 : vector<14x84xf32>
    %cst_44 = arith.constant 0.000000e+00 : f32
    %39 = vector.broadcast %cst_44 : f32 to vector<14x84xf32>
    %c1_45 = arith.constant 1 : index
    %c0_46 = arith.constant 0 : index
    %c0_47 = arith.constant 0 : index
    %c0_48 = arith.constant 0 : index
    %40 = vector.load %arg2[%c1_45, %c0_46, %c0_47, %c0_48] : memref<2x5x96x84xbf16, #tpu.memory_space<vmem>>, vector<1x1x96x84xbf16>
    %41 = vector.shape_cast %40 : vector<1x1x96x84xbf16> to vector<96x84xbf16>
    %cst_49 = arith.constant dense<0.000000e+00> : vector<14x84xf32>
    %42 = tpu.matmul %2, %41, %cst_49 {dimension_numbers = #tpu.dot_dimension_numbers<[1], [0], [0], [1], [0, 0, 1, 1], [], []>} : vector<14x96xbf16>, vector<96x84xbf16>, vector<14x84xf32> -> vector<14x84xf32>
    %43 = arith.addf %39, %42 : vector<14x84xf32>
    %c1_50 = arith.constant 1 : index
    %c1_51 = arith.constant 1 : index
    %c0_52 = arith.constant 0 : index
    %c0_53 = arith.constant 0 : index
    %44 = vector.load %arg2[%c1_50, %c1_51, %c0_52, %c0_53] : memref<2x5x96x84xbf16, #tpu.memory_space<vmem>>, vector<1x1x96x84xbf16>
    %45 = vector.shape_cast %44 : vector<1x1x96x84xbf16> to vector<96x84xbf16>
    %cst_54 = arith.constant dense<0.000000e+00> : vector<14x84xf32>
    %46 = tpu.matmul %5, %45, %cst_54 {dimension_numbers = #tpu.dot_dimension_numbers<[1], [0], [0], [1], [0, 0, 1, 1], [], []>} : vector<14x96xbf16>, vector<96x84xbf16>, vector<14x84xf32> -> vector<14x84xf32>
    %47 = arith.addf %43, %46 : vector<14x84xf32>
    %c1_55 = arith.constant 1 : index
    %c2_56 = arith.constant 2 : index
    %c0_57 = arith.constant 0 : index
    %c0_58 = arith.constant 0 : index
    %48 = vector.load %arg2[%c1_55, %c2_56, %c0_57, %c0_58] : memref<2x5x96x84xbf16, #tpu.memory_space<vmem>>, vector<1x1x96x84xbf16>
    %49 = vector.shape_cast %48 : vector<1x1x96x84xbf16> to vector<96x84xbf16>
    %cst_59 = arith.constant dense<0.000000e+00> : vector<14x84xf32>
    %50 = tpu.matmul %8, %49, %cst_59 {dimension_numbers = #tpu.dot_dimension_numbers<[1], [0], [0], [1], [0, 0, 1, 1], [], []>} : vector<14x96xbf16>, vector<96x84xbf16>, vector<14x84xf32> -> vector<14x84xf32>
    %51 = arith.addf %47, %50 : vector<14x84xf32>
    %c1_60 = arith.constant 1 : index
    %c3_61 = arith.constant 3 : index
    %c0_62 = arith.constant 0 : index
    %c0_63 = arith.constant 0 : index
    %52 = vector.load %arg2[%c1_60, %c3_61, %c0_62, %c0_63] : memref<2x5x96x84xbf16, #tpu.memory_space<vmem>>, vector<1x1x96x84xbf16>
    %53 = vector.shape_cast %52 : vector<1x1x96x84xbf16> to vector<96x84xbf16>
    %cst_64 = arith.constant dense<0.000000e+00> : vector<14x84xf32>
    %54 = tpu.matmul %11, %53, %cst_64 {dimension_numbers = #tpu.dot_dimension_numbers<[1], [0], [0], [1], [0, 0, 1, 1], [], []>} : vector<14x96xbf16>, vector<96x84xbf16>, vector<14x84xf32> -> vector<14x84xf32>
    %55 = arith.addf %51, %54 : vector<14x84xf32>
    %c1_65 = arith.constant 1 : index
    %c4_66 = arith.constant 4 : index
    %c0_67 = arith.constant 0 : index
    %c0_68 = arith.constant 0 : index
    %56 = vector.load %arg2[%c1_65, %c4_66, %c0_67, %c0_68] : memref<2x5x96x84xbf16, #tpu.memory_space<vmem>>, vector<1x1x96x84xbf16>
    %57 = vector.shape_cast %56 : vector<1x1x96x84xbf16> to vector<96x84xbf16>
    %cst_69 = arith.constant dense<0.000000e+00> : vector<14x84xf32>
    %58 = tpu.matmul %14, %57, %cst_69 {dimension_numbers = #tpu.dot_dimension_numbers<[1], [0], [0], [1], [0, 0, 1, 1], [], []>} : vector<14x96xbf16>, vector<96x84xbf16>, vector<14x84xf32> -> vector<14x84xf32>
    %59 = arith.addf %55, %58 : vector<14x84xf32>
    %cst_70 = arith.constant 0.000000e+00 : f32
    %60 = vector.broadcast %cst_70 : f32 to vector<14x84xf32>
    %c0_71 = arith.constant 0 : index
    %c0_72 = arith.constant 0 : index
    %c0_73 = arith.constant 0 : index
    %c0_74 = arith.constant 0 : index
    %61 = vector.load %arg2[%c0_71, %c0_72, %c0_73, %c0_74] : memref<2x5x96x84xbf16, #tpu.memory_space<vmem>>, vector<1x1x96x84xbf16>
    %62 = vector.shape_cast %61 : vector<1x1x96x84xbf16> to vector<96x84xbf16>
    %cst_75 = arith.constant dense<0.000000e+00> : vector<14x84xf32>
    %63 = tpu.matmul %5, %62, %cst_75 {dimension_numbers = #tpu.dot_dimension_numbers<[1], [0], [0], [1], [0, 0, 1, 1], [], []>} : vector<14x96xbf16>, vector<96x84xbf16>, vector<14x84xf32> -> vector<14x84xf32>
    %64 = arith.addf %60, %63 : vector<14x84xf32>
    %c0_76 = arith.constant 0 : index
    %c1_77 = arith.constant 1 : index
    %c0_78 = arith.constant 0 : index
    %c0_79 = arith.constant 0 : index
    %65 = vector.load %arg2[%c0_76, %c1_77, %c0_78, %c0_79] : memref<2x5x96x84xbf16, #tpu.memory_space<vmem>>, vector<1x1x96x84xbf16>
    %66 = vector.shape_cast %65 : vector<1x1x96x84xbf16> to vector<96x84xbf16>
    %cst_80 = arith.constant dense<0.000000e+00> : vector<14x84xf32>
    %67 = tpu.matmul %8, %66, %cst_80 {dimension_numbers = #tpu.dot_dimension_numbers<[1], [0], [0], [1], [0, 0, 1, 1], [], []>} : vector<14x96xbf16>, vector<96x84xbf16>, vector<14x84xf32> -> vector<14x84xf32>
    %68 = arith.addf %64, %67 : vector<14x84xf32>
    %c0_81 = arith.constant 0 : index
    %c2_82 = arith.constant 2 : index
    %c0_83 = arith.constant 0 : index
    %c0_84 = arith.constant 0 : index
    %69 = vector.load %arg2[%c0_81, %c2_82, %c0_83, %c0_84] : memref<2x5x96x84xbf16, #tpu.memory_space<vmem>>, vector<1x1x96x84xbf16>
    %70 = vector.shape_cast %69 : vector<1x1x96x84xbf16> to vector<96x84xbf16>
    %cst_85 = arith.constant dense<0.000000e+00> : vector<14x84xf32>
    %71 = tpu.matmul %11, %70, %cst_85 {dimension_numbers = #tpu.dot_dimension_numbers<[1], [0], [0], [1], [0, 0, 1, 1], [], []>} : vector<14x96xbf16>, vector<96x84xbf16>, vector<14x84xf32> -> vector<14x84xf32>
    %72 = arith.addf %68, %71 : vector<14x84xf32>
    %c0_86 = arith.constant 0 : index
    %c3_87 = arith.constant 3 : index
    %c0_88 = arith.constant 0 : index
    %c0_89 = arith.constant 0 : index
    %73 = vector.load %arg2[%c0_86, %c3_87, %c0_88, %c0_89] : memref<2x5x96x84xbf16, #tpu.memory_space<vmem>>, vector<1x1x96x84xbf16>
    %74 = vector.shape_cast %73 : vector<1x1x96x84xbf16> to vector<96x84xbf16>
    %cst_90 = arith.constant dense<0.000000e+00> : vector<14x84xf32>
    %75 = tpu.matmul %14, %74, %cst_90 {dimension_numbers = #tpu.dot_dimension_numbers<[1], [0], [0], [1], [0, 0, 1, 1], [], []>} : vector<14x96xbf16>, vector<96x84xbf16>, vector<14x84xf32> -> vector<14x84xf32>
    %76 = arith.addf %72, %75 : vector<14x84xf32>
    %c0_91 = arith.constant 0 : index
    %c4_92 = arith.constant 4 : index
    %c0_93 = arith.constant 0 : index
    %c0_94 = arith.constant 0 : index
    %77 = vector.load %arg2[%c0_91, %c4_92, %c0_93, %c0_94] : memref<2x5x96x84xbf16, #tpu.memory_space<vmem>>, vector<1x1x96x84xbf16>
    %78 = vector.shape_cast %77 : vector<1x1x96x84xbf16> to vector<96x84xbf16>
    %cst_95 = arith.constant dense<0.000000e+00> : vector<14x84xf32>
    %79 = tpu.matmul %17, %78, %cst_95 {dimension_numbers = #tpu.dot_dimension_numbers<[1], [0], [0], [1], [0, 0, 1, 1], [], []>} : vector<14x96xbf16>, vector<96x84xbf16>, vector<14x84xf32> -> vector<14x84xf32>
    %80 = arith.addf %76, %79 : vector<14x84xf32>
    %cst_96 = arith.constant 0.000000e+00 : f32
    %81 = vector.broadcast %cst_96 : f32 to vector<14x84xf32>
    %c1_97 = arith.constant 1 : index
    %c0_98 = arith.constant 0 : index
    %c0_99 = arith.constant 0 : index
    %c0_100 = arith.constant 0 : index
    %82 = vector.load %arg2[%c1_97, %c0_98, %c0_99, %c0_100] : memref<2x5x96x84xbf16, #tpu.memory_space<vmem>>, vector<1x1x96x84xbf16>
    %83 = vector.shape_cast %82 : vector<1x1x96x84xbf16> to vector<96x84xbf16>
    %cst_101 = arith.constant dense<0.000000e+00> : vector<14x84xf32>
    %84 = tpu.matmul %5, %83, %cst_101 {dimension_numbers = #tpu.dot_dimension_numbers<[1], [0], [0], [1], [0, 0, 1, 1], [], []>} : vector<14x96xbf16>, vector<96x84xbf16>, vector<14x84xf32> -> vector<14x84xf32>
    %85 = arith.addf %81, %84 : vector<14x84xf32>
    %c1_102 = arith.constant 1 : index
    %c1_103 = arith.constant 1 : index
    %c0_104 = arith.constant 0 : index
    %c0_105 = arith.constant 0 : index
    %86 = vector.load %arg2[%c1_102, %c1_103, %c0_104, %c0_105] : memref<2x5x96x84xbf16, #tpu.memory_space<vmem>>, vector<1x1x96x84xbf16>
    %87 = vector.shape_cast %86 : vector<1x1x96x84xbf16> to vector<96x84xbf16>
    %cst_106 = arith.constant dense<0.000000e+00> : vector<14x84xf32>
    %88 = tpu.matmul %8, %87, %cst_106 {dimension_numbers = #tpu.dot_dimension_numbers<[1], [0], [0], [1], [0, 0, 1, 1], [], []>} : vector<14x96xbf16>, vector<96x84xbf16>, vector<14x84xf32> -> vector<14x84xf32>
    %89 = arith.addf %85, %88 : vector<14x84xf32>
    %c1_107 = arith.constant 1 : index
    %c2_108 = arith.constant 2 : index
    %c0_109 = arith.constant 0 : index
    %c0_110 = arith.constant 0 : index
    %90 = vector.load %arg2[%c1_107, %c2_108, %c0_109, %c0_110] : memref<2x5x96x84xbf16, #tpu.memory_space<vmem>>, vector<1x1x96x84xbf16>
    %91 = vector.shape_cast %90 : vector<1x1x96x84xbf16> to vector<96x84xbf16>
    %cst_111 = arith.constant dense<0.000000e+00> : vector<14x84xf32>
    %92 = tpu.matmul %11, %91, %cst_111 {dimension_numbers = #tpu.dot_dimension_numbers<[1], [0], [0], [1], [0, 0, 1, 1], [], []>} : vector<14x96xbf16>, vector<96x84xbf16>, vector<14x84xf32> -> vector<14x84xf32>
    %93 = arith.addf %89, %92 : vector<14x84xf32>
    %c1_112 = arith.constant 1 : index
    %c3_113 = arith.constant 3 : index
    %c0_114 = arith.constant 0 : index
    %c0_115 = arith.constant 0 : index
    %94 = vector.load %arg2[%c1_112, %c3_113, %c0_114, %c0_115] : memref<2x5x96x84xbf16, #tpu.memory_space<vmem>>, vector<1x1x96x84xbf16>
    %95 = vector.shape_cast %94 : vector<1x1x96x84xbf16> to vector<96x84xbf16>
    %cst_116 = arith.constant dense<0.000000e+00> : vector<14x84xf32>
    %96 = tpu.matmul %14, %95, %cst_116 {dimension_numbers = #tpu.dot_dimension_numbers<[1], [0], [0], [1], [0, 0, 1, 1], [], []>} : vector<14x96xbf16>, vector<96x84xbf16>, vector<14x84xf32> -> vector<14x84xf32>
    %97 = arith.addf %93, %96 : vector<14x84xf32>
    %c1_117 = arith.constant 1 : index
    %c4_118 = arith.constant 4 : index
    %c0_119 = arith.constant 0 : index
    %c0_120 = arith.constant 0 : index
    %98 = vector.load %arg2[%c1_117, %c4_118, %c0_119, %c0_120] : memref<2x5x96x84xbf16, #tpu.memory_space<vmem>>, vector<1x1x96x84xbf16>
    %99 = vector.shape_cast %98 : vector<1x1x96x84xbf16> to vector<96x84xbf16>
    %cst_121 = arith.constant dense<0.000000e+00> : vector<14x84xf32>
    %100 = tpu.matmul %17, %99, %cst_121 {dimension_numbers = #tpu.dot_dimension_numbers<[1], [0], [0], [1], [0, 0, 1, 1], [], []>} : vector<14x96xbf16>, vector<96x84xbf16>, vector<14x84xf32> -> vector<14x84xf32>
    %101 = arith.addf %97, %100 : vector<14x84xf32>
    %102 = arith.maximumf %38, %59 : vector<14x84xf32>
    %103 = arith.maximumf %80, %101 : vector<14x84xf32>
    %104 = arith.maximumf %102, %103 : vector<14x84xf32>
    %c0_122 = arith.constant 0 : index
    %c0_123 = arith.constant 0 : index
    %105 = vector.load %arg3[%c0_122, %c0_123] : memref<1x84xf32, #tpu.memory_space<vmem>>, vector<1x84xf32>
    %106 = vector.broadcast %105 : vector<1x84xf32> to vector<14x84xf32>
    %107 = arith.addf %104, %106 : vector<14x84xf32>
    %cst_124 = arith.constant 0.000000e+00 : f32
    %108 = vector.broadcast %cst_124 : f32 to vector<14x84xf32>
    %109 = arith.maximumf %107, %108 : vector<14x84xf32>
    %110 = vector.extract_strided_slice %109 {offsets = [0, 0], sizes = [1, 84], strides = [1, 1]} : vector<14x84xf32> to vector<1x84xf32>
    %111 = vector.extract_strided_slice %109 {offsets = [2, 0], sizes = [1, 84], strides = [1, 1]} : vector<14x84xf32> to vector<1x84xf32>
    %112 = vector.extract_strided_slice %109 {offsets = [4, 0], sizes = [1, 84], strides = [1, 1]} : vector<14x84xf32> to vector<1x84xf32>
    %113 = vector.extract_strided_slice %109 {offsets = [6, 0], sizes = [1, 84], strides = [1, 1]} : vector<14x84xf32> to vector<1x84xf32>
    %114 = vector.extract_strided_slice %109 {offsets = [8, 0], sizes = [1, 84], strides = [1, 1]} : vector<14x84xf32> to vector<1x84xf32>
    %115 = tpu.concatenate %110, %111, %112, %113, %114 in 0 : vector<1x84xf32>, vector<1x84xf32>, vector<1x84xf32>, vector<1x84xf32>, vector<1x84xf32> -> vector<5x84xf32>
    %116 = arith.truncf %115 : vector<5x84xf32> to vector<5x84xbf16>
    %117 = vector.extract_strided_slice %109 {offsets = [1, 0], sizes = [1, 84], strides = [1, 1]} : vector<14x84xf32> to vector<1x84xf32>
    %118 = vector.extract_strided_slice %109 {offsets = [3, 0], sizes = [1, 84], strides = [1, 1]} : vector<14x84xf32> to vector<1x84xf32>
    %119 = vector.extract_strided_slice %109 {offsets = [5, 0], sizes = [1, 84], strides = [1, 1]} : vector<14x84xf32> to vector<1x84xf32>
    %120 = vector.extract_strided_slice %109 {offsets = [7, 0], sizes = [1, 84], strides = [1, 1]} : vector<14x84xf32> to vector<1x84xf32>
    %121 = vector.extract_strided_slice %109 {offsets = [9, 0], sizes = [1, 84], strides = [1, 1]} : vector<14x84xf32> to vector<1x84xf32>
    %122 = tpu.concatenate %117, %118, %119, %120, %121 in 0 : vector<1x84xf32>, vector<1x84xf32>, vector<1x84xf32>, vector<1x84xf32>, vector<1x84xf32> -> vector<5x84xf32>
    %123 = arith.truncf %122 : vector<5x84xf32> to vector<5x84xbf16>
    %124 = vector.extract_strided_slice %109 {offsets = [2, 0], sizes = [1, 84], strides = [1, 1]} : vector<14x84xf32> to vector<1x84xf32>
    %125 = vector.extract_strided_slice %109 {offsets = [4, 0], sizes = [1, 84], strides = [1, 1]} : vector<14x84xf32> to vector<1x84xf32>
    %126 = vector.extract_strided_slice %109 {offsets = [6, 0], sizes = [1, 84], strides = [1, 1]} : vector<14x84xf32> to vector<1x84xf32>
    %127 = vector.extract_strided_slice %109 {offsets = [8, 0], sizes = [1, 84], strides = [1, 1]} : vector<14x84xf32> to vector<1x84xf32>
    %128 = vector.extract_strided_slice %109 {offsets = [10, 0], sizes = [1, 84], strides = [1, 1]} : vector<14x84xf32> to vector<1x84xf32>
    %129 = tpu.concatenate %124, %125, %126, %127, %128 in 0 : vector<1x84xf32>, vector<1x84xf32>, vector<1x84xf32>, vector<1x84xf32>, vector<1x84xf32> -> vector<5x84xf32>
    %130 = arith.truncf %129 : vector<5x84xf32> to vector<5x84xbf16>
    %131 = vector.extract_strided_slice %109 {offsets = [3, 0], sizes = [1, 84], strides = [1, 1]} : vector<14x84xf32> to vector<1x84xf32>
    %132 = vector.extract_strided_slice %109 {offsets = [5, 0], sizes = [1, 84], strides = [1, 1]} : vector<14x84xf32> to vector<1x84xf32>
    %133 = vector.extract_strided_slice %109 {offsets = [7, 0], sizes = [1, 84], strides = [1, 1]} : vector<14x84xf32> to vector<1x84xf32>
    %134 = vector.extract_strided_slice %109 {offsets = [9, 0], sizes = [1, 84], strides = [1, 1]} : vector<14x84xf32> to vector<1x84xf32>
    %135 = vector.extract_strided_slice %109 {offsets = [11, 0], sizes = [1, 84], strides = [1, 1]} : vector<14x84xf32> to vector<1x84xf32>
    %136 = tpu.concatenate %131, %132, %133, %134, %135 in 0 : vector<1x84xf32>, vector<1x84xf32>, vector<1x84xf32>, vector<1x84xf32>, vector<1x84xf32> -> vector<5x84xf32>
    %137 = arith.truncf %136 : vector<5x84xf32> to vector<5x84xbf16>
    %138 = vector.extract_strided_slice %109 {offsets = [4, 0], sizes = [1, 84], strides = [1, 1]} : vector<14x84xf32> to vector<1x84xf32>
    %139 = vector.extract_strided_slice %109 {offsets = [6, 0], sizes = [1, 84], strides = [1, 1]} : vector<14x84xf32> to vector<1x84xf32>
    %140 = vector.extract_strided_slice %109 {offsets = [8, 0], sizes = [1, 84], strides = [1, 1]} : vector<14x84xf32> to vector<1x84xf32>
    %141 = vector.extract_strided_slice %109 {offsets = [10, 0], sizes = [1, 84], strides = [1, 1]} : vector<14x84xf32> to vector<1x84xf32>
    %142 = vector.extract_strided_slice %109 {offsets = [12, 0], sizes = [1, 84], strides = [1, 1]} : vector<14x84xf32> to vector<1x84xf32>
    %143 = tpu.concatenate %138, %139, %140, %141, %142 in 0 : vector<1x84xf32>, vector<1x84xf32>, vector<1x84xf32>, vector<1x84xf32>, vector<1x84xf32> -> vector<5x84xf32>
    %144 = arith.truncf %143 : vector<5x84xf32> to vector<5x84xbf16>
    %145 = vector.extract_strided_slice %109 {offsets = [5, 0], sizes = [1, 84], strides = [1, 1]} : vector<14x84xf32> to vector<1x84xf32>
    %146 = vector.extract_strided_slice %109 {offsets = [7, 0], sizes = [1, 84], strides = [1, 1]} : vector<14x84xf32> to vector<1x84xf32>
    %147 = vector.extract_strided_slice %109 {offsets = [9, 0], sizes = [1, 84], strides = [1, 1]} : vector<14x84xf32> to vector<1x84xf32>
    %148 = vector.extract_strided_slice %109 {offsets = [11, 0], sizes = [1, 84], strides = [1, 1]} : vector<14x84xf32> to vector<1x84xf32>
    %149 = vector.extract_strided_slice %109 {offsets = [13, 0], sizes = [1, 84], strides = [1, 1]} : vector<14x84xf32> to vector<1x84xf32>
    %150 = tpu.concatenate %145, %146, %147, %148, %149 in 0 : vector<1x84xf32>, vector<1x84xf32>, vector<1x84xf32>, vector<1x84xf32>, vector<1x84xf32> -> vector<5x84xf32>
    %151 = arith.truncf %150 : vector<5x84xf32> to vector<5x84xbf16>
    %cst_125 = arith.constant 0.000000e+00 : f32
    %152 = vector.broadcast %cst_125 : f32 to vector<5x80xf32>
    %c0_126 = arith.constant 0 : index
    %c0_127 = arith.constant 0 : index
    %c0_128 = arith.constant 0 : index
    %c0_129 = arith.constant 0 : index
    %153 = vector.load %arg4[%c0_126, %c0_127, %c0_128, %c0_129] : memref<2x5x84x80xbf16, #tpu.memory_space<vmem>>, vector<1x1x84x80xbf16>
    %154 = vector.shape_cast %153 : vector<1x1x84x80xbf16> to vector<84x80xbf16>
    %cst_130 = arith.constant dense<0.000000e+00> : vector<5x80xf32>
    %155 = tpu.matmul %116, %154, %cst_130 {dimension_numbers = #tpu.dot_dimension_numbers<[1], [0], [0], [1], [0, 0, 1, 1], [], []>} : vector<5x84xbf16>, vector<84x80xbf16>, vector<5x80xf32> -> vector<5x80xf32>
    %156 = arith.addf %152, %155 : vector<5x80xf32>
    %c0_131 = arith.constant 0 : index
    %c1_132 = arith.constant 1 : index
    %c0_133 = arith.constant 0 : index
    %c0_134 = arith.constant 0 : index
    %157 = vector.load %arg4[%c0_131, %c1_132, %c0_133, %c0_134] : memref<2x5x84x80xbf16, #tpu.memory_space<vmem>>, vector<1x1x84x80xbf16>
    %158 = vector.shape_cast %157 : vector<1x1x84x80xbf16> to vector<84x80xbf16>
    %cst_135 = arith.constant dense<0.000000e+00> : vector<5x80xf32>
    %159 = tpu.matmul %123, %158, %cst_135 {dimension_numbers = #tpu.dot_dimension_numbers<[1], [0], [0], [1], [0, 0, 1, 1], [], []>} : vector<5x84xbf16>, vector<84x80xbf16>, vector<5x80xf32> -> vector<5x80xf32>
    %160 = arith.addf %156, %159 : vector<5x80xf32>
    %c0_136 = arith.constant 0 : index
    %c2_137 = arith.constant 2 : index
    %c0_138 = arith.constant 0 : index
    %c0_139 = arith.constant 0 : index
    %161 = vector.load %arg4[%c0_136, %c2_137, %c0_138, %c0_139] : memref<2x5x84x80xbf16, #tpu.memory_space<vmem>>, vector<1x1x84x80xbf16>
    %162 = vector.shape_cast %161 : vector<1x1x84x80xbf16> to vector<84x80xbf16>
    %cst_140 = arith.constant dense<0.000000e+00> : vector<5x80xf32>
    %163 = tpu.matmul %130, %162, %cst_140 {dimension_numbers = #tpu.dot_dimension_numbers<[1], [0], [0], [1], [0, 0, 1, 1], [], []>} : vector<5x84xbf16>, vector<84x80xbf16>, vector<5x80xf32> -> vector<5x80xf32>
    %164 = arith.addf %160, %163 : vector<5x80xf32>
    %c0_141 = arith.constant 0 : index
    %c3_142 = arith.constant 3 : index
    %c0_143 = arith.constant 0 : index
    %c0_144 = arith.constant 0 : index
    %165 = vector.load %arg4[%c0_141, %c3_142, %c0_143, %c0_144] : memref<2x5x84x80xbf16, #tpu.memory_space<vmem>>, vector<1x1x84x80xbf16>
    %166 = vector.shape_cast %165 : vector<1x1x84x80xbf16> to vector<84x80xbf16>
    %cst_145 = arith.constant dense<0.000000e+00> : vector<5x80xf32>
    %167 = tpu.matmul %137, %166, %cst_145 {dimension_numbers = #tpu.dot_dimension_numbers<[1], [0], [0], [1], [0, 0, 1, 1], [], []>} : vector<5x84xbf16>, vector<84x80xbf16>, vector<5x80xf32> -> vector<5x80xf32>
    %168 = arith.addf %164, %167 : vector<5x80xf32>
    %c0_146 = arith.constant 0 : index
    %c4_147 = arith.constant 4 : index
    %c0_148 = arith.constant 0 : index
    %c0_149 = arith.constant 0 : index
    %169 = vector.load %arg4[%c0_146, %c4_147, %c0_148, %c0_149] : memref<2x5x84x80xbf16, #tpu.memory_space<vmem>>, vector<1x1x84x80xbf16>
    %170 = vector.shape_cast %169 : vector<1x1x84x80xbf16> to vector<84x80xbf16>
    %cst_150 = arith.constant dense<0.000000e+00> : vector<5x80xf32>
    %171 = tpu.matmul %144, %170, %cst_150 {dimension_numbers = #tpu.dot_dimension_numbers<[1], [0], [0], [1], [0, 0, 1, 1], [], []>} : vector<5x84xbf16>, vector<84x80xbf16>, vector<5x80xf32> -> vector<5x80xf32>
    %172 = arith.addf %168, %171 : vector<5x80xf32>
    %cst_151 = arith.constant 0.000000e+00 : f32
    %173 = vector.broadcast %cst_151 : f32 to vector<5x80xf32>
    %c1_152 = arith.constant 1 : index
    %c0_153 = arith.constant 0 : index
    %c0_154 = arith.constant 0 : index
    %c0_155 = arith.constant 0 : index
    %174 = vector.load %arg4[%c1_152, %c0_153, %c0_154, %c0_155] : memref<2x5x84x80xbf16, #tpu.memory_space<vmem>>, vector<1x1x84x80xbf16>
    %175 = vector.shape_cast %174 : vector<1x1x84x80xbf16> to vector<84x80xbf16>
    %cst_156 = arith.constant dense<0.000000e+00> : vector<5x80xf32>
    %176 = tpu.matmul %116, %175, %cst_156 {dimension_numbers = #tpu.dot_dimension_numbers<[1], [0], [0], [1], [0, 0, 1, 1], [], []>} : vector<5x84xbf16>, vector<84x80xbf16>, vector<5x80xf32> -> vector<5x80xf32>
    %177 = arith.addf %173, %176 : vector<5x80xf32>
    %c1_157 = arith.constant 1 : index
    %c1_158 = arith.constant 1 : index
    %c0_159 = arith.constant 0 : index
    %c0_160 = arith.constant 0 : index
    %178 = vector.load %arg4[%c1_157, %c1_158, %c0_159, %c0_160] : memref<2x5x84x80xbf16, #tpu.memory_space<vmem>>, vector<1x1x84x80xbf16>
    %179 = vector.shape_cast %178 : vector<1x1x84x80xbf16> to vector<84x80xbf16>
    %cst_161 = arith.constant dense<0.000000e+00> : vector<5x80xf32>
    %180 = tpu.matmul %123, %179, %cst_161 {dimension_numbers = #tpu.dot_dimension_numbers<[1], [0], [0], [1], [0, 0, 1, 1], [], []>} : vector<5x84xbf16>, vector<84x80xbf16>, vector<5x80xf32> -> vector<5x80xf32>
    %181 = arith.addf %177, %180 : vector<5x80xf32>
    %c1_162 = arith.constant 1 : index
    %c2_163 = arith.constant 2 : index
    %c0_164 = arith.constant 0 : index
    %c0_165 = arith.constant 0 : index
    %182 = vector.load %arg4[%c1_162, %c2_163, %c0_164, %c0_165] : memref<2x5x84x80xbf16, #tpu.memory_space<vmem>>, vector<1x1x84x80xbf16>
    %183 = vector.shape_cast %182 : vector<1x1x84x80xbf16> to vector<84x80xbf16>
    %cst_166 = arith.constant dense<0.000000e+00> : vector<5x80xf32>
    %184 = tpu.matmul %130, %183, %cst_166 {dimension_numbers = #tpu.dot_dimension_numbers<[1], [0], [0], [1], [0, 0, 1, 1], [], []>} : vector<5x84xbf16>, vector<84x80xbf16>, vector<5x80xf32> -> vector<5x80xf32>
    %185 = arith.addf %181, %184 : vector<5x80xf32>
    %c1_167 = arith.constant 1 : index
    %c3_168 = arith.constant 3 : index
    %c0_169 = arith.constant 0 : index
    %c0_170 = arith.constant 0 : index
    %186 = vector.load %arg4[%c1_167, %c3_168, %c0_169, %c0_170] : memref<2x5x84x80xbf16, #tpu.memory_space<vmem>>, vector<1x1x84x80xbf16>
    %187 = vector.shape_cast %186 : vector<1x1x84x80xbf16> to vector<84x80xbf16>
    %cst_171 = arith.constant dense<0.000000e+00> : vector<5x80xf32>
    %188 = tpu.matmul %137, %187, %cst_171 {dimension_numbers = #tpu.dot_dimension_numbers<[1], [0], [0], [1], [0, 0, 1, 1], [], []>} : vector<5x84xbf16>, vector<84x80xbf16>, vector<5x80xf32> -> vector<5x80xf32>
    %189 = arith.addf %185, %188 : vector<5x80xf32>
    %c1_172 = arith.constant 1 : index
    %c4_173 = arith.constant 4 : index
    %c0_174 = arith.constant 0 : index
    %c0_175 = arith.constant 0 : index
    %190 = vector.load %arg4[%c1_172, %c4_173, %c0_174, %c0_175] : memref<2x5x84x80xbf16, #tpu.memory_space<vmem>>, vector<1x1x84x80xbf16>
    %191 = vector.shape_cast %190 : vector<1x1x84x80xbf16> to vector<84x80xbf16>
    %cst_176 = arith.constant dense<0.000000e+00> : vector<5x80xf32>
    %192 = tpu.matmul %144, %191, %cst_176 {dimension_numbers = #tpu.dot_dimension_numbers<[1], [0], [0], [1], [0, 0, 1, 1], [], []>} : vector<5x84xbf16>, vector<84x80xbf16>, vector<5x80xf32> -> vector<5x80xf32>
    %193 = arith.addf %189, %192 : vector<5x80xf32>
    %cst_177 = arith.constant 0.000000e+00 : f32
    %194 = vector.broadcast %cst_177 : f32 to vector<5x80xf32>
    %c0_178 = arith.constant 0 : index
    %c0_179 = arith.constant 0 : index
    %c0_180 = arith.constant 0 : index
    %c0_181 = arith.constant 0 : index
    %195 = vector.load %arg4[%c0_178, %c0_179, %c0_180, %c0_181] : memref<2x5x84x80xbf16, #tpu.memory_space<vmem>>, vector<1x1x84x80xbf16>
    %196 = vector.shape_cast %195 : vector<1x1x84x80xbf16> to vector<84x80xbf16>
    %cst_182 = arith.constant dense<0.000000e+00> : vector<5x80xf32>
    %197 = tpu.matmul %123, %196, %cst_182 {dimension_numbers = #tpu.dot_dimension_numbers<[1], [0], [0], [1], [0, 0, 1, 1], [], []>} : vector<5x84xbf16>, vector<84x80xbf16>, vector<5x80xf32> -> vector<5x80xf32>
    %198 = arith.addf %194, %197 : vector<5x80xf32>
    %c0_183 = arith.constant 0 : index
    %c1_184 = arith.constant 1 : index
    %c0_185 = arith.constant 0 : index
    %c0_186 = arith.constant 0 : index
    %199 = vector.load %arg4[%c0_183, %c1_184, %c0_185, %c0_186] : memref<2x5x84x80xbf16, #tpu.memory_space<vmem>>, vector<1x1x84x80xbf16>
    %200 = vector.shape_cast %199 : vector<1x1x84x80xbf16> to vector<84x80xbf16>
    %cst_187 = arith.constant dense<0.000000e+00> : vector<5x80xf32>
    %201 = tpu.matmul %130, %200, %cst_187 {dimension_numbers = #tpu.dot_dimension_numbers<[1], [0], [0], [1], [0, 0, 1, 1], [], []>} : vector<5x84xbf16>, vector<84x80xbf16>, vector<5x80xf32> -> vector<5x80xf32>
    %202 = arith.addf %198, %201 : vector<5x80xf32>
    %c0_188 = arith.constant 0 : index
    %c2_189 = arith.constant 2 : index
    %c0_190 = arith.constant 0 : index
    %c0_191 = arith.constant 0 : index
    %203 = vector.load %arg4[%c0_188, %c2_189, %c0_190, %c0_191] : memref<2x5x84x80xbf16, #tpu.memory_space<vmem>>, vector<1x1x84x80xbf16>
    %204 = vector.shape_cast %203 : vector<1x1x84x80xbf16> to vector<84x80xbf16>
    %cst_192 = arith.constant dense<0.000000e+00> : vector<5x80xf32>
    %205 = tpu.matmul %137, %204, %cst_192 {dimension_numbers = #tpu.dot_dimension_numbers<[1], [0], [0], [1], [0, 0, 1, 1], [], []>} : vector<5x84xbf16>, vector<84x80xbf16>, vector<5x80xf32> -> vector<5x80xf32>
    %206 = arith.addf %202, %205 : vector<5x80xf32>
    %c0_193 = arith.constant 0 : index
    %c3_194 = arith.constant 3 : index
    %c0_195 = arith.constant 0 : index
    %c0_196 = arith.constant 0 : index
    %207 = vector.load %arg4[%c0_193, %c3_194, %c0_195, %c0_196] : memref<2x5x84x80xbf16, #tpu.memory_space<vmem>>, vector<1x1x84x80xbf16>
    %208 = vector.shape_cast %207 : vector<1x1x84x80xbf16> to vector<84x80xbf16>
    %cst_197 = arith.constant dense<0.000000e+00> : vector<5x80xf32>
    %209 = tpu.matmul %144, %208, %cst_197 {dimension_numbers = #tpu.dot_dimension_numbers<[1], [0], [0], [1], [0, 0, 1, 1], [], []>} : vector<5x84xbf16>, vector<84x80xbf16>, vector<5x80xf32> -> vector<5x80xf32>
    %210 = arith.addf %206, %209 : vector<5x80xf32>
    %c0_198 = arith.constant 0 : index
    %c4_199 = arith.constant 4 : index
    %c0_200 = arith.constant 0 : index
    %c0_201 = arith.constant 0 : index
    %211 = vector.load %arg4[%c0_198, %c4_199, %c0_200, %c0_201] : memref<2x5x84x80xbf16, #tpu.memory_space<vmem>>, vector<1x1x84x80xbf16>
    %212 = vector.shape_cast %211 : vector<1x1x84x80xbf16> to vector<84x80xbf16>
    %cst_202 = arith.constant dense<0.000000e+00> : vector<5x80xf32>
    %213 = tpu.matmul %151, %212, %cst_202 {dimension_numbers = #tpu.dot_dimension_numbers<[1], [0], [0], [1], [0, 0, 1, 1], [], []>} : vector<5x84xbf16>, vector<84x80xbf16>, vector<5x80xf32> -> vector<5x80xf32>
    %214 = arith.addf %210, %213 : vector<5x80xf32>
    %cst_203 = arith.constant 0.000000e+00 : f32
    %215 = vector.broadcast %cst_203 : f32 to vector<5x80xf32>
    %c1_204 = arith.constant 1 : index
    %c0_205 = arith.constant 0 : index
    %c0_206 = arith.constant 0 : index
    %c0_207 = arith.constant 0 : index
    %216 = vector.load %arg4[%c1_204, %c0_205, %c0_206, %c0_207] : memref<2x5x84x80xbf16, #tpu.memory_space<vmem>>, vector<1x1x84x80xbf16>
    %217 = vector.shape_cast %216 : vector<1x1x84x80xbf16> to vector<84x80xbf16>
    %cst_208 = arith.constant dense<0.000000e+00> : vector<5x80xf32>
    %218 = tpu.matmul %123, %217, %cst_208 {dimension_numbers = #tpu.dot_dimension_numbers<[1], [0], [0], [1], [0, 0, 1, 1], [], []>} : vector<5x84xbf16>, vector<84x80xbf16>, vector<5x80xf32> -> vector<5x80xf32>
    %219 = arith.addf %215, %218 : vector<5x80xf32>
    %c1_209 = arith.constant 1 : index
    %c1_210 = arith.constant 1 : index
    %c0_211 = arith.constant 0 : index
    %c0_212 = arith.constant 0 : index
    %220 = vector.load %arg4[%c1_209, %c1_210, %c0_211, %c0_212] : memref<2x5x84x80xbf16, #tpu.memory_space<vmem>>, vector<1x1x84x80xbf16>
    %221 = vector.shape_cast %220 : vector<1x1x84x80xbf16> to vector<84x80xbf16>
    %cst_213 = arith.constant dense<0.000000e+00> : vector<5x80xf32>
    %222 = tpu.matmul %130, %221, %cst_213 {dimension_numbers = #tpu.dot_dimension_numbers<[1], [0], [0], [1], [0, 0, 1, 1], [], []>} : vector<5x84xbf16>, vector<84x80xbf16>, vector<5x80xf32> -> vector<5x80xf32>
    %223 = arith.addf %219, %222 : vector<5x80xf32>
    %c1_214 = arith.constant 1 : index
    %c2_215 = arith.constant 2 : index
    %c0_216 = arith.constant 0 : index
    %c0_217 = arith.constant 0 : index
    %224 = vector.load %arg4[%c1_214, %c2_215, %c0_216, %c0_217] : memref<2x5x84x80xbf16, #tpu.memory_space<vmem>>, vector<1x1x84x80xbf16>
    %225 = vector.shape_cast %224 : vector<1x1x84x80xbf16> to vector<84x80xbf16>
    %cst_218 = arith.constant dense<0.000000e+00> : vector<5x80xf32>
    %226 = tpu.matmul %137, %225, %cst_218 {dimension_numbers = #tpu.dot_dimension_numbers<[1], [0], [0], [1], [0, 0, 1, 1], [], []>} : vector<5x84xbf16>, vector<84x80xbf16>, vector<5x80xf32> -> vector<5x80xf32>
    %227 = arith.addf %223, %226 : vector<5x80xf32>
    %c1_219 = arith.constant 1 : index
    %c3_220 = arith.constant 3 : index
    %c0_221 = arith.constant 0 : index
    %c0_222 = arith.constant 0 : index
    %228 = vector.load %arg4[%c1_219, %c3_220, %c0_221, %c0_222] : memref<2x5x84x80xbf16, #tpu.memory_space<vmem>>, vector<1x1x84x80xbf16>
    %229 = vector.shape_cast %228 : vector<1x1x84x80xbf16> to vector<84x80xbf16>
    %cst_223 = arith.constant dense<0.000000e+00> : vector<5x80xf32>
    %230 = tpu.matmul %144, %229, %cst_223 {dimension_numbers = #tpu.dot_dimension_numbers<[1], [0], [0], [1], [0, 0, 1, 1], [], []>} : vector<5x84xbf16>, vector<84x80xbf16>, vector<5x80xf32> -> vector<5x80xf32>
    %231 = arith.addf %227, %230 : vector<5x80xf32>
    %c1_224 = arith.constant 1 : index
    %c4_225 = arith.constant 4 : index
    %c0_226 = arith.constant 0 : index
    %c0_227 = arith.constant 0 : index
    %232 = vector.load %arg4[%c1_224, %c4_225, %c0_226, %c0_227] : memref<2x5x84x80xbf16, #tpu.memory_space<vmem>>, vector<1x1x84x80xbf16>
    %233 = vector.shape_cast %232 : vector<1x1x84x80xbf16> to vector<84x80xbf16>
    %cst_228 = arith.constant dense<0.000000e+00> : vector<5x80xf32>
    %234 = tpu.matmul %151, %233, %cst_228 {dimension_numbers = #tpu.dot_dimension_numbers<[1], [0], [0], [1], [0, 0, 1, 1], [], []>} : vector<5x84xbf16>, vector<84x80xbf16>, vector<5x80xf32> -> vector<5x80xf32>
    %235 = arith.addf %231, %234 : vector<5x80xf32>
    %236 = arith.maximumf %172, %193 : vector<5x80xf32>
    %237 = arith.maximumf %214, %235 : vector<5x80xf32>
    %238 = arith.maximumf %236, %237 : vector<5x80xf32>
    %c0_229 = arith.constant 0 : index
    %c0_230 = arith.constant 0 : index
    %239 = vector.load %arg5[%c0_229, %c0_230] : memref<1x80xf32, #tpu.memory_space<vmem>>, vector<1x80xf32>
    %240 = vector.broadcast %239 : vector<1x80xf32> to vector<5x80xf32>
    %241 = arith.addf %238, %240 : vector<5x80xf32>
    %cst_231 = arith.constant 0.000000e+00 : f32
    %242 = vector.broadcast %cst_231 : f32 to vector<5x80xf32>
    %243 = arith.maximumf %241, %242 : vector<5x80xf32>
    %244 = arith.truncf %243 : vector<5x80xf32> to vector<5x80xbf16>
    %cst_232 = arith.constant 0.000000e+00 : f32
    %245 = vector.broadcast %cst_232 : f32 to vector<1x128xf32>
    %246 = vector.extract_strided_slice %244 {offsets = [0, 0], sizes = [1, 80], strides = [1, 1]} : vector<5x80xbf16> to vector<1x80xbf16>
    %c0_233 = arith.constant 0 : index
    %c0_234 = arith.constant 0 : index
    %c0_235 = arith.constant 0 : index
    %247 = vector.load %arg6[%c0_233, %c0_234, %c0_235] : memref<5x80x128xbf16, #tpu.memory_space<vmem>>, vector<1x80x128xbf16>
    %248 = vector.shape_cast %247 : vector<1x80x128xbf16> to vector<80x128xbf16>
    %cst_236 = arith.constant dense<0.000000e+00> : vector<1x128xf32>
    %249 = tpu.matmul %246, %248, %cst_236 {dimension_numbers = #tpu.dot_dimension_numbers<[1], [0], [0], [1], [0, 0, 1, 1], [], []>} : vector<1x80xbf16>, vector<80x128xbf16>, vector<1x128xf32> -> vector<1x128xf32>
    %250 = arith.addf %245, %249 : vector<1x128xf32>
    %251 = vector.extract_strided_slice %244 {offsets = [1, 0], sizes = [1, 80], strides = [1, 1]} : vector<5x80xbf16> to vector<1x80xbf16>
    %c1_237 = arith.constant 1 : index
    %c0_238 = arith.constant 0 : index
    %c0_239 = arith.constant 0 : index
    %252 = vector.load %arg6[%c1_237, %c0_238, %c0_239] : memref<5x80x128xbf16, #tpu.memory_space<vmem>>, vector<1x80x128xbf16>
    %253 = vector.shape_cast %252 : vector<1x80x128xbf16> to vector<80x128xbf16>
    %cst_240 = arith.constant dense<0.000000e+00> : vector<1x128xf32>
    %254 = tpu.matmul %251, %253, %cst_240 {dimension_numbers = #tpu.dot_dimension_numbers<[1], [0], [0], [1], [0, 0, 1, 1], [], []>} : vector<1x80xbf16>, vector<80x128xbf16>, vector<1x128xf32> -> vector<1x128xf32>
    %255 = arith.addf %250, %254 : vector<1x128xf32>
    %256 = vector.extract_strided_slice %244 {offsets = [2, 0], sizes = [1, 80], strides = [1, 1]} : vector<5x80xbf16> to vector<1x80xbf16>
    %c2_241 = arith.constant 2 : index
    %c0_242 = arith.constant 0 : index
    %c0_243 = arith.constant 0 : index
    %257 = vector.load %arg6[%c2_241, %c0_242, %c0_243] : memref<5x80x128xbf16, #tpu.memory_space<vmem>>, vector<1x80x128xbf16>
    %258 = vector.shape_cast %257 : vector<1x80x128xbf16> to vector<80x128xbf16>
    %cst_244 = arith.constant dense<0.000000e+00> : vector<1x128xf32>
    %259 = tpu.matmul %256, %258, %cst_244 {dimension_numbers = #tpu.dot_dimension_numbers<[1], [0], [0], [1], [0, 0, 1, 1], [], []>} : vector<1x80xbf16>, vector<80x128xbf16>, vector<1x128xf32> -> vector<1x128xf32>
    %260 = arith.addf %255, %259 : vector<1x128xf32>
    %261 = vector.extract_strided_slice %244 {offsets = [3, 0], sizes = [1, 80], strides = [1, 1]} : vector<5x80xbf16> to vector<1x80xbf16>
    %c3_245 = arith.constant 3 : index
    %c0_246 = arith.constant 0 : index
    %c0_247 = arith.constant 0 : index
    %262 = vector.load %arg6[%c3_245, %c0_246, %c0_247] : memref<5x80x128xbf16, #tpu.memory_space<vmem>>, vector<1x80x128xbf16>
    %263 = vector.shape_cast %262 : vector<1x80x128xbf16> to vector<80x128xbf16>
    %cst_248 = arith.constant dense<0.000000e+00> : vector<1x128xf32>
    %264 = tpu.matmul %261, %263, %cst_248 {dimension_numbers = #tpu.dot_dimension_numbers<[1], [0], [0], [1], [0, 0, 1, 1], [], []>} : vector<1x80xbf16>, vector<80x128xbf16>, vector<1x128xf32> -> vector<1x128xf32>
    %265 = arith.addf %260, %264 : vector<1x128xf32>
    %266 = vector.extract_strided_slice %244 {offsets = [4, 0], sizes = [1, 80], strides = [1, 1]} : vector<5x80xbf16> to vector<1x80xbf16>
    %c4_249 = arith.constant 4 : index
    %c0_250 = arith.constant 0 : index
    %c0_251 = arith.constant 0 : index
    %267 = vector.load %arg6[%c4_249, %c0_250, %c0_251] : memref<5x80x128xbf16, #tpu.memory_space<vmem>>, vector<1x80x128xbf16>
    %268 = vector.shape_cast %267 : vector<1x80x128xbf16> to vector<80x128xbf16>
    %cst_252 = arith.constant dense<0.000000e+00> : vector<1x128xf32>
    %269 = tpu.matmul %266, %268, %cst_252 {dimension_numbers = #tpu.dot_dimension_numbers<[1], [0], [0], [1], [0, 0, 1, 1], [], []>} : vector<1x80xbf16>, vector<80x128xbf16>, vector<1x128xf32> -> vector<1x128xf32>
    %270 = arith.addf %265, %269 : vector<1x128xf32>
    %c0_253 = arith.constant 0 : index
    %c0_254 = arith.constant 0 : index
    %271 = vector.load %arg7[%c0_253, %c0_254] : memref<1x128xf32, #tpu.memory_space<vmem>>, vector<1x128xf32>
    %272 = arith.addf %270, %271 : vector<1x128xf32>
    %cst_255 = arith.constant 0.000000e+00 : f32
    %273 = vector.broadcast %cst_255 : f32 to vector<1x128xf32>
    %274 = arith.maximumf %272, %273 : vector<1x128xf32>
    %275 = arith.truncf %274 : vector<1x128xf32> to vector<1x128xbf16>
    %c0_256 = arith.constant 0 : index
    %c0_257 = arith.constant 0 : index
    %276 = vector.load %arg8[%c0_256, %c0_257] : memref<128x128xbf16, #tpu.memory_space<vmem>>, vector<128x128xbf16>
    %cst_258 = arith.constant dense<0.000000e+00> : vector<1x128xf32>
    %277 = tpu.matmul %275, %276, %cst_258 {dimension_numbers = #tpu.dot_dimension_numbers<[1], [0], [0], [1], [0, 0, 1, 1], [], []>} : vector<1x128xbf16>, vector<128x128xbf16>, vector<1x128xf32> -> vector<1x128xf32>
    %c0_259 = arith.constant 0 : index
    %c0_260 = arith.constant 0 : index
    %278 = vector.load %arg9[%c0_259, %c0_260] : memref<1x128xf32, #tpu.memory_space<vmem>>, vector<1x128xf32>
    %279 = arith.addf %277, %278 : vector<1x128xf32>
    %cst_261 = arith.constant 0.000000e+00 : f32
    %280 = vector.broadcast %cst_261 : f32 to vector<1x128xf32>
    %281 = arith.maximumf %279, %280 : vector<1x128xf32>
    %282 = arith.truncf %281 : vector<1x128xf32> to vector<1x128xbf16>
    %c0_262 = arith.constant 0 : index
    %c0_263 = arith.constant 0 : index
    %283 = vector.load %arg10[%c0_262, %c0_263] : memref<128x128xbf16, #tpu.memory_space<vmem>>, vector<128x128xbf16>
    %cst_264 = arith.constant dense<0.000000e+00> : vector<1x128xf32>
    %284 = tpu.matmul %282, %283, %cst_264 {dimension_numbers = #tpu.dot_dimension_numbers<[1], [0], [0], [1], [0, 0, 1, 1], [], []>} : vector<1x128xbf16>, vector<128x128xbf16>, vector<1x128xf32> -> vector<1x128xf32>
    %c0_265 = arith.constant 0 : index
    %c0_266 = arith.constant 0 : index
    %285 = vector.load %arg11[%c0_265, %c0_266] : memref<1x128xf32, #tpu.memory_space<vmem>>, vector<1x128xf32>
    %286 = arith.addf %284, %285 : vector<1x128xf32>
    %c0_267 = arith.constant 0 : index
    %c0_268 = arith.constant 0 : index
    %c0_269 = arith.constant 0 : index
    %287 = vector.load %arg12[%c0_267, %c0_268, %c0_269] : memref<1x1x128xf32, #tpu.memory_space<vmem>>, vector<1x1x128xf32>
    %288 = vector.shape_cast %287 : vector<1x1x128xf32> to vector<1x128xf32>
    %289 = vector.shape_cast %286 : vector<1x128xf32> to vector<1x1x128xf32>
    tpu.vector_store %arg12[%c0_267, %c0_268, %c0_269], %289 {strides = array<i32>} : memref<1x1x128xf32, #tpu.memory_space<vmem>>, vector<1x1x128xf32>,
    return
  }
  func.func @transform_0(%arg0: i32) -> (i32, i32, i32, i32) {
    %c0_i32 = arith.constant 0 : i32
    %c0_i32_0 = arith.constant 0 : i32
    %c0_i32_1 = arith.constant 0 : i32
    %c0_i32_2 = arith.constant 0 : i32
    return %arg0, %c0_i32, %c0_i32_0, %c0_i32_1 : i32, i32, i32, i32
  }
  func.func @transform_1(%arg0: i32) -> (i32, i32, i32, i32) {
    %c0_i32 = arith.constant 0 : i32
    %c0_i32_0 = arith.constant 0 : i32
    %c0_i32_1 = arith.constant 0 : i32
    %c0_i32_2 = arith.constant 0 : i32
    %c0_i32_3 = arith.constant 0 : i32
    return %c0_i32, %c0_i32_0, %c0_i32_1, %c0_i32_2 : i32, i32, i32, i32
  }
  func.func @transform_2(%arg0: i32) -> (i32, i32) {
    %c0_i32 = arith.constant 0 : i32
    %c0_i32_0 = arith.constant 0 : i32
    %c0_i32_1 = arith.constant 0 : i32
    return %c0_i32, %c0_i32_0 : i32, i32
  }
  func.func @transform_3(%arg0: i32) -> (i32, i32, i32, i32) {
    %c0_i32 = arith.constant 0 : i32
    %c0_i32_0 = arith.constant 0 : i32
    %c0_i32_1 = arith.constant 0 : i32
    %c0_i32_2 = arith.constant 0 : i32
    %c0_i32_3 = arith.constant 0 : i32
    return %c0_i32, %c0_i32_0, %c0_i32_1, %c0_i32_2 : i32, i32, i32, i32
  }
  func.func @transform_4(%arg0: i32) -> (i32, i32) {
    %c0_i32 = arith.constant 0 : i32
    %c0_i32_0 = arith.constant 0 : i32
    %c0_i32_1 = arith.constant 0 : i32
    return %c0_i32, %c0_i32_0 : i32, i32
  }
  func.func @transform_5(%arg0: i32) -> (i32, i32, i32) {
    %c0_i32 = arith.constant 0 : i32
    %c0_i32_0 = arith.constant 0 : i32
    %c0_i32_1 = arith.constant 0 : i32
    %c0_i32_2 = arith.constant 0 : i32
    return %c0_i32, %c0_i32_0, %c0_i32_1 : i32, i32, i32
  }
  func.func @transform_6(%arg0: i32) -> (i32, i32) {
    %c0_i32 = arith.constant 0 : i32
    %c0_i32_0 = arith.constant 0 : i32
    %c0_i32_1 = arith.constant 0 : i32
    return %c0_i32, %c0_i32_0 : i32, i32
  }
  func.func @transform_7(%arg0: i32) -> (i32, i32) {
    %c0_i32 = arith.constant 0 : i32
    %c0_i32_0 = arith.constant 0 : i32
    %c0_i32_1 = arith.constant 0 : i32
    return %c0_i32, %c0_i32_0 : i32, i32
  }
  func.func @transform_8(%arg0: i32) -> (i32, i32) {
    %c0_i32 = arith.constant 0 : i32
    %c0_i32_0 = arith.constant 0 : i32
    %c0_i32_1 = arith.constant 0 : i32
    return %c0_i32, %c0_i32_0 : i32, i32
  }
  func.func @transform_9(%arg0: i32) -> (i32, i32) {
    %c0_i32 = arith.constant 0 : i32
    %c0_i32_0 = arith.constant 0 : i32
    %c0_i32_1 = arith.constant 0 : i32
    return %c0_i32, %c0_i32_0 : i32, i32
  }
  func.func @transform_10(%arg0: i32) -> (i32, i32) {
    %c0_i32 = arith.constant 0 : i32
    %c0_i32_0 = arith.constant 0 : i32
    %c0_i32_1 = arith.constant 0 : i32
    return %c0_i32, %c0_i32_0 : i32, i32
  }
  func.func @transform_11(%arg0: i32) -> (i32, i32, i32) {
    %c0_i32 = arith.constant 0 : i32
    %c0_i32_0 = arith.constant 0 : i32
    %c0_i32_1 = arith.constant 0 : i32
    return %arg0, %c0_i32, %c0_i32_0 : i32, i32, i32
  }
}

</mosaic_0001>

<bundles_post_ra>
// kernel: convnet_forward.1
= control target key start
LH: loop header
LB: loop body
LE: loop exit
PB: predicated region body
PF: predicated region fallthrough
CT: control target
= control target key end

     0   :  { %s7385_s0 = inlined_call_operand.vmem [shape: f32[2,2,16,96], index: 0, kind: input, shape index: {}]   ;;  %s7386_s1 = inlined_call_operand.vmem [shape: bf16[2,5,96,84], index: 1, kind: input, shape index: {}]   ;;  %s7387_s2 = inlined_call_operand.vmem [shape: f32[1,84], index: 2, kind: input, shape index: {}]   ;;  %s7388_s3 = inlined_call_operand.vmem [shape: bf16[2,5,84,80], index: 3, kind: input, shape index: {}]   ;;  %s7389_s4 = inlined_call_operand.vmem [shape: f32[1,80], index: 4, kind: input, shape index: {}]   ;;  %s7390_s5 = inlined_call_operand.vmem [shape: bf16[5,80,128], index: 5, kind: input, shape index: {}]   ;;  %s7391_s6 = inlined_call_operand.vmem [shape: f32[1,128], index: 6, kind: input, shape index: {}]   ;;  %s7392_s7 = inlined_call_operand.vmem [shape: bf16[128,128], index: 7, kind: input, shape index: {}]   ;;  %s7393_s8 = inlined_call_operand.vmem [shape: f32[1,128], index: 8, kind: input, shape index: {}]   ;;  %s7394_s9 = inlined_call_operand.vmem [shape: bf16[128,128], index: 9, kind: input, shape index: {}]   ;;  %s7395_s10 = inlined_call_operand.vmem [shape: f32[1,128], index: 10, kind: input, shape index: {}]   ;;  %s7396_s11 = inlined_call_operand.hbm [shape: f32[2,1,128], index: 11, kind: output, shape index: {}]  }
   0x1   :  { %7399 = sst [smem:[#allocation7_spill]] %s7385_s0 }
   0x2   :  { %16 = vsyncpa [#allocation3], 0 }
   0x3   :  { %18 = vsyncpa [#allocation3 + $0x1], 0  ;;  %s5750_s17 = smov 0   ;;  %s5752_s18 = smov 0  }
   0x4   :  { %s5754_s19 = smov 0   ;;  %s5756_s20 = smov 0  }
   0x5 LB: > { %s5771_s21 = sadd.s32 4294967295, %s5685_s20   ;;  %s3868_s22 = sadd.s32 4294967294, %s5685_s20   ;;  %s5685_s20 = sphi %s5756_s20, %s7410_s20   ;;  %s5681_s19 = sphi %s5754_s19, %s7409_s19   ;;  %s5677_s18 = sphi %s5752_s18, %s7408_s18   ;;  %s5673_s17 = sphi %s5750_s17, %s7407_s17  }
   0x6   : > { %s5775_s23 = sadd.s32 1, %s5685_s20   ;;  %s267_s24 = sadd.s32 1, %s5681_s19 }
   0x7   : > { %s264_s25 = ssub.s32 %s5685_s20, %s5775_s23  ;;  %p277_p0 = scmp.ne.s32.totalorder %s5681_s19, %s5677_s18 }
   0x8   : > { %p265_p1 = scmp.eq.s32.totalorder %s264_s25, 0  ;;  %p278_p2 = scmp.eq.s32.totalorder %s5771_s21, 1 }
   0x9   : > { %p283_p3 = scmp.ne.s32.totalorder %s5677_s18, %s5673_s17  ;;  %p284_p4 = scmp.eq.s32.totalorder %s3868_s22, 1 }
   0xa   : > { %s5786_s26 = scalar_select %p265_p1, %s5681_s19, %s267_s24  }
   0xb   : > { %p5788_p5 = por %p278_p2, %p277_p0  ;;  %p5792_p6 = por %p284_p4, %p283_p3 }
   0xc   : > { %p3871_p7 = scmp.ge.s32.totalorder %s5685_s20, 1  ;;  %p340_p8 = scmp.lt.s32.totalorder %s5685_s20, 3 }
   0xe   : > { %p341_p9 = pnand %p3871_p7, %p340_p8 }
  0x10   : > { %344 = sbr.rel (%p341_p9) target bundleno = 1550 (0x60e), region = 64 }
  0x15   : > { %v5458_v0 = vld [vmem:[%s7386_s1 + $0x58] sm:$0xff]   ;;  %v5687_v1 = vmov 0.0   ;;  %v5459_v2 = vld [vmem:[%s7386_s1 + $0x28] sm:$0xff]   ;;  %v5460_v3 = vld [vmem:[%s7386_s1 + $0x50] sm:$0xff]   ;;  %vm5688_vm0 = vmmov 0   ;;  %p379_p10 = scmp.lt.s32.totalorder %s5771_s21, 1 }
  0x16   : > { %4667 = vmatprep.subr.bf16.mxu0 %v5687_v1  ;;  %4683 = vmatprep.subr.bf16.mxu1 %v5687_v1  ;;  %v5461_v4 = vld [vmem:[%s7386_s1 + $0x20] sm:$0xff]   ;;  %v5462_v5 = vld [vmem:[%s7386_s1 + $0x48] sm:$0xff]   ;;  %v5463_v6 = vld [vmem:[%s7386_s1 + $0x18] sm:$0xff]   ;;  %s7402_s0 = sld [smem:[#allocation7_spill]]  ;;  %vm465_vm1 = vcmask 785408   ;;  %vm1785_vm2 = vcmask 1041408  }
  0x17   : > { %4668 = vmatpush3.bf16.msra.mxu0 %v5458_v0  ;;  %4679 = vmatprep.mubr.msk.bf16.mxu0 %vm5688_vm0, %v5687_v1  ;;  %s380_s29 = scalar_select %p379_p10, %s5771_s21, 1  ;;  %v5831_v7 = vld [vmem:[%s7386_s1 + $0x40] sm:$0xff]   ;;  %v5837_v8 = vld [vmem:[%s7386_s1 + $0x10] sm:$0xff]   ;;  %v5849_v9 = vld [vmem:[%s7386_s1 + $0x38] sm:$0xff]   ;;  %vm1783_vm3 = vcmask 1040384   ;;  %vm1787_vm4 = vcmask 1042432  }
  0x18   : > { %4684 = vmatpush3.bf16.msra.mxu1 %v5459_v2  ;;  %4669 = vmatprep.subr.bf16.mxu0 %v5687_v1  ;;  %v5856_v10 = vld [vmem:[%s7386_s1 + $0x8] sm:$0xff]   ;;  %v5862_v11 = vld [vmem:[%s7386_s1 + $0x30] sm:$0xff]   ;;  %v5868_v13 = vld [vmem:[%s7386_s1] sm:$0xff]   ;;  %vm1789_vm5 = vcmask 1043456   ;;  %vm1887_vm6 = vcmask 687104   ;;  %vm3208_vm7 = vcmask 654336  }
  0x19   : > { %4685 = vmatprep.subr.bf16.mxu1 %v5687_v1  ;;  %4695 = vmatprep.mubr.msk.bf16.mxu1 %vm5688_vm0, %v5687_v1  ;;  %s4338_s15 = sshll.u32 %s380_s29, 5  ;;  %v5885_v19 = vld [vmem:[%s7386_s1 + $0x88] sm:$0xff]   ;;  %v5892_v20 = vld [vmem:[%s7386_s1 + $0xb8] sm:$0xff]   ;;  %v5903_v21 = vld [vmem:[%s7386_s1 + $0x80] sm:$0xff]   ;;  %s4335_s12 = sshll.u32 %s5771_s21, 4 }
  0x1a   : > { %v5910_v22 = vld [vmem:[%s7386_s1 + $0xb0] sm:$0xff]   ;;  %v5921_v23 = vld [vmem:[%s7386_s1 + $0x78] sm:$0xff]   ;;  %v5928_v24 = vld [vmem:[%s7386_s1 + $0xa8] sm:$0xff]   ;;  %s7344_s22 = scalar_lea.hbm %s7396_s11, %s4335_s12  ;;  %s5689_s21 = smov [#allocation2]  }
  0x1b   : > { %4670 = vmatpush3.bf16.msra.mxu0 %v5460_v3  ;;  %v5935_v25 = vld [vmem:[%s7386_s1 + $0x70] sm:$0xff]   ;;  %v5942_v26 = vld [vmem:[%s7386_s1 + $0xa0] sm:$0xff]   ;;  %v5949_v27 = vld [vmem:[%s7386_s1 + $0x68] sm:$0xff]   ;;  %s5629_s29 = sshll.u32 %s5689_s21, 4  ;;  %s5630_s29 = int_to_ptr.vmem [resolvable:$false] %s5629_s29 }
  0x1c   : > { %4686 = vmatpush3.bf16.msra.mxu1 %v5461_v4  ;;  %4671 = vmatprep.subr.bf16.mxu0 %v5687_v1  ;;  %s5843_s30 = scalar_lea.vmem %s7402_s0, %s4338_s15  ;;  %v5956_v28 = vld [vmem:[%s7386_s1 + $0x98] sm:$0xff]   ;;  %v5962_v29 = vld [vmem:[%s7386_s1 + $0x60] sm:$0xff]   ;;  %v5968_v31 = vld [vmem:[%s7386_s1 + $0x90] sm:$0xff]   ;;  %s5631_s15 = scalar_lea.vmem %s5630_s29, 32 }
  0x1d   : > { %4687 = vmatprep.subr.bf16.mxu1 %v5687_v1  ;;  %v3874_v12 = vld [vmem:[%s5843_s30 + $0x10] sm:$0xff]  ;;  %v3875_v14 = vld [vmem:[%s5843_s30 + $0x18] sm:$0x3f]  ;;  %v385_v15 = vld [vmem:[%s5843_s30] sm:$0xff] }
  0x1e   : > { %v386_v16 = vld [vmem:[%s5843_s30 + $0x8] sm:$0x3f]  ;;  %v5877_v17 = vpack.c.bf16 %v3875_v14, %v3874_v12  ;;  %v3876_v33 = vld [vmem:[%s5843_s30 + $0x11] sm:$0xff]  ;;  %v3877_v34 = vld [vmem:[%s5843_s30 + $0x19] sm:$0x3f] }
  0x1f   : > { %4672 = vmatpush3.bf16.msra.mxu0 %v5462_v5  ;;  %v5880_v18 = vpack.c.bf16 %v386_v16, %v385_v15  ;;  %v392_v30 = vld [vmem:[%s5843_s30 + $0x1] sm:$0xff]  ;;  %v393_v32 = vld [vmem:[%s5843_s30 + $0x9] sm:$0x3f]  ;;  %v5980_v36 = vpack.c.bf16 %v3877_v34, %v3876_v33  ;;  %v6021_v41 = vld [vmem:[%s7386_s1 + $0xd8] sm:$0xff]  }
  0x20   : > { %4688 = vmatpush3.bf16.msra.mxu1 %v5463_v6  ;;  %4673 = vmatprep.subr.bf16.mxu0 %v5687_v1  ;;  %v5977_v35 = vpack.c.bf16 %v393_v32, %v392_v30  ;;  %v5985_v37 = vld [vmem:[%s7386_s1 + $0xe8] sm:$0xff]   ;;  %v6003_v39 = vld [vmem:[%s7386_s1 + $0xe0] sm:$0xff]   ;;  %v6028_v42 = vld [vmem:[%s7386_s1 + $0x138] sm:$0xff]  }
  0x21   : > { %4689 = vmatprep.subr.bf16.mxu1 %v5687_v1  ;;  %v5992_v38 = vld [vmem:[%s7386_s1 + $0x148] sm:$0xff]   ;;  %v6010_v40 = vld [vmem:[%s7386_s1 + $0x140] sm:$0xff]   ;;  %v6035_v43 = vld [vmem:[%s7386_s1 + $0xd0] sm:$0xff]  }
  0x22   : > { %v6042_v44 = vld [vmem:[%s7386_s1 + $0x130] sm:$0xff]   ;;  %v6049_v45 = vld [vmem:[%s7386_s1 + $0xc8] sm:$0xff]   ;;  %v6062_v47 = vld [vmem:[%s7386_s1 + $0xc0] sm:$0xff]  }
  0x23   : > { %4674 = vmatpush3.bf16.msra.mxu0 %v5831_v7  ;;  %v6056_v46 = vld [vmem:[%s7386_s1 + $0x128] sm:$0xff]   ;;  %v6069_v50 = vld [vmem:[%s7386_s1 + $0x120] sm:$0xff]   ;;  %v6078_v51 = vld [vmem:[%s7386_s1 + $0x118] sm:$0xff]  }
  0x24   : > { %4690 = vmatpush3.bf16.msra.mxu1 %v5837_v8  ;;  %4675 = vmatprep.subr.bf16.mxu0 %v5687_v1  ;;  %v398_v48 = vld [vmem:[%s5843_s30 + $0x2] sm:$0xff]  ;;  %v399_v49 = vld [vmem:[%s5843_s30 + $0xa] sm:$0x3f]  ;;  %v6085_v53 = vld [vmem:[%s7386_s1 + $0x178] sm:$0xff]  }
  0x25   : > { %4691 = vmatprep.subr.bf16.mxu1 %v5687_v1  ;;  %v6080_v52 = vpack.c.bf16 %v399_v49, %v398_v48  ;;  %v6094_v54 = vld [vmem:[%s7386_s1 + $0x110] sm:$0xff]   ;;  %v6112_v56 = vld [vmem:[%s7386_s1 + $0x108] sm:$0xff]   ;;  %v6130_v58 = vld [vmem:[%s7386_s1 + $0x100] sm:$0xff]  }
  0x26   : > { %v6101_v55 = vld [vmem:[%s7386_s1 + $0x170] sm:$0xff]   ;;  %v6119_v57 = vld [vmem:[%s7386_s1 + $0x168] sm:$0xff]   ;;  %v6135_v59 = vld [vmem:[%s7386_s1 + $0x160] sm:$0xff]  }
  0x27   : > { %4676 = vmatpush3.bf16.msra.mxu0 %v5849_v9  ;;  %v6144_v60 = vld [vmem:[%s7386_s1 + $0xf8] sm:$0xff]   ;;  %v6158_v62 = vld [vmem:[%s7386_s1 + $0xf0] sm:$0xff]   ;;  %v6172_v0 = vld [vmem:[%s7386_s1 + $0x1a8] sm:$0xff]  }
  0x28   : > { %4692 = vmatpush3.bf16.msra.mxu1 %v5856_v10  ;;  %4677 = vmatprep.subr.bf16.mxu0 %v5687_v1  ;;  %v6149_v61 = vld [vmem:[%s7386_s1 + $0x158] sm:$0xff]   ;;  %v6163_v63 = vld [vmem:[%s7386_s1 + $0x150] sm:$0xff]   ;;  %v6186_v3 = vld [vmem:[%s7386_s1 + $0x1a0] sm:$0xff]  }
  0x29   : > { %4693 = vmatprep.subr.bf16.mxu1 %v5687_v1  ;;  %v6177_v2 = vld [vmem:[%s7386_s1 + $0x1d8] sm:$0xff]   ;;  %v6193_v4 = vld [vmem:[%s7386_s1 + $0x1d0] sm:$0xff]   ;;  %v6211_v6 = vld [vmem:[%s7386_s1 + $0x1c8] sm:$0xff]  }
  0x2a   : > { %v6204_v5 = vld [vmem:[%s7386_s1 + $0x198] sm:$0xff]   ;;  %v6222_v12 = vld [vmem:[%s7386_s1 + $0x190] sm:$0xff]   ;;  %v6227_v14 = vld [vmem:[%s7386_s1 + $0x1c0] sm:$0xff]  }
  0x2b   : > { %4678 = vmatpush3.bf16.msra.mxu0 %v5862_v11  ;;  %v6236_v15 = vld [vmem:[%s7386_s1 + $0x188] sm:$0xff]   ;;  %v6241_v16 = vld [vmem:[%s7386_s1 + $0x1b8] sm:$0xff]   ;;  %v6255_v30 = vld [vmem:[%s7386_s1 + $0x1b0] sm:$0xff]  }
  0x2c   : > { %4694 = vmatpush3.bf16.msra.mxu1 %v5868_v13  ;;  %4699 = vmatprep.subr.bf16.mxu0 %v5687_v1  ;;  %v5619_v32 = vld [vmem:[%s7386_s1 + $0x58] sm:$0xff]   ;;  %v5620_v33 = vld [vmem:[%s7386_s1 + $0x28] sm:$0xff]   ;;  %v5621_v34 = vld [vmem:[%s7386_s1 + $0x50] sm:$0xff]  }
  0x2d   : > { %4715 = vmatprep.subr.bf16.mxu1 %v5687_v1  ;;  %v5622_v48 = vld [vmem:[%s7386_s1 + $0x20] sm:$0xff]   ;;  %v5623_v49 = vld [vmem:[%s7386_s1 + $0x48] sm:$0xff]  }
  0x2e   : > { %4680 = vmatmul.mubr.msk.bf16.vlgmr.msra.gmra.mxu0 %vm465_vm1, %v5877_v17 }
  0x2f   : > { %4696 = vmatmul.mubr.msk.bf16.vlgmr.msra.gmra.mxu1 %vm465_vm1, %v5880_v18  ;;  %4700 = vmatpush3.bf16.msra.mxu0 %v5885_v19 }
  0x30   : > { %4716 = vmatpush3.bf16.msra.mxu1 %v5892_v20  ;;  %4701 = vmatprep.subr.bf16.mxu0 %v5687_v1 }
  0x31   : > { %4717 = vmatprep.subr.bf16.mxu1 %v5687_v1  ;;  %4711 = vmatprep.mubr.msk.bf16.mxu0 %vm5688_vm0, %v5687_v1 }
  0x32   : > { %4727 = vmatprep.mubr.msk.bf16.mxu1 %vm5688_vm0, %v5687_v1 }
  0x33   : > { %4702 = vmatpush3.bf16.msra.mxu0 %v5903_v21 }
  0x34   : > { %4718 = vmatpush3.bf16.msra.mxu1 %v5910_v22  ;;  %4703 = vmatprep.subr.bf16.mxu0 %v5687_v1 }
  0x35   : > { %4719 = vmatprep.subr.bf16.mxu1 %v5687_v1 }
  0x37   : > { %4704 = vmatpush3.bf16.msra.mxu0 %v5921_v23 }
  0x38   : > { %4720 = vmatpush3.bf16.msra.mxu1 %v5928_v24  ;;  %4705 = vmatprep.subr.bf16.mxu0 %v5687_v1 }
  0x39   : > { %4721 = vmatprep.subr.bf16.mxu1 %v5687_v1 }
  0x3b   : > { %4706 = vmatpush3.bf16.msra.mxu0 %v5935_v25 }
  0x3c   : > { %4722 = vmatpush3.bf16.msra.mxu1 %v5942_v26  ;;  %4707 = vmatprep.subr.bf16.mxu0 %v5687_v1 }
  0x3d   : > { %4723 = vmatprep.subr.bf16.mxu1 %v5687_v1 }
  0x3f   : > { %4708 = vmatpush3.bf16.msra.mxu0 %v5949_v27 }
  0x40   : > { %4724 = vmatpush3.bf16.msra.mxu1 %v5956_v28  ;;  %4709 = vmatprep.subr.bf16.mxu0 %v5687_v1 }
  0x41   : > { %4725 = vmatprep.subr.bf16.mxu1 %v5687_v1 }
  0x43   : > { %4710 = vmatpush3.bf16.msra.mxu0 %v5962_v29 }
  0x44   : > { %4726 = vmatpush3.bf16.msra.mxu1 %v5968_v31  ;;  %4731 = vmatprep.subr.bf16.mxu0 %v5687_v1 }
  0x45   : > { %4747 = vmatprep.subr.bf16.mxu1 %v5687_v1 }
  0x46   : > { %4712 = vmatmul.mubr.msk.bf16.vlgmr.msra.gmra.mxu0 %vm465_vm1, %v5977_v35 }
  0x47   : > { %4728 = vmatmul.mubr.msk.bf16.vlgmr.msra.gmra.mxu1 %vm465_vm1, %v5980_v36  ;;  %4732 = vmatpush3.bf16.msra.mxu0 %v5985_v37 }
  0x48   : > { %4748 = vmatpush3.bf16.msra.mxu1 %v5992_v38  ;;  %4733 = vmatprep.subr.bf16.mxu0 %v5687_v1 }
  0x49   : > { %4749 = vmatprep.subr.bf16.mxu1 %v5687_v1  ;;  %4743 = vmatprep.mubr.msk.bf16.mxu0 %vm5688_vm0, %v5687_v1 }
  0x4a   : > { %4759 = vmatprep.mubr.msk.bf16.mxu1 %vm5688_vm0, %v5687_v1 }
  0x4b   : > { %4734 = vmatpush3.bf16.msra.mxu0 %v6003_v39 }
  0x4c   : > { %4750 = vmatpush3.bf16.msra.mxu1 %v6010_v40  ;;  %4735 = vmatprep.subr.bf16.mxu0 %v5687_v1 }
  0x4d   : > { %4751 = vmatprep.subr.bf16.mxu1 %v5687_v1 }
  0x4f   : > { %4736 = vmatpush3.bf16.msra.mxu0 %v6021_v41 }
  0x50   : > { %4752 = vmatpush3.bf16.msra.mxu1 %v6028_v42  ;;  %4737 = vmatprep.subr.bf16.mxu0 %v5687_v1 }
  0x51   : > { %4753 = vmatprep.subr.bf16.mxu1 %v5687_v1 }
  0x53   : > { %4738 = vmatpush3.bf16.msra.mxu0 %v6035_v43 }
  0x54   : > { %4754 = vmatpush3.bf16.msra.mxu1 %v6042_v44  ;;  %4739 = vmatprep.subr.bf16.mxu0 %v5687_v1 }
  0x55   : > { %4755 = vmatprep.subr.bf16.mxu1 %v5687_v1 }
  0x57   : > { %4740 = vmatpush3.bf16.msra.mxu0 %v6049_v45 }
  0x58   : > { %4756 = vmatpush3.bf16.msra.mxu1 %v6056_v46  ;;  %4741 = vmatprep.subr.bf16.mxu0 %v5687_v1 }
  0x59   : > { %4757 = vmatprep.subr.bf16.mxu1 %v5687_v1 }
  0x5b   : > { %4742 = vmatpush3.bf16.msra.mxu0 %v6062_v47 }
  0x5c   : > { %4758 = vmatpush3.bf16.msra.mxu1 %v6069_v50  ;;  %4763 = vmatprep.subr.bf16.mxu0 %v5687_v1 }
  0x5d   : > { %4779 = vmatprep.subr.bf16.mxu1 %v5687_v1 }
  0x5e   : > { %4744 = vmatmul.mubr.msk.bf16.vlgmr.msra.gmra.mxu0 %vm465_vm1, %v6080_v52 }
  0x5f   : > { %4760 = vmatmul.mubr.msk.bf16.vlgmr.msra.gmra.mxu1 %vm465_vm1, %v5877_v17  ;;  %4764 = vmatpush3.bf16.msra.mxu0 %v6078_v51 }
  0x60   : > { %4780 = vmatpush3.bf16.msra.mxu1 %v6085_v53  ;;  %4765 = vmatprep.subr.bf16.mxu0 %v5687_v1 }
  0x61   : > { %4781 = vmatprep.subr.bf16.mxu1 %v5687_v1  ;;  %4775 = vmatprep.mubr.msk.bf16.mxu0 %vm5688_vm0, %v5687_v1 }
  0x62   : > { %4791 = vmatprep.mubr.msk.bf16.mxu1 %vm5688_vm0, %v5687_v1 }
  0x63   : > { %4766 = vmatpush3.bf16.msra.mxu0 %v6094_v54 }
  0x64   : > { %4782 = vmatpush3.bf16.msra.mxu1 %v6101_v55  ;;  %4767 = vmatprep.subr.bf16.mxu0 %v5687_v1 }
  0x65   : > { %4783 = vmatprep.subr.bf16.mxu1 %v5687_v1 }
  0x67   : > { %4768 = vmatpush3.bf16.msra.mxu0 %v6112_v56 }
  0x68   : > { %4784 = vmatpush3.bf16.msra.mxu1 %v6119_v57  ;;  %4769 = vmatprep.subr.bf16.mxu0 %v5687_v1 }
  0x69   : > { %4785 = vmatprep.subr.bf16.mxu1 %v5687_v1 }
  0x6b   : > { %4770 = vmatpush3.bf16.msra.mxu0 %v6130_v58 }
  0x6c   : > { %4786 = vmatpush3.bf16.msra.mxu1 %v6135_v59  ;;  %4771 = vmatprep.subr.bf16.mxu0 %v5687_v1 }
  0x6d   : > { %4787 = vmatprep.subr.bf16.mxu1 %v5687_v1 }
  0x6f   : > { %4772 = vmatpush3.bf16.msra.mxu0 %v6144_v60 }
  0x70   : > { %4788 = vmatpush3.bf16.msra.mxu1 %v6149_v61  ;;  %4773 = vmatprep.subr.bf16.mxu0 %v5687_v1 }
  0x71   : > { %4789 = vmatprep.subr.bf16.mxu1 %v5687_v1 }
  0x73   : > { %4774 = vmatpush3.bf16.msra.mxu0 %v6158_v62 }
  0x74   : > { %4790 = vmatpush3.bf16.msra.mxu1 %v6163_v63  ;;  %4795 = vmatprep.subr.bf16.mxu0 %v5687_v1 }
  0x75   : > { %4811 = vmatprep.subr.bf16.mxu1 %v5687_v1 }
  0x76   : > { %4776 = vmatmul.mubr.msk.bf16.vlgmr.msra.gmra.mxu0 %vm465_vm1, %v5880_v18  ;;  %v6250_v18 = vld [vmem:[%s7386_s1 + $0x180] sm:$0xff]  }
  0x77   : > { %4792 = vmatmul.mubr.msk.bf16.vlgmr.msra.gmra.mxu1 %vm465_vm1, %v5977_v35  ;;  %4796 = vmatpush3.bf16.msra.mxu0 %v6172_v0 }
  0x78   : > { %4812 = vmatpush3.bf16.msra.mxu1 %v6177_v2  ;;  %4797 = vmatprep.subr.bf16.mxu0 %v5687_v1 }
  0x79   : > { %4813 = vmatprep.subr.bf16.mxu1 %v5687_v1  ;;  %4807 = vmatprep.mubr.msk.bf16.mxu0 %vm5688_vm0, %v5687_v1 }
  0x7a   : > { %4823 = vmatprep.mubr.msk.bf16.mxu1 %vm5688_vm0, %v5687_v1 }
  0x7b   : > { %4798 = vmatpush3.bf16.msra.mxu0 %v6186_v3 }
  0x7c   : > { %4814 = vmatpush3.bf16.msra.mxu1 %v6193_v4  ;;  %4799 = vmatprep.subr.bf16.mxu0 %v5687_v1 }
  0x7d   : > { %4815 = vmatprep.subr.bf16.mxu1 %v5687_v1 }
  0x7f   : > { %4800 = vmatpush3.bf16.msra.mxu0 %v6204_v5 }
  0x80   : > { %4816 = vmatpush3.bf16.msra.mxu1 %v6211_v6  ;;  %4801 = vmatprep.subr.bf16.mxu0 %v5687_v1 }
  0x81   : > { %4817 = vmatprep.subr.bf16.mxu1 %v5687_v1 }
  0x83   : > { %4802 = vmatpush3.bf16.msra.mxu0 %v6222_v12 }
  0x84   : > { %4818 = vmatpush3.bf16.msra.mxu1 %v6227_v14  ;;  %4803 = vmatprep.subr.bf16.mxu0 %v5687_v1 }
  0x85   : > { %4819 = vmatprep.subr.bf16.mxu1 %v5687_v1 }
  0x87   : > { %4804 = vmatpush3.bf16.msra.mxu0 %v6236_v15 }
  0x88   : > { %4820 = vmatpush3.bf16.msra.mxu1 %v6241_v16  ;;  %4805 = vmatprep.subr.bf16.mxu0 %v5687_v1 }
  0x89   : > { %4821 = vmatprep.subr.bf16.mxu1 %v5687_v1 }
  0x8b   : > { %4806 = vmatpush3.bf16.msra.mxu0 %v6250_v18 }
  0x8c   : > { %4822 = vmatpush3.bf16.msra.mxu1 %v6255_v30  ;;  %4827 = vmatprep.subr.bf16.mxu0 %v5687_v1 }
  0x8d   : > { %4843 = vmatprep.subr.bf16.mxu1 %v5687_v1 }
  0x8e   : > { %4808 = vmatmul.mubr.msk.bf16.vlgmr.msra.gmra.mxu0 %vm465_vm1, %v5980_v36 }
  0x8f   : > { %4824 = vmatmul.mubr.msk.bf16.vlgmr.msra.gmra.mxu1 %vm465_vm1, %v6080_v52  ;;  %4828 = vmatpush3.bf16.msra.mxu0 %v5619_v32  ;;  %v5624_v32 = vld [vmem:[%s7386_s1 + $0x18] sm:$0xff]  }
  0x90   : > { %4844 = vmatpush3.bf16.msra.mxu1 %v5620_v33  ;;  %4829 = vmatprep.subr.bf16.mxu0 %v5687_v1  ;;  %v6500_v33 = vld [vmem:[%s7388_s3 + $0x3c] sm:$0xff]  }
  0x91   : > { %4845 = vmatprep.subr.bf16.mxu1 %v5687_v1  ;;  %4839 = vmatprep.mubr.msk.bf16.mxu0 %vm5688_vm0, %v5687_v1 }
  0x92   : > { %4855 = vmatprep.mubr.msk.bf16.mxu1 %vm5688_vm0, %v5687_v1 }
  0x93   : > { %4830 = vmatpush3.bf16.msra.mxu0 %v5621_v34  ;;  %v6505_v34 = vld [vmem:[%s7388_s3 + $0x10] sm:$0xff]  }
  0x94   : > { %4846 = vmatpush3.bf16.msra.mxu1 %v5622_v48  ;;  %4831 = vmatprep.subr.bf16.mxu0 %v5687_v1 }
  0x95   : > { %4847 = vmatprep.subr.bf16.mxu1 %v5687_v1 }
  0x97   : > { %4832 = vmatpush3.bf16.msra.mxu0 %v5623_v49 }
  0x98   : > { %4848 = vmatpush3.bf16.msra.mxu1 %v5624_v32  ;;  %4833 = vmatprep.subr.bf16.mxu0 %v5687_v1 }
  0x99   : > { %4849 = vmatprep.subr.bf16.mxu1 %v5687_v1 }
  0x9b   : > { %4834 = vmatpush3.bf16.msra.mxu0 %v5831_v7  ;;  %v3878_v7 = vld [vmem:[%s5843_s30 + $0x12] sm:$0xff] }
  0x9c   : > { %4850 = vmatpush3.bf16.msra.mxu1 %v5837_v8  ;;  %4835 = vmatprep.subr.bf16.mxu0 %v5687_v1  ;;  %v3879_v8 = vld [vmem:[%s5843_s30 + $0x1a] sm:$0x3f]  ;;  %s377_s30 = sand.u32 1, %s5677_s18  }
  0x9d   : > { %4851 = vmatprep.subr.bf16.mxu1 %v5687_v1  ;;  %s378_s13 = scalar_lea.vmem [#allocation2], %s377_s30  ;;  %s3801_s24 = scalar_lea.sflag [#allocation3], %s377_s30 }
  0x9e   : > { %s3813_s14 = sshll.u32 %s378_s13, 4  ;;  %s7346_s14 = int_to_ptr.vmem [resolvable:$true] %s3813_s14 }
  0x9f   : > { %4836 = vmatpush3.bf16.msra.mxu0 %v5849_v9  ;;  %v6371_v9 = vpack.c.bf16 %v3879_v8, %v3878_v7  ;;  %s5625_s25 = scalar_lea.vmem %s7346_s14, 16  ;;  %p5632_p0 = scmp.lt.s32.totalorder %s7346_s14, %s5630_s29 }
  0xa0   : > { %4852 = vmatpush3.bf16.msra.mxu1 %v5856_v10  ;;  %4837 = vmatprep.subr.bf16.mxu0 %v5687_v1  ;;  %p5626_p11 = scmp.ne.s32.totalorder %s7346_s14, %s5625_s25  ;;  %p5633_p1 = scmp.lt.s32.totalorder %s5631_s15, %s5625_s25 }
  0xa1   : > { %4853 = vmatprep.subr.bf16.mxu1 %v5687_v1 }
  0xa2   : > { %p5627_p12 = pnand %p5626_p11, %p5788_p5  ;;  %p5634_p2 = por %p5633_p1, %p5632_p0 }
  0xa3   : > { %4838 = vmatpush3.bf16.msra.mxu0 %v5862_v11 }
  0xa4   : > { %4854 = vmatpush3.bf16.msra.mxu1 %v5868_v13  ;;  %4859 = vmatprep.subr.bf16.mxu0 %v5687_v1  ;;  %p5628_p13 = pneg %p5627_p12 }
  0xa5   : > { %4875 = vmatprep.subr.bf16.mxu1 %v5687_v1 }
  0xa6   : > { %4840 = vmatmul.mubr.msk.bf16.vlgmr.msra.gmra.mxu0 %vm465_vm1, %v5977_v35  ;;  %p5635_p3 = pnand %p5634_p2, %p5628_p13 }
  0xa7   : > { %4856 = vmatmul.mubr.msk.bf16.vlgmr.msra.gmra.mxu1 %vm465_vm1, %v5877_v17  ;;  %4860 = vmatpush3.bf16.msra.mxu0 %v5885_v19 }
  0xa8   : > { %4876 = vmatpush3.bf16.msra.mxu1 %v5892_v20  ;;  %4861 = vmatprep.subr.bf16.mxu0 %v5687_v1 }
  0xa9   : > { %4877 = vmatprep.subr.bf16.mxu1 %v5687_v1  ;;  %4871 = vmatprep.mubr.msk.bf16.mxu0 %vm5688_vm0, %v5687_v1 }
  0xaa   : > { %4887 = vmatprep.mubr.msk.bf16.mxu1 %vm5688_vm0, %v5687_v1 }
  0xab   : > { %4862 = vmatpush3.bf16.msra.mxu0 %v5903_v21 }
  0xac   : > { %4878 = vmatpush3.bf16.msra.mxu1 %v5910_v22  ;;  %4863 = vmatprep.subr.bf16.mxu0 %v5687_v1 }
  0xad   : > { %4879 = vmatprep.subr.bf16.mxu1 %v5687_v1 }
  0xaf   : > { %4864 = vmatpush3.bf16.msra.mxu0 %v5921_v23 }
  0xb0   : > { %4880 = vmatpush3.bf16.msra.mxu1 %v5928_v24  ;;  %4865 = vmatprep.subr.bf16.mxu0 %v5687_v1 }
  0xb1   : > { %4881 = vmatprep.subr.bf16.mxu1 %v5687_v1 }
  0xb3   : > { %4866 = vmatpush3.bf16.msra.mxu0 %v5935_v25 }
  0xb4   : > { %4882 = vmatpush3.bf16.msra.mxu1 %v5942_v26  ;;  %4867 = vmatprep.subr.bf16.mxu0 %v5687_v1 }
  0xb5   : > { %4883 = vmatprep.subr.bf16.mxu1 %v5687_v1 }
  0xb7   : > { %4868 = vmatpush3.bf16.msra.mxu0 %v5949_v27 }
  0xb8   : > { %4884 = vmatpush3.bf16.msra.mxu1 %v5956_v28  ;;  %4869 = vmatprep.subr.bf16.mxu0 %v5687_v1 }
  0xb9   : > { %4885 = vmatprep.subr.bf16.mxu1 %v5687_v1 }
  0xbb   : > { %4870 = vmatpush3.bf16.msra.mxu0 %v5962_v29 }
  0xbc   : > { %4886 = vmatpush3.bf16.msra.mxu1 %v5968_v31  ;;  %4891 = vmatprep.subr.bf16.mxu0 %v5687_v1 }
  0xbd   : > { %4907 = vmatprep.subr.bf16.mxu1 %v5687_v1 }
  0xbe   : > { %4872 = vmatmul.mubr.msk.bf16.vlgmr.msra.gmra.mxu0 %vm465_vm1, %v5980_v36 }
  0xbf   : > { %4888 = vmatmul.mubr.msk.bf16.vlgmr.msra.gmra.mxu1 %vm465_vm1, %v6080_v52  ;;  %4892 = vmatpush3.bf16.msra.mxu0 %v5985_v37 }
  0xc0   : > { %4908 = vmatpush3.bf16.msra.mxu1 %v5992_v38  ;;  %4893 = vmatprep.subr.bf16.mxu0 %v5687_v1 }
  0xc1   : > { %4909 = vmatprep.subr.bf16.mxu1 %v5687_v1  ;;  %4903 = vmatprep.mubr.msk.bf16.mxu0 %vm5688_vm0, %v5687_v1 }
  0xc2   : > { %4919 = vmatprep.mubr.msk.bf16.mxu1 %vm5688_vm0, %v5687_v1 }
  0xc3   : > { %4894 = vmatpush3.bf16.msra.mxu0 %v6003_v39 }
  0xc4   : > { %4910 = vmatpush3.bf16.msra.mxu1 %v6010_v40  ;;  %4895 = vmatprep.subr.bf16.mxu0 %v5687_v1 }
  0xc5   : > { %4911 = vmatprep.subr.bf16.mxu1 %v5687_v1 }
  0xc7   : > { %4896 = vmatpush3.bf16.msra.mxu0 %v6021_v41 }
  0xc8   : > { %4912 = vmatpush3.bf16.msra.mxu1 %v6028_v42  ;;  %4897 = vmatprep.subr.bf16.mxu0 %v5687_v1 }
  0xc9   : > { %4913 = vmatprep.subr.bf16.mxu1 %v5687_v1 }
  0xcb   : > { %4898 = vmatpush3.bf16.msra.mxu0 %v6035_v43 }
  0xcc   : > { %4914 = vmatpush3.bf16.msra.mxu1 %v6042_v44  ;;  %4899 = vmatprep.subr.bf16.mxu0 %v5687_v1 }
  0xcd   : > { %4915 = vmatprep.subr.bf16.mxu1 %v5687_v1 }
  0xcf   : > { %4900 = vmatpush3.bf16.msra.mxu0 %v6049_v45 }
  0xd0   : > { %4916 = vmatpush3.bf16.msra.mxu1 %v6056_v46  ;;  %4901 = vmatprep.subr.bf16.mxu0 %v5687_v1 }
  0xd1   : > { %4917 = vmatprep.subr.bf16.mxu1 %v5687_v1 }
  0xd3   : > { %4902 = vmatpush3.bf16.msra.mxu0 %v6062_v47 }
  0xd4   : > { %4918 = vmatpush3.bf16.msra.mxu1 %v6069_v50  ;;  %4923 = vmatprep.subr.bf16.mxu0 %v5687_v1 }
  0xd5   : > { %4939 = vmatprep.subr.bf16.mxu1 %v5687_v1 }
  0xd6   : > { %4904 = vmatmul.mubr.msk.bf16.vlgmr.msra.gmra.mxu0 %vm465_vm1, %v6371_v9 }
  0xd7   : > { %4920 = vmatmul.mubr.msk.bf16.vlgmr.msra.gmra.mxu1 %vm465_vm1, %v5977_v35  ;;  %4924 = vmatpush3.bf16.msra.mxu0 %v6078_v51 }
  0xd8   : > { %4940 = vmatpush3.bf16.msra.mxu1 %v6085_v53  ;;  %4925 = vmatprep.subr.bf16.mxu0 %v5687_v1  ;;  %v5518_v53 = vld [vmem:[%s7388_s3 + $0x54] ss:$0 sps:$4 sm:$0x33]  }
  0xd9   : > { %4941 = vmatprep.subr.bf16.mxu1 %v5687_v1  ;;  %4935 = vmatprep.mubr.msk.bf16.mxu0 %vm5688_vm0, %v5687_v1 }
  0xda   : > { %4951 = vmatprep.mubr.msk.bf16.mxu1 %vm5688_vm0, %v5687_v1 }
  0xdb   : > { %4926 = vmatpush3.bf16.msra.mxu0 %v6094_v54 }
  0xdc   : > { %4942 = vmatpush3.bf16.msra.mxu1 %v6101_v55  ;;  %4927 = vmatprep.subr.bf16.mxu0 %v5687_v1  ;;  %v5519_v55 = vld [vmem:[%s7388_s3 + $0x28] ss:$0 sps:$4 sm:$0x33]  }
  0xdd   : > { %4943 = vmatprep.subr.bf16.mxu1 %v5687_v1 }
  0xdf   : > { %4928 = vmatpush3.bf16.msra.mxu0 %v6112_v56 }
  0xe0   : > { %4944 = vmatpush3.bf16.msra.mxu1 %v6119_v57  ;;  %4929 = vmatprep.subr.bf16.mxu0 %v5687_v1 }
  0xe1   : > { %4945 = vmatprep.subr.bf16.mxu1 %v5687_v1 }
  0xe3   : > { %4930 = vmatpush3.bf16.msra.mxu0 %v6130_v58  ;;  %v6460_v58 = vsel %vm1785_vm2, %v5518_v53, 0 }
  0xe4   : > { %4946 = vmatpush3.bf16.msra.mxu1 %v6135_v59  ;;  %4931 = vmatprep.subr.bf16.mxu0 %v5687_v1 }
  0xe5   : > { %4947 = vmatprep.subr.bf16.mxu1 %v5687_v1 }
  0xe7   : > { %4932 = vmatpush3.bf16.msra.mxu0 %v6144_v60  ;;  %v6464_v60 = vsel %vm1785_vm2, %v5519_v55, 0 }
  0xe8   : > { %4948 = vmatpush3.bf16.msra.mxu1 %v6149_v61  ;;  %4933 = vmatprep.subr.bf16.mxu0 %v5687_v1 }
  0xe9   : > { %4949 = vmatprep.subr.bf16.mxu1 %v5687_v1 }
  0xeb   : > { %4934 = vmatpush3.bf16.msra.mxu0 %v6158_v62 }
  0xec   : > { %4950 = vmatpush3.bf16.msra.mxu1 %v6163_v63  ;;  %4955 = vmatprep.subr.bf16.mxu0 %v5687_v1 }
  0xed   : > { %4971 = vmatprep.subr.bf16.mxu1 %v5687_v1 }
  0xee   : > { %v503_v10 = vpop.f32.mrf.mxu0  ;;  %4936 = vmatmul.mubr.msk.bf16.vlgmr.msra.gmra.mxu0 %vm465_vm1, %v5877_v17 }
  0xef   : > { %v583_v11 = vpop.f32.mrf.mxu1  ;;  %4952 = vmatmul.mubr.msk.bf16.vlgmr.msra.gmra.mxu1 %vm465_vm1, %v5980_v36  ;;  %4956 = vmatpush3.bf16.msra.mxu0 %v6172_v0 }
  0xf0   : > { %v584_v13 = vadd.f32 %v583_v11, %v503_v10  ;;  %4972 = vmatpush3.bf16.msra.mxu1 %v6177_v2  ;;  %v4681_v19 = vpop.f32.mrf.mxu0  ;;  %4957 = vmatprep.subr.bf16.mxu0 %v5687_v1  ;;  %v6518_v11 = vld [vmem:[%s7388_s3 + $0x34] sm:$0xff]  }
  0xf1   : > { %v4697_v20 = vpop.f32.mrf.mxu1  ;;  %4973 = vmatprep.subr.bf16.mxu1 %v5687_v1  ;;  %4967 = vmatprep.mubr.msk.bf16.mxu0 %vm5688_vm0, %v5687_v1 }
  0xf2   : > { %v506_v21 = vpop.f32.mrf.mxu0  ;;  %4983 = vmatprep.mubr.msk.bf16.mxu1 %vm5688_vm0, %v5687_v1 }
  0xf3   : > { %v586_v17 = vpop.f32.mrf.mxu1  ;;  %4958 = vmatpush3.bf16.msra.mxu0 %v6186_v3 }
  0xf4   : > { %v587_v22 = vadd.f32 %v586_v17, %v506_v21  ;;  %4974 = vmatpush3.bf16.msra.mxu1 %v6193_v4  ;;  %v4682_v23 = vpop.f32.mrf.mxu0  ;;  %4959 = vmatprep.subr.bf16.mxu0 %v5687_v1  ;;  %v6532_v17 = vld [vmem:[%s7388_s3 + $0x2c] sm:$0xff]  }
  0xf5   : > { %v4698_v24 = vpop.f32.mrf.mxu1  ;;  %4975 = vmatprep.subr.bf16.mxu1 %v5687_v1 }
  0xf7   : > { %4960 = vmatpush3.bf16.msra.mxu0 %v6204_v5 }
  0xf8   : > { %4976 = vmatpush3.bf16.msra.mxu1 %v6211_v6  ;;  %4961 = vmatprep.subr.bf16.mxu0 %v5687_v1  ;;  %v6472_v6 = vld [vmem:[%s7388_s3 + $0x4c] sm:$0xff]  }
  0xf9   : > { %4977 = vmatprep.subr.bf16.mxu1 %v5687_v1 }
  0xfb   : > { %4962 = vmatpush3.bf16.msra.mxu0 %v6222_v12  ;;  %v6477_v12 = vld [vmem:[%s7388_s3 + $0x20] sm:$0xff]  }
  0xfc   : > { %4978 = vmatpush3.bf16.msra.mxu1 %v6227_v14  ;;  %4963 = vmatprep.subr.bf16.mxu0 %v5687_v1  ;;  %v6486_v14 = vld [vmem:[%s7388_s3 + $0x44] sm:$0xff]  }
  0xfd   : > { %4979 = vmatprep.subr.bf16.mxu1 %v5687_v1 }
  0xff   : > { %4964 = vmatpush3.bf16.msra.mxu0 %v6236_v15  ;;  %v6491_v15 = vld [vmem:[%s7388_s3 + $0x18] sm:$0xff]  }
 0x100   : > { %4980 = vmatpush3.bf16.msra.mxu1 %v6241_v16  ;;  %4965 = vmatprep.subr.bf16.mxu0 %v5687_v1 }
 0x101   : > { %4981 = vmatprep.subr.bf16.mxu1 %v5687_v1 }
 0x103   : > { %4966 = vmatpush3.bf16.msra.mxu0 %v6250_v18 }
 0x104   : > { %4982 = vmatpush3.bf16.msra.mxu1 %v6255_v30  ;;  %4987 = vmatprep.subr.bf16.mxu0 %v5687_v1 }
 0x105   : > { %5003 = vmatprep.subr.bf16.mxu1 %v5687_v1 }
 0x106   : > { %v676_v25 = vpop.f32.mrf.mxu0  ;;  %4968 = vmatmul.mubr.msk.bf16.vlgmr.msra.gmra.mxu0 %vm465_vm1, %v6080_v52 }
 0x107   : > { %v683_v26 = vadd.f32 %v676_v25, %v584_v13  ;;  %v771_v27 = vpop.f32.mrf.mxu1  ;;  %4984 = vmatmul.mubr.msk.bf16.vlgmr.msra.gmra.mxu1 %vm465_vm1, %v6371_v9  ;;  %4999 = vmatprep.mubr.msk.bf16.mxu0 %vm5688_vm0, %v5687_v1  ;;  %v6523_v13 = vld [vmem:[%s7388_s3 + $0x8] sm:$0xff]  }
 0x108   : > { %v4713_v28 = vpop.f32.mrf.mxu0  ;;  %5015 = vmatprep.mubr.msk.bf16.mxu1 %vm5688_vm0, %v5687_v1  ;;  %4988 = vmatpush3.bf16.msra.mxu0 %v6460_v58 }
 0x109   : > { %v778_v29 = vadd.f32 %v771_v27, %v683_v26  ;;  %v4729_v31 = vpop.f32.mrf.mxu1  ;;  %5004 = vmatpush3.bf16.msra.mxu1 %v6464_v60  ;;  %4989 = vmatprep.subr.bf16.mxu0 %v5687_v1 }
 0x10a   : > { %v679_v35 = vpop.f32.mrf.mxu0  ;;  %5005 = vmatprep.subr.bf16.mxu1 %v5687_v1 }
 0x10b   : > { %v684_v36 = vadd.f32 %v679_v35, %v587_v22  ;;  %v774_v37 = vpop.f32.mrf.mxu1  ;;  %v6537_v22 = vld [vmem:[%s7388_s3] sm:$0xff]  }
 0x10c   : > { %v4714_v38 = vpop.f32.mrf.mxu0  ;;  %4990 = vmatpush3.bf16.msra.mxu0 %v6472_v6 }
 0x10d   : > { %v779_v39 = vadd.f32 %v774_v37, %v684_v36  ;;  %v4730_v40 = vpop.f32.mrf.mxu1  ;;  %5006 = vmatpush3.bf16.msra.mxu1 %v6477_v12  ;;  %4991 = vmatprep.subr.bf16.mxu0 %v5687_v1 }
 0x10e   : > { %5007 = vmatprep.subr.bf16.mxu1 %v5687_v1 }
 0x110   : > { %4992 = vmatpush3.bf16.msra.mxu0 %v6486_v14 }
 0x111   : > { %5008 = vmatpush3.bf16.msra.mxu1 %v6491_v15  ;;  %4993 = vmatprep.subr.bf16.mxu0 %v5687_v1 }
 0x112   : > { %5009 = vmatprep.subr.bf16.mxu1 %v5687_v1 }
 0x114   : > { %4994 = vmatpush3.bf16.msra.mxu0 %v6500_v33 }
 0x115   : > { %5010 = vmatpush3.bf16.msra.mxu1 %v6505_v34  ;;  %4995 = vmatprep.subr.bf16.mxu0 %v5687_v1 }
 0x116   : > { %5011 = vmatprep.subr.bf16.mxu1 %v5687_v1 }
 0x118   : > { %4996 = vmatpush3.bf16.msra.mxu0 %v6518_v11 }
 0x119   : > { %5012 = vmatpush3.bf16.msra.mxu1 %v6523_v13  ;;  %4997 = vmatprep.subr.bf16.mxu0 %v5687_v1 }
 0x11a   : > { %5013 = vmatprep.subr.bf16.mxu1 %v5687_v1 }
 0x11c   : > { %4998 = vmatpush3.bf16.msra.mxu0 %v6532_v17 }
 0x11d   : > { %5014 = vmatpush3.bf16.msra.mxu1 %v6537_v22  ;;  %5019 = vmatprep.subr.bf16.mxu0 %v5687_v1 }
 0x11e   : > { %v866_v41 = vpop.f32.mrf.mxu0  ;;  %5035 = vmatprep.subr.bf16.mxu1 %v5687_v1 }
 0x11f   : > { %v6449_v42 = vadd.f32 %v866_v41, %v778_v29  ;;  %v971_v43 = vpop.f32.mrf.mxu1 }
 0x120   : > { %v4745_v44 = vpop.f32.mrf.mxu0 }
 0x121   : > { %v4761_v45 = vpop.f32.mrf.mxu1 }
 0x122   : > { %v869_v46 = vpop.f32.mrf.mxu0 }
 0x123   : > { %v6451_v47 = vadd.f32 %v869_v46, %v779_v39  ;;  %v974_v50 = vpop.f32.mrf.mxu1 }
 0x124   : > { %v4746_v51 = vpop.f32.mrf.mxu0 }
 0x125   : > { %v4762_v52 = vpop.f32.mrf.mxu1 }
 0x136   : > { %v1048_v54 = vpop.f32.mrf.mxu0 }
 0x137   : > { %v1049_v56 = vadd.f32 %v1048_v54, %v971_v43  ;;  %v1138_v57 = vpop.f32.mrf.mxu1 }
 0x138   : > { %v4777_v59 = vpop.f32.mrf.mxu0 }
 0x139   : > { %v1145_v61 = vadd.f32 %v1138_v57, %v1049_v56  ;;  %v4793_v62 = vpop.f32.mrf.mxu1 }
 0x13a   : > { %v1051_v63 = vpop.f32.mrf.mxu0 }
 0x13b   : > { %v1052_v0 = vadd.f32 %v1051_v63, %v974_v50  ;;  %v1141_v2 = vpop.f32.mrf.mxu1 }
 0x13c   : > { %v4778_v3 = vpop.f32.mrf.mxu0 }
 0x13d   : > { %v1146_v4 = vadd.f32 %v1141_v2, %v1052_v0  ;;  %v4794_v5 = vpop.f32.mrf.mxu1 }
 0x14e   : > { %v1230_v16 = vpop.f32.mrf.mxu0 }
 0x14f   : > { %v1237_v18 = vadd.f32 %v1230_v16, %v1145_v61  ;;  %v1322_v30 = vpop.f32.mrf.mxu1 }
 0x150   : > { %v4809_v48 = vpop.f32.mrf.mxu0 }
 0x151   : > { %v6507_v49 = vadd.f32 %v1322_v30, %v1237_v18  ;;  %v4825_v32 = vpop.f32.mrf.mxu1 }
 0x152   : > { %v1233_v7 = vpop.f32.mrf.mxu0 }
 0x153   : > { %v1756_v8 = vmax.f32 %v6449_v42, %v6507_v49  ;;  %v1238_v9 = vadd.f32 %v1233_v7, %v1146_v4  ;;  %v1325_v10 = vpop.f32.mrf.mxu1 }
 0x154   : > { %v4810_v19 = vpop.f32.mrf.mxu0 }
 0x155   : > { %v6525_v20 = vadd.f32 %v1325_v10, %v1238_v9  ;;  %v4826_v21 = vpop.f32.mrf.mxu1 }
 0x157   : > { %v1757_v23 = vmax.f32 %v6451_v47, %v6525_v20 }
 0x166   : > { %v1365_v24 = vpop.f32.mrf.mxu0 }
 0x167   : > { %v1406_v25 = vpop.f32.mrf.mxu1 }
 0x168   : > { %v1407_v26 = vadd.f32 %v1406_v25, %v1365_v24  ;;  %v4841_v27 = vpop.f32.mrf.mxu0 }
 0x169   : > { %v4857_v28 = vpop.f32.mrf.mxu1 }
 0x16a   : > { %v1368_v29 = vpop.f32.mrf.mxu0 }
 0x16b   : > { %v1409_v31 = vpop.f32.mrf.mxu1 }
 0x16c   : > { %v1410_v35 = vadd.f32 %v1409_v31, %v1368_v29  ;;  %v4842_v36 = vpop.f32.mrf.mxu0 }
 0x16d   : > { %v4858_v37 = vpop.f32.mrf.mxu1  ;;  %v4068_v36 = vld [vmem:[%s7387_s2] ss:$0 sm:$0xff] }
 0x17e   : > { %v1447_v38 = vpop.f32.mrf.mxu0 }
 0x17f   : > { %v1454_v39 = vadd.f32 %v1447_v38, %v1407_v26  ;;  %v1490_v40 = vpop.f32.mrf.mxu1 }
 0x180   : > { %v4873_v41 = vpop.f32.mrf.mxu0 }
 0x181   : > { %v1497_v43 = vadd.f32 %v1490_v40, %v1454_v39  ;;  %v4889_v44 = vpop.f32.mrf.mxu1 }
 0x182   : > { %v1450_v45 = vpop.f32.mrf.mxu0 }
 0x183   : > { %v1455_v46 = vadd.f32 %v1450_v45, %v1410_v35  ;;  %v1493_v50 = vpop.f32.mrf.mxu1  ;;  %v5530_v45 = vld [vmem:[%s7388_s3 + $0x80] ss:$0 sps:$4 sm:$0x33]  }
 0x184   : > { %v4874_v51 = vpop.f32.mrf.mxu0 }
 0x185   : > { %v1498_v52 = vadd.f32 %v1493_v50, %v1455_v46  ;;  %v4890_v53 = vpop.f32.mrf.mxu1  ;;  %v5531_v46 = vld [vmem:[%s7388_s3 + $0xac] ss:$0 sps:$4 sm:$0x33]  }
 0x196   : > { %v1536_v54 = vpop.f32.mrf.mxu0 }
 0x197   : > { %v1579_v55 = vpop.f32.mrf.mxu1  ;;  %v1543_v24 = vadd.f32 %v1536_v54, %v1497_v43  ;;  %v6563_v54 = vsel %vm1785_vm2, %v5530_v45, 0  ;;  %v6655_v45 = vld [vmem:[%s7388_s3 + $0x60] sm:$0xff]  }
 0x198   : > { %v4905_v56 = vpop.f32.mrf.mxu0 }
 0x199   : > { %v4921_v57 = vpop.f32.mrf.mxu1 }
 0x19a   : > { %v1539_v59 = vpop.f32.mrf.mxu0 }
 0x19b   : > { %v1582_v61 = vpop.f32.mrf.mxu1  ;;  %v1544_v38 = vadd.f32 %v1539_v59, %v1498_v52 }
 0x19c   : > { %v4906_v62 = vpop.f32.mrf.mxu0 }
 0x19d   : > { %v4922_v63 = vpop.f32.mrf.mxu1 }
 0x1ae   : > { %v1620_v0 = vpop.f32.mrf.mxu0 }
 0x1af   : > { %v1661_v2 = vpop.f32.mrf.mxu1  ;;  %v1621_v48 = vadd.f32 %v1620_v0, %v1579_v55  ;;  %v6566_v55 = vsel %vm1785_vm2, %v5531_v46, 0  ;;  %v6660_v46 = vld [vmem:[%s7388_s3 + $0x8c] sm:$0xff]  }
 0x1b0   : > { %v4937_v3 = vpop.f32.mrf.mxu0 }
 0x1b1   : > { %v4953_v4 = vpop.f32.mrf.mxu1  ;;  %v1668_v32 = vadd.f32 %v1661_v2, %v1621_v48 }
 0x1b2   : > { %v1623_v5 = vpop.f32.mrf.mxu0 }
 0x1b3   : > { %v1664_v16 = vpop.f32.mrf.mxu1  ;;  %v1624_v7 = vadd.f32 %v1623_v5, %v1582_v61 }
 0x1b4   : > { %v4938_v18 = vpop.f32.mrf.mxu0 }
 0x1b5   : > { %v4954_v30 = vpop.f32.mrf.mxu1  ;;  %v1669_v25 = vadd.f32 %v1664_v16, %v1624_v7 }
 0x1c6   : > { %v1704_v9 = vpop.f32.mrf.mxu0 }
 0x1c7   : > { %v1711_v10 = vadd.f32 %v1704_v9, %v1668_v32  ;;  %v1747_v19 = vpop.f32.mrf.mxu1 }
 0x1c8   : > { %v4969_v21 = vpop.f32.mrf.mxu0 }
 0x1c9   : > { %v1754_v26 = vadd.f32 %v1747_v19, %v1711_v10  ;;  %v4985_v27 = vpop.f32.mrf.mxu1 }
 0x1ca   : > { %v1707_v28 = vpop.f32.mrf.mxu0 }
 0x1cb   : > { %v1758_v29 = vmax.f32 %v1543_v24, %v1754_v26  ;;  %v1712_v31 = vadd.f32 %v1707_v28, %v1669_v25  ;;  %v1750_v35 = vpop.f32.mrf.mxu1 }
 0x1cc   : > { %v4970_v37 = vpop.f32.mrf.mxu0 }
 0x1cd   : > { %v1760_v39 = vmax.f32 %v1756_v8, %v1758_v29  ;;  %v1755_v40 = vadd.f32 %v1750_v35, %v1712_v31  ;;  %v4986_v41 = vpop.f32.mrf.mxu1  ;;  %v6602_v35 = vld [vmem:[%s7388_s3 + $0x78] sm:$0xff]  }
 0x1ce   : > { %v6632_v41 = vld [vmem:[%s7388_s3 + $0x9c] sm:$0xff]  }
 0x1cf   : > { %v1769_v43 = vadd.f32 %v4068_v36, %v1760_v39  ;;  %v1759_v44 = vmax.f32 %v1544_v38, %v1755_v40  ;;  %v6627_v40 = vld [vmem:[%s7388_s3 + $0x70] sm:$0xff]  }
 0x1d1   : > { %v1771_v50 = vmax.f32 %v1769_v43, 0.0  ;;  %v1761_v51 = vmax.f32 %v1757_v23, %v1759_v44  ;;  %v6641_v43 = vld [vmem:[%s7388_s3 + $0x68] sm:$0xff]   ;;  %v6646_v44 = vld [vmem:[%s7388_s3 + $0x94] sm:$0xff]  }
 0x1d3   : > { %v1770_v42 = vadd.f32 %v4068_v36, %v1761_v51  ;;  %v1774_v49 = vrot.slane %v1771_v50, 1  ;;  %v1776_v8 = vrot.slane %v1771_v50, 2  ;;  %v1778_v52 = vrot.slane %v1771_v50, 3  ;;  %v6607_v36 = vld [vmem:[%s7388_s3 + $0xa4] sm:$0xff]  }
 0x1d4   : > { %v1792_v53 = vrot.slane %v1771_v50, 4  ;;  %v1808_v56 = vrot.slane %v1771_v50, 5  ;;  %v1822_v63 = vrot.slane %v1771_v50, 6  ;;  %v6674_v51 = vld [vmem:[%s7388_s3 + $0x84] sm:$0xff]  }
 0x1d5   : > { %v1772_v57 = vmax.f32 %v1770_v42, 0.0  ;;  %v1796_v47 = vsel %vm1783_vm3, %v1774_v49, %v1776_v8  ;;  %v1784_v20 = vsel %vm1783_vm3, %v1771_v50, %v1774_v49  ;;  %v1803_v23 = vsel %vm1783_vm3, %v1776_v8, %v1778_v52  ;;  %v6669_v50 = vld [vmem:[%s7388_s3 + $0x58] sm:$0xff]   ;;  %v5543_v49 = vld [vmem:[%s7388_s3 + $0x130] ss:$0 sps:$4 sm:$0x33]  }
 0x1d6   : > { %v1797_v59 = vsel %vm1785_vm2, %v1796_v47, %v1778_v52  ;;  %v1786_v61 = vsel %vm1785_vm2, %v1784_v20, %v1776_v8  ;;  %v1812_v62 = vsel %vm1783_vm3, %v1778_v52, %v1792_v53  ;;  %v1804_v16 = vsel %vm1785_vm2, %v1803_v23, %v1792_v53  ;;  %v5542_v42 = vld [vmem:[%s7388_s3 + $0xd8] ss:$0 sps:$4 sm:$0x33]   ;;  %v6712_v47 = vld [vmem:[%s7388_s3 + $0x128] sm:$0xff]   ;;  %v6730_v23 = vld [vmem:[%s7388_s3 + $0x120] sm:$0xff]  }
 0x1d7   : > { %v1794_v0 = vrot.slane %v1772_v57, 5  ;;  %v1798_v2 = vsel %vm1787_vm4, %v1797_v59, %v1792_v53  ;;  %v1781_v3 = vrot.slane %v1772_v57, 4  ;;  %v1788_v4 = vsel %vm1787_vm4, %v1786_v61, %v1778_v52  ;;  %v6725_v20 = vld [vmem:[%s7388_s3 + $0xc8] sm:$0xff]   ;;  %v6739_v59 = vld [vmem:[%s7388_s3 + $0xc0] sm:$0xff]   ;;  %v6744_v61 = vld [vmem:[%s7388_s3 + $0x118] sm:$0xff]  }
 0x1d8   : > { %v1801_v5 = vrot.slane %v1772_v57, 6  ;;  %v1810_v18 = vrot.slane %v1772_v57, 7  ;;  %v1813_v30 = vsel %vm1785_vm2, %v1812_v62, %v1808_v56  ;;  %v1817_v9 = vsel %vm1783_vm3, %v1792_v53, %v1808_v56  ;;  %v6753_v62 = vld [vmem:[%s7388_s3 + $0xb8] sm:$0xff]  }
 0x1d9   : > { %v1799_v48 = vsel %vm1789_vm5, %v1798_v2, %v1794_v0  ;;  %v1790_v32 = vsel %vm1789_vm5, %v1788_v4, %v1781_v3  ;;  %v1805_v7 = vsel %vm1787_vm4, %v1804_v16, %v1794_v0  ;;  %v1826_v27 = vsel %vm1783_vm3, %v1808_v56, %v1822_v63  ;;  %v6758_v63 = vld [vmem:[%s7388_s3 + $0x110] sm:$0xff]   ;;  %v6772_v2 = vld [vmem:[%s7388_s3 + $0x108] sm:$0xff]   ;;  %v5554_v3 = vld [vmem:[%s7388_s3 + $0x104] ss:$0 sps:$4 sm:$0x33]  }
 0x1da   : > { %v6582_v10 = vpack.c.bf16 %v1799_v48, %v1799_v48  ;;  %v6584_v19 = vpack.c.bf16 %v1790_v32, %v1790_v32  ;;  %v1806_v21 = vsel %vm1789_vm5, %v1805_v7, %v1801_v5  ;;  %v1814_v24 = vsel %vm1787_vm4, %v1813_v30, %v1801_v5  ;;  %v6767_v0 = vld [vmem:[%s7388_s3 + $0xb0] sm:$0xff]   ;;  %v5555_v4 = vld [vmem:[%s7388_s3 + $0x15c] ss:$0 sps:$4 sm:$0x33]  }
 0x1db   : > { %v1815_v25 = vsel %vm1789_vm5, %v1814_v24, %v1810_v18  ;;  %v1818_v26 = vsel %vm1785_vm2, %v1817_v9, %v1801_v5  ;;  %v1824_v29 = vrot.slane %v1772_v57, 1  ;;  %v1827_v31 = vsel %vm1785_vm2, %v1826_v27, %v1810_v18  ;;  %v6805_v30 = vld [vmem:[%s7388_s3 + $0xfc] sm:$0xff]   ;;  %v6810_v48 = vld [vmem:[%s7388_s3 + $0x154] sm:$0xff]   ;;  %v6828_v7 = vld [vmem:[%s7388_s3 + $0x14c] sm:$0xff]  }
 0x1dc   : > { %5000 = vmatmul.mubr.msk.bf16.vlgmr.msra.gmra.mxu0 %vm1887_vm6, %v6582_v10  ;;  %5016 = vmatmul.mubr.msk.bf16.vlgmr.msra.gmra.mxu1 %vm1887_vm6, %v6584_v19  ;;  %v1819_v28 = vsel %vm1787_vm4, %v1818_v26, %v1810_v18  ;;  %v1828_v38 = vsel %vm1787_vm4, %v1827_v31, %v1772_v57  ;;  %v6686_v8 = vpack.c.bf16 %v1806_v21, %v1806_v21  ;;  %v6693_v53 = vsel %vm1785_vm2, %v5542_v42, 0  ;;  %v6823_v32 = vld [vmem:[%s7388_s3 + $0xf4] sm:$0xff]   ;;  %v6837_v9 = vld [vmem:[%s7388_s3 + $0xec] sm:$0xff]   ;;  %v6842_v21 = vld [vmem:[%s7388_s3 + $0x144] sm:$0xff]  }
 0x1dd   : > { %5020 = vmatpush3.bf16.msra.mxu0 %v6563_v54  ;;  %5036 = vmatpush3.bf16.msra.mxu1 %v6566_v55  ;;  %v6610_v37 = vsel %vm1789_vm5, %v1819_v28, %v1772_v57  ;;  %v6616_v39 = vsel %vm1789_vm5, %v1828_v38, %v1824_v29  ;;  %v6688_v52 = vpack.c.bf16 %v1815_v25, %v1815_v25  ;;  %v6696_v56 = vsel %vm1785_vm2, %v5543_v49, 0  ;;  %v6707_v57 = vld [vmem:[%s7388_s3 + $0xd0] sm:$0xff]   ;;  %v6851_v24 = vld [vmem:[%s7388_s3 + $0xe4] sm:$0xff]   ;;  %v6856_v25 = vld [vmem:[%s7388_s3 + $0x13c] sm:$0xff]  }
 0x1de   : > { %5021 = vmatprep.subr.bf16.mxu0 %v5687_v1  ;;  %5037 = vmatprep.subr.bf16.mxu1 %v5687_v1  ;;  %v6786_v5 = vpack.c.bf16 %v6610_v37, %v6610_v37  ;;  %v6791_v16 = vsel %vm1785_vm2, %v5554_v3, 0  ;;  %v6794_v18 = vsel %vm1785_vm2, %v5555_v4, 0  ;;  %v6865_v26 = vld [vmem:[%s7388_s3 + $0xdc] sm:$0xff]   ;;  %v6870_v27 = vld [vmem:[%s7388_s3 + $0x134] sm:$0xff]   ;;  %v6904_v42 = vld [vmem:[%s7388_s3 + $0x1ac] sm:$0xff]  }
 0x1df   : > { %5031 = vmatprep.mubr.msk.bf16.mxu0 %vm5688_vm0, %v5687_v1  ;;  %5047 = vmatprep.mubr.msk.bf16.mxu1 %vm5688_vm0, %v5687_v1  ;;  %v5566_v28 = vld [vmem:[%s7388_s3 + $0x188] ss:$0 sps:$4 sm:$0x33]   ;;  %v5567_v29 = vld [vmem:[%s7388_s3 + $0x1b4] ss:$0 sps:$4 sm:$0x33]  }
 0x1e0   : > { %v6885_v31 = vsel %vm1785_vm2, %v5566_v28, 0  ;;  %v6888_v37 = vsel %vm1785_vm2, %v5567_v29, 0  ;;  %v6899_v38 = vld [vmem:[%s7388_s3 + $0x180] sm:$0xff]   ;;  %v6931_v3 = vld [vmem:[%s7388_s3 + $0x170] sm:$0xff]   ;;  %v6945_v28 = vld [vmem:[%s7388_s3 + $0x168] sm:$0xff]  }
 0x1e1   : > { %5022 = vmatpush3.bf16.msra.mxu0 %v6602_v35  ;;  %5038 = vmatpush3.bf16.msra.mxu1 %v6607_v36  ;;  %v6922_v49 = vld [vmem:[%s7388_s3 + $0x1a4] sm:$0xff]   ;;  %7403 = vst [vmem:[#allocation5_spill] sm:$0xff] %v6931_v3  ;;  %v6936_v4 = vld [vmem:[%s7388_s3 + $0x19c] sm:$0xff]   ;;  %v6950_v29 = vld [vmem:[%s7388_s3 + $0x194] sm:$0xff]  }
 0x1e2   : > { %5023 = vmatprep.subr.bf16.mxu0 %v5687_v1  ;;  %5039 = vmatprep.subr.bf16.mxu1 %v5687_v1  ;;  %7404 = vst [vmem:[#allocation6_spill] sm:$0xff] %v6936_v4 }
 0x1e5   : > { %5024 = vmatpush3.bf16.msra.mxu0 %v6627_v40  ;;  %5040 = vmatpush3.bf16.msra.mxu1 %v6632_v41 }
 0x1e6   : > { %5025 = vmatprep.subr.bf16.mxu0 %v5687_v1  ;;  %5041 = vmatprep.subr.bf16.mxu1 %v5687_v1 }
 0x1e9   : > { %5026 = vmatpush3.bf16.msra.mxu0 %v6641_v43  ;;  %5042 = vmatpush3.bf16.msra.mxu1 %v6646_v44 }
 0x1ea   : > { %5027 = vmatprep.subr.bf16.mxu0 %v5687_v1  ;;  %5043 = vmatprep.subr.bf16.mxu1 %v5687_v1 }
 0x1ed   : > { %5028 = vmatpush3.bf16.msra.mxu0 %v6655_v45  ;;  %5044 = vmatpush3.bf16.msra.mxu1 %v6660_v46 }
 0x1ee   : > { %5029 = vmatprep.subr.bf16.mxu0 %v5687_v1  ;;  %5045 = vmatprep.subr.bf16.mxu1 %v5687_v1 }
 0x1f1   : > { %5030 = vmatpush3.bf16.msra.mxu0 %v6669_v50  ;;  %5046 = vmatpush3.bf16.msra.mxu1 %v6674_v51 }
 0x1f2   : > { %5051 = vmatprep.subr.bf16.mxu0 %v5687_v1  ;;  %5067 = vmatprep.subr.bf16.mxu1 %v5687_v1 }
 0x1f4   : > { %5032 = vmatmul.mubr.msk.bf16.vlgmr.msra.gmra.mxu0 %vm1887_vm6, %v6686_v8  ;;  %5048 = vmatmul.mubr.msk.bf16.vlgmr.msra.gmra.mxu1 %vm1887_vm6, %v6688_v52 }
 0x1f5   : > { %5052 = vmatpush3.bf16.msra.mxu0 %v6693_v53  ;;  %5068 = vmatpush3.bf16.msra.mxu1 %v6696_v56 }
 0x1f6   : > { %5053 = vmatprep.subr.bf16.mxu0 %v5687_v1  ;;  %5069 = vmatprep.subr.bf16.mxu1 %v5687_v1 }
 0x1f7   : > { %5063 = vmatprep.mubr.msk.bf16.mxu0 %vm5688_vm0, %v5687_v1  ;;  %5079 = vmatprep.mubr.msk.bf16.mxu1 %vm5688_vm0, %v5687_v1 }
 0x1f9   : > { %5054 = vmatpush3.bf16.msra.mxu0 %v6707_v57  ;;  %5070 = vmatpush3.bf16.msra.mxu1 %v6712_v47 }
 0x1fa   : > { %5055 = vmatprep.subr.bf16.mxu0 %v5687_v1  ;;  %5071 = vmatprep.subr.bf16.mxu1 %v5687_v1 }
 0x1fd   : > { %5056 = vmatpush3.bf16.msra.mxu0 %v6725_v20  ;;  %5072 = vmatpush3.bf16.msra.mxu1 %v6730_v23 }
 0x1fe   : > { %5057 = vmatprep.subr.bf16.mxu0 %v5687_v1  ;;  %5073 = vmatprep.subr.bf16.mxu1 %v5687_v1 }
 0x201   : > { %5058 = vmatpush3.bf16.msra.mxu0 %v6739_v59  ;;  %5074 = vmatpush3.bf16.msra.mxu1 %v6744_v61 }
 0x202   : > { %5059 = vmatprep.subr.bf16.mxu0 %v5687_v1  ;;  %5075 = vmatprep.subr.bf16.mxu1 %v5687_v1 }
 0x205   : > { %5060 = vmatpush3.bf16.msra.mxu0 %v6753_v62  ;;  %5076 = vmatpush3.bf16.msra.mxu1 %v6758_v63 }
 0x206   : > { %5061 = vmatprep.subr.bf16.mxu0 %v5687_v1  ;;  %5077 = vmatprep.subr.bf16.mxu1 %v5687_v1 }
 0x209   : > { %5062 = vmatpush3.bf16.msra.mxu0 %v6767_v0  ;;  %5078 = vmatpush3.bf16.msra.mxu1 %v6772_v2 }
 0x20a   : > { %5083 = vmatprep.subr.bf16.mxu0 %v5687_v1  ;;  %5099 = vmatprep.subr.bf16.mxu1 %v5687_v1 }
 0x20c   : > { %5064 = vmatmul.mubr.msk.bf16.vlgmr.msra.gmra.mxu0 %vm1887_vm6, %v6786_v5  ;;  %5080 = vmatmul.mubr.msk.bf16.vlgmr.msra.gmra.mxu1 %vm1887_vm6, %v6582_v10 }
 0x20d   : > { %5084 = vmatpush3.bf16.msra.mxu0 %v6791_v16  ;;  %5100 = vmatpush3.bf16.msra.mxu1 %v6794_v18 }
 0x20e   : > { %5085 = vmatprep.subr.bf16.mxu0 %v5687_v1  ;;  %5101 = vmatprep.subr.bf16.mxu1 %v5687_v1 }
 0x20f   : > { %5095 = vmatprep.mubr.msk.bf16.mxu0 %vm5688_vm0, %v5687_v1  ;;  %5111 = vmatprep.mubr.msk.bf16.mxu1 %vm5688_vm0, %v5687_v1 }
 0x211   : > { %5086 = vmatpush3.bf16.msra.mxu0 %v6805_v30  ;;  %5102 = vmatpush3.bf16.msra.mxu1 %v6810_v48 }
 0x212   : > { %5087 = vmatprep.subr.bf16.mxu0 %v5687_v1  ;;  %5103 = vmatprep.subr.bf16.mxu1 %v5687_v1 }
 0x215   : > { %5088 = vmatpush3.bf16.msra.mxu0 %v6823_v32  ;;  %5104 = vmatpush3.bf16.msra.mxu1 %v6828_v7 }
 0x216   : > { %5089 = vmatprep.subr.bf16.mxu0 %v5687_v1  ;;  %5105 = vmatprep.subr.bf16.mxu1 %v5687_v1 }
 0x219   : > { %5090 = vmatpush3.bf16.msra.mxu0 %v6837_v9  ;;  %5106 = vmatpush3.bf16.msra.mxu1 %v6842_v21 }
 0x21a   : > { %5091 = vmatprep.subr.bf16.mxu0 %v5687_v1  ;;  %5107 = vmatprep.subr.bf16.mxu1 %v5687_v1 }
 0x21d   : > { %5092 = vmatpush3.bf16.msra.mxu0 %v6851_v24  ;;  %5108 = vmatpush3.bf16.msra.mxu1 %v6856_v25 }
 0x21e   : > { %5093 = vmatprep.subr.bf16.mxu0 %v5687_v1  ;;  %5109 = vmatprep.subr.bf16.mxu1 %v5687_v1 }
 0x221   : > { %5094 = vmatpush3.bf16.msra.mxu0 %v6865_v26  ;;  %5110 = vmatpush3.bf16.msra.mxu1 %v6870_v27 }
 0x222   : > { %5115 = vmatprep.subr.bf16.mxu0 %v5687_v1  ;;  %5131 = vmatprep.subr.bf16.mxu1 %v5687_v1 }
 0x224   : > { %5096 = vmatmul.mubr.msk.bf16.vlgmr.msra.gmra.mxu0 %vm1887_vm6, %v6584_v19  ;;  %5112 = vmatmul.mubr.msk.bf16.vlgmr.msra.gmra.mxu1 %vm1887_vm6, %v6686_v8  ;;  %v6917_v19 = vld [vmem:[%s7388_s3 + $0x178] sm:$0xff]  }
 0x225   : > { %5116 = vmatpush3.bf16.msra.mxu0 %v6885_v31  ;;  %5132 = vmatpush3.bf16.msra.mxu1 %v6888_v37 }
 0x226   : > { %5117 = vmatprep.subr.bf16.mxu0 %v5687_v1  ;;  %5133 = vmatprep.subr.bf16.mxu1 %v5687_v1 }
 0x227   : > { %5127 = vmatprep.mubr.msk.bf16.mxu0 %vm5688_vm0, %v5687_v1  ;;  %5143 = vmatprep.mubr.msk.bf16.mxu1 %vm5688_vm0, %v5687_v1 }
 0x229   : > { %5118 = vmatpush3.bf16.msra.mxu0 %v6899_v38  ;;  %5134 = vmatpush3.bf16.msra.mxu1 %v6904_v42 }
 0x22a   : > { %5119 = vmatprep.subr.bf16.mxu0 %v5687_v1  ;;  %5135 = vmatprep.subr.bf16.mxu1 %v5687_v1 }
 0x22d   : > { %5120 = vmatpush3.bf16.msra.mxu0 %v6917_v19  ;;  %5136 = vmatpush3.bf16.msra.mxu1 %v6922_v49 }
 0x22e   : > { %5121 = vmatprep.subr.bf16.mxu0 %v5687_v1  ;;  %5137 = vmatprep.subr.bf16.mxu1 %v5687_v1 }
 0x231   : > { %5122 = vmatpush3.bf16.msra.mxu0 %v6931_v3  ;;  %5138 = vmatpush3.bf16.msra.mxu1 %v6936_v4  ;;  %v6959_v4 = vld [vmem:[%s7388_s3 + $0x160] sm:$0xff]   ;;  %v6964_v3 = vld [vmem:[%s7388_s3 + $0x18c] sm:$0xff]  }
 0x232   : > { %5123 = vmatprep.subr.bf16.mxu0 %v5687_v1  ;;  %5139 = vmatprep.subr.bf16.mxu1 %v5687_v1 }
 0x235   : > { %5124 = vmatpush3.bf16.msra.mxu0 %v6945_v28  ;;  %5140 = vmatpush3.bf16.msra.mxu1 %v6950_v29 }
 0x236   : > { %5125 = vmatprep.subr.bf16.mxu0 %v5687_v1  ;;  %5141 = vmatprep.subr.bf16.mxu1 %v5687_v1 }
 0x239   : > { %5126 = vmatpush3.bf16.msra.mxu0 %v6959_v4  ;;  %5142 = vmatpush3.bf16.msra.mxu1 %v6964_v3 }
 0x23a   : > { %5147 = vmatprep.subr.bf16.mxu0 %v5687_v1  ;;  %5163 = vmatprep.subr.bf16.mxu1 %v5687_v1 }
 0x23c   : > { %5128 = vmatmul.mubr.msk.bf16.vlgmr.msra.gmra.mxu0 %vm1887_vm6, %v6688_v52  ;;  %5144 = vmatmul.mubr.msk.bf16.vlgmr.msra.gmra.mxu1 %vm1887_vm6, %v6786_v5 }
 0x23d   : > { %5148 = vmatpush3.bf16.msra.mxu0 %v6460_v58  ;;  %5164 = vmatpush3.bf16.msra.mxu1 %v6464_v60  ;;  %v7068_v58 = vpack.c.bf16 %v6616_v39, %v6616_v39 }
 0x23e   : > { %5149 = vmatprep.subr.bf16.mxu0 %v5687_v1  ;;  %5165 = vmatprep.subr.bf16.mxu1 %v5687_v1 }
 0x23f   : > { %5159 = vmatprep.mubr.msk.bf16.mxu0 %vm5688_vm0, %v5687_v1  ;;  %5175 = vmatprep.mubr.msk.bf16.mxu1 %vm5688_vm0, %v5687_v1 }
 0x241   : > { %5150 = vmatpush3.bf16.msra.mxu0 %v6472_v6  ;;  %5166 = vmatpush3.bf16.msra.mxu1 %v6477_v12 }
 0x242   : > { %5151 = vmatprep.subr.bf16.mxu0 %v5687_v1  ;;  %5167 = vmatprep.subr.bf16.mxu1 %v5687_v1 }
 0x245   : > { %5152 = vmatpush3.bf16.msra.mxu0 %v6486_v14  ;;  %5168 = vmatpush3.bf16.msra.mxu1 %v6491_v15 }
 0x246   : > { %5153 = vmatprep.subr.bf16.mxu0 %v5687_v1  ;;  %5169 = vmatprep.subr.bf16.mxu1 %v5687_v1 }
 0x249   : > { %5154 = vmatpush3.bf16.msra.mxu0 %v6500_v33  ;;  %5170 = vmatpush3.bf16.msra.mxu1 %v6505_v34 }
 0x24a   : > { %5155 = vmatprep.subr.bf16.mxu0 %v5687_v1  ;;  %5171 = vmatprep.subr.bf16.mxu1 %v5687_v1 }
 0x24d   : > { %5156 = vmatpush3.bf16.msra.mxu0 %v6518_v11  ;;  %5172 = vmatpush3.bf16.msra.mxu1 %v6523_v13 }
 0x24e   : > { %5157 = vmatprep.subr.bf16.mxu0 %v5687_v1  ;;  %5173 = vmatprep.subr.bf16.mxu1 %v5687_v1 }
 0x251   : > { %5158 = vmatpush3.bf16.msra.mxu0 %v6532_v17  ;;  %5174 = vmatpush3.bf16.msra.mxu1 %v6537_v22  ;;  %v7405_v17 = vld [vmem:[#allocation5_spill] sm:$0xff]  ;;  %v7406_v22 = vld [vmem:[#allocation6_spill] sm:$0xff] }
 0x252   : > { %5179 = vmatprep.subr.bf16.mxu0 %v5687_v1  ;;  %5195 = vmatprep.subr.bf16.mxu1 %v5687_v1 }
 0x254   : > { %5160 = vmatmul.mubr.msk.bf16.vlgmr.msra.gmra.mxu0 %vm1887_vm6, %v6686_v8  ;;  %5176 = vmatmul.mubr.msk.bf16.vlgmr.msra.gmra.mxu1 %vm1887_vm6, %v6582_v10 }
 0x255   : > { %5180 = vmatpush3.bf16.msra.mxu0 %v6563_v54  ;;  %5196 = vmatpush3.bf16.msra.mxu1 %v6566_v55 }
 0x256   : > { %5181 = vmatprep.subr.bf16.mxu0 %v5687_v1  ;;  %5197 = vmatprep.subr.bf16.mxu1 %v5687_v1 }
 0x257   : > { %5191 = vmatprep.mubr.msk.bf16.mxu0 %vm5688_vm0, %v5687_v1  ;;  %5207 = vmatprep.mubr.msk.bf16.mxu1 %vm5688_vm0, %v5687_v1 }
 0x259   : > { %5182 = vmatpush3.bf16.msra.mxu0 %v6602_v35  ;;  %5198 = vmatpush3.bf16.msra.mxu1 %v6607_v36 }
 0x25a   : > { %5183 = vmatprep.subr.bf16.mxu0 %v5687_v1  ;;  %5199 = vmatprep.subr.bf16.mxu1 %v5687_v1 }
 0x25d   : > { %5184 = vmatpush3.bf16.msra.mxu0 %v6627_v40  ;;  %5200 = vmatpush3.bf16.msra.mxu1 %v6632_v41 }
 0x25e   : > { %5185 = vmatprep.subr.bf16.mxu0 %v5687_v1  ;;  %5201 = vmatprep.subr.bf16.mxu1 %v5687_v1 }
 0x261   : > { %5186 = vmatpush3.bf16.msra.mxu0 %v6641_v43  ;;  %5202 = vmatpush3.bf16.msra.mxu1 %v6646_v44 }
 0x262   : > { %5187 = vmatprep.subr.bf16.mxu0 %v5687_v1  ;;  %5203 = vmatprep.subr.bf16.mxu1 %v5687_v1 }
 0x265   : > { %5188 = vmatpush3.bf16.msra.mxu0 %v6655_v45  ;;  %5204 = vmatpush3.bf16.msra.mxu1 %v6660_v46 }
 0x266   : > { %5189 = vmatprep.subr.bf16.mxu0 %v5687_v1  ;;  %5205 = vmatprep.subr.bf16.mxu1 %v5687_v1 }
 0x269   : > { %5190 = vmatpush3.bf16.msra.mxu0 %v6669_v50  ;;  %5206 = vmatpush3.bf16.msra.mxu1 %v6674_v51 }
 0x26a   : > { %5211 = vmatprep.subr.bf16.mxu0 %v5687_v1  ;;  %5227 = vmatprep.subr.bf16.mxu1 %v5687_v1 }
 0x26c   : > { %5192 = vmatmul.mubr.msk.bf16.vlgmr.msra.gmra.mxu0 %vm1887_vm6, %v6688_v52  ;;  %5208 = vmatmul.mubr.msk.bf16.vlgmr.msra.gmra.mxu1 %vm1887_vm6, %v6786_v5 }
 0x26d   : > { %5212 = vmatpush3.bf16.msra.mxu0 %v6693_v53  ;;  %5228 = vmatpush3.bf16.msra.mxu1 %v6696_v56 }
 0x26e   : > { %5213 = vmatprep.subr.bf16.mxu0 %v5687_v1  ;;  %5229 = vmatprep.subr.bf16.mxu1 %v5687_v1 }
 0x26f   : > { %5223 = vmatprep.mubr.msk.bf16.mxu0 %vm5688_vm0, %v5687_v1  ;;  %5239 = vmatprep.mubr.msk.bf16.mxu1 %vm5688_vm0, %v5687_v1 }
 0x271   : > { %5214 = vmatpush3.bf16.msra.mxu0 %v6707_v57  ;;  %5230 = vmatpush3.bf16.msra.mxu1 %v6712_v47  ;;  %v5578_v47 = vld [vmem:[%s7390_s5 + $0x20] sm:$0xff]  }
 0x272   : > { %5215 = vmatprep.subr.bf16.mxu0 %v5687_v1  ;;  %5231 = vmatprep.subr.bf16.mxu1 %v5687_v1 }
 0x275   : > { %5216 = vmatpush3.bf16.msra.mxu0 %v6725_v20  ;;  %5232 = vmatpush3.bf16.msra.mxu1 %v6730_v23  ;;  %v5579_v20 = vld [vmem:[%s7390_s5 + $0x48] sm:$0xff]  }
 0x276   : > { %5217 = vmatprep.subr.bf16.mxu0 %v5687_v1  ;;  %5233 = vmatprep.subr.bf16.mxu1 %v5687_v1 }
 0x279   : > { %5218 = vmatpush3.bf16.msra.mxu0 %v6739_v59  ;;  %5234 = vmatpush3.bf16.msra.mxu1 %v6744_v61  ;;  %v5580_v61 = vld [vmem:[%s7390_s5 + $0x18] sm:$0xff]  }
 0x27a   : > { %5219 = vmatprep.subr.bf16.mxu0 %v5687_v1  ;;  %5235 = vmatprep.subr.bf16.mxu1 %v5687_v1 }
 0x27d   : > { %5220 = vmatpush3.bf16.msra.mxu0 %v6753_v62  ;;  %5236 = vmatpush3.bf16.msra.mxu1 %v6758_v63 }
 0x27e   : > { %5221 = vmatprep.subr.bf16.mxu0 %v5687_v1  ;;  %5237 = vmatprep.subr.bf16.mxu1 %v5687_v1 }
 0x281   : > { %5222 = vmatpush3.bf16.msra.mxu0 %v6767_v0  ;;  %5238 = vmatpush3.bf16.msra.mxu1 %v6772_v2 }
 0x282   : > { %5243 = vmatprep.subr.bf16.mxu0 %v5687_v1  ;;  %5259 = vmatprep.subr.bf16.mxu1 %v5687_v1 }
 0x284   : > { %5224 = vmatmul.mubr.msk.bf16.vlgmr.msra.gmra.mxu0 %vm1887_vm6, %v7068_v58  ;;  %5240 = vmatmul.mubr.msk.bf16.vlgmr.msra.gmra.mxu1 %vm1887_vm6, %v6686_v8 }
 0x285   : > { %5244 = vmatpush3.bf16.msra.mxu0 %v6791_v16  ;;  %5260 = vmatpush3.bf16.msra.mxu1 %v6794_v18 }
 0x286   : > { %5245 = vmatprep.subr.bf16.mxu0 %v5687_v1  ;;  %5261 = vmatprep.subr.bf16.mxu1 %v5687_v1 }
 0x287   : > { %5255 = vmatprep.mubr.msk.bf16.mxu0 %vm5688_vm0, %v5687_v1  ;;  %5271 = vmatprep.mubr.msk.bf16.mxu1 %vm5688_vm0, %v5687_v1 }
 0x289   : > { %5246 = vmatpush3.bf16.msra.mxu0 %v6805_v30  ;;  %5262 = vmatpush3.bf16.msra.mxu1 %v6810_v48  ;;  %v5581_v48 = vld [vmem:[%s7390_s5 + $0x40] sm:$0xff]  }
 0x28a   : > { %5247 = vmatprep.subr.bf16.mxu0 %v5687_v1  ;;  %5263 = vmatprep.subr.bf16.mxu1 %v5687_v1 }
 0x28d   : > { %5248 = vmatpush3.bf16.msra.mxu0 %v6823_v32  ;;  %5264 = vmatpush3.bf16.msra.mxu1 %v6828_v7  ;;  %v5582_v32 = vld [vmem:[%s7390_s5 + $0x10] sm:$0xff]  }
 0x28e   : > { %5249 = vmatprep.subr.bf16.mxu0 %v5687_v1  ;;  %5265 = vmatprep.subr.bf16.mxu1 %v5687_v1 }
 0x291   : > { %5250 = vmatpush3.bf16.msra.mxu0 %v6837_v9  ;;  %5266 = vmatpush3.bf16.msra.mxu1 %v6842_v21  ;;  %v5583_v21 = vld [vmem:[%s7390_s5 + $0x38] sm:$0xff]  }
 0x292   : > { %5251 = vmatprep.subr.bf16.mxu0 %v5687_v1  ;;  %5267 = vmatprep.subr.bf16.mxu1 %v5687_v1 }
 0x295   : > { %5252 = vmatpush3.bf16.msra.mxu0 %v6851_v24  ;;  %5268 = vmatpush3.bf16.msra.mxu1 %v6856_v25 }
 0x296   : > { %5253 = vmatprep.subr.bf16.mxu0 %v5687_v1  ;;  %5269 = vmatprep.subr.bf16.mxu1 %v5687_v1 }
 0x299   : > { %5254 = vmatpush3.bf16.msra.mxu0 %v6865_v26  ;;  %5270 = vmatpush3.bf16.msra.mxu1 %v6870_v27  ;;  %v5584_v27 = vld [vmem:[%s7390_s5 + $0x8] sm:$0xff]  }
 0x29a   : > { %5275 = vmatprep.subr.bf16.mxu0 %v5687_v1  ;;  %5291 = vmatprep.subr.bf16.mxu1 %v5687_v1 }
 0x29c   : > { %5256 = vmatmul.mubr.msk.bf16.vlgmr.msra.gmra.mxu0 %vm1887_vm6, %v6582_v10  ;;  %5272 = vmatmul.mubr.msk.bf16.vlgmr.msra.gmra.mxu1 %vm1887_vm6, %v6688_v52  ;;  %v1928_v60 = vpop.f32.mrf.mxu0  ;;  %v2007_v6 = vpop.f32.mrf.mxu1 }
 0x29d   : > { %v2008_v12 = vadd.f32 %v2007_v6, %v1928_v60  ;;  %5276 = vmatpush3.bf16.msra.mxu0 %v6885_v31  ;;  %5292 = vmatpush3.bf16.msra.mxu1 %v6888_v37 }
 0x29e   : > { %v5001_v14 = vpop.f32.mrf.mxu0  ;;  %v5017_v15 = vpop.f32.mrf.mxu1  ;;  %5277 = vmatprep.subr.bf16.mxu0 %v5687_v1  ;;  %5293 = vmatprep.subr.bf16.mxu1 %v5687_v1 }
 0x29f   : > { %5287 = vmatprep.mubr.msk.bf16.mxu0 %vm5688_vm0, %v5687_v1  ;;  %5303 = vmatprep.mubr.msk.bf16.mxu1 %vm5688_vm0, %v5687_v1 }
 0x2a0   : > { %v1931_v33 = vpop.f32.mrf.mxu0  ;;  %v2010_v34 = vpop.f32.mrf.mxu1 }
 0x2a1   : > { %5278 = vmatpush3.bf16.msra.mxu0 %v6899_v38  ;;  %5294 = vmatpush3.bf16.msra.mxu1 %v6904_v42  ;;  %v5585_v42 = vld [vmem:[%s7390_s5 + $0x30] sm:$0xff]  }
 0x2a2   : > { %v5002_v11 = vpop.f32.mrf.mxu0  ;;  %v5018_v13 = vpop.f32.mrf.mxu1  ;;  %5279 = vmatprep.subr.bf16.mxu0 %v5687_v1  ;;  %5295 = vmatprep.subr.bf16.mxu1 %v5687_v1 }
 0x2a5   : > { %5280 = vmatpush3.bf16.msra.mxu0 %v6917_v19  ;;  %5296 = vmatpush3.bf16.msra.mxu1 %v6922_v49  ;;  %v5586_v49 = vld [vmem:[%s7390_s5] sm:$0xff]  }
 0x2a6   : > { %5281 = vmatprep.subr.bf16.mxu0 %v5687_v1  ;;  %5297 = vmatprep.subr.bf16.mxu1 %v5687_v1 }
 0x2a9   : > { %5282 = vmatpush3.bf16.msra.mxu0 %v7405_v17  ;;  %5298 = vmatpush3.bf16.msra.mxu1 %v7406_v22 }
 0x2aa   : > { %5283 = vmatprep.subr.bf16.mxu0 %v5687_v1  ;;  %5299 = vmatprep.subr.bf16.mxu1 %v5687_v1 }
 0x2ad   : > { %5284 = vmatpush3.bf16.msra.mxu0 %v6945_v28  ;;  %5300 = vmatpush3.bf16.msra.mxu1 %v6950_v29  ;;  %v5587_v28 = vld [vmem:[%s7390_s5 + $0x28] sm:$0xff]  }
 0x2ae   : > { %5285 = vmatprep.subr.bf16.mxu0 %v5687_v1  ;;  %5301 = vmatprep.subr.bf16.mxu1 %v5687_v1 }
 0x2b1   : > { %5286 = vmatpush3.bf16.msra.mxu0 %v6959_v4  ;;  %5302 = vmatpush3.bf16.msra.mxu1 %v6964_v3 }
 0x2b2   : > { %5321 = vmatprep.subr.bf16.mxu1 %v5687_v1  ;;  %5307 = vmatprep.subr.bf16.mxu0 %v5687_v1 }
 0x2b4   : > { %v2098_v54 = vpop.f32.mrf.mxu0  ;;  %v2190_v55 = vpop.f32.mrf.mxu1  ;;  %5288 = vmatmul.mubr.msk.bf16.vlgmr.msra.gmra.mxu0 %vm1887_vm6, %v6786_v5  ;;  %5304 = vmatmul.mubr.msk.bf16.vlgmr.msra.gmra.mxu1 %vm1887_vm6, %v7068_v58 }
 0x2b5   : > { %v2104_v10 = vadd.f32 %v2098_v54, %v2008_v12  ;;  %5331 = vmatprep.mubr.msk.bf16.mxu1 %vm5688_vm0, %v5687_v1  ;;  %5317 = vmatprep.mubr.msk.bf16.mxu0 %vm5688_vm0, %v5687_v1 }
 0x2b6   : > { %v5033_v35 = vpop.f32.mrf.mxu0  ;;  %v5049_v36 = vpop.f32.mrf.mxu1  ;;  %5322 = vmatpush3.bf16.msra.mxu1 %v5578_v47  ;;  %5308 = vmatpush3.bf16.msra.mxu0 %v5579_v20 }
 0x2b7   : > { %v2196_v39 = vadd.f32 %v2190_v55, %v2104_v10  ;;  %5323 = vmatprep.subr.bf16.mxu1 %v5687_v1  ;;  %5309 = vmatprep.subr.bf16.mxu0 %v5687_v1 }
 0x2b8   : > { %v2101_v40 = vpop.f32.mrf.mxu0  ;;  %v2193_v41 = vpop.f32.mrf.mxu1 }
 0x2ba   : > { %v5034_v43 = vpop.f32.mrf.mxu0  ;;  %v5050_v44 = vpop.f32.mrf.mxu1  ;;  %5324 = vmatpush3.bf16.msra.mxu1 %v5580_v61  ;;  %5310 = vmatpush3.bf16.msra.mxu0 %v5581_v48 }
 0x2bb   : > { %5325 = vmatprep.subr.bf16.mxu1 %v5687_v1  ;;  %5311 = vmatprep.subr.bf16.mxu0 %v5687_v1 }
 0x2be   : > { %5326 = vmatpush3.bf16.msra.mxu1 %v5582_v32  ;;  %5312 = vmatpush3.bf16.msra.mxu0 %v5583_v21 }
 0x2bf   : > { %5327 = vmatprep.subr.bf16.mxu1 %v5687_v1  ;;  %5313 = vmatprep.subr.bf16.mxu0 %v5687_v1 }
 0x2c2   : > { %5328 = vmatpush3.bf16.msra.mxu1 %v5584_v27  ;;  %5314 = vmatpush3.bf16.msra.mxu0 %v5585_v42  ;;  %v5588_v27 = vld [vmem:[%s7390_s5 + $0x98] sm:$0xff]   ;;  %v5590_v42 = vld [vmem:[%s7390_s5 + $0x90] sm:$0xff]  }
 0x2c3   : > { %5329 = vmatprep.subr.bf16.mxu1 %v5687_v1  ;;  %5315 = vmatprep.subr.bf16.mxu0 %v5687_v1 }
 0x2c6   : > { %5330 = vmatpush3.bf16.msra.mxu1 %v5586_v49  ;;  %5316 = vmatpush3.bf16.msra.mxu0 %v5587_v28  ;;  %v5592_v49 = vld [vmem:[%s7390_s5 + $0x88] sm:$0xff]   ;;  %v5595_v28 = vld [vmem:[%s7390_s5 + $0x58] sm:$0xff]  }
 0x2c7   : > { %5349 = vmatprep.subr.bf16.mxu1 %v5687_v1  ;;  %5335 = vmatprep.subr.bf16.mxu0 %v5687_v1 }
 0x2cc   : > { %v2282_v45 = vpop.f32.mrf.mxu0  ;;  %v2383_v46 = vpop.f32.mrf.mxu1 }
 0x2cd   : > { %v7144_v50 = vadd.f32 %v2282_v45, %v2196_v39 }
 0x2ce   : > { %v5065_v51 = vpop.f32.mrf.mxu0  ;;  %v5081_v8 = vpop.f32.mrf.mxu1 }
 0x2d0   : > { %v2285_v52 = vpop.f32.mrf.mxu0  ;;  %v2386_v53 = vpop.f32.mrf.mxu1 }
 0x2d2   : > { %v5066_v56 = vpop.f32.mrf.mxu0  ;;  %v5082_v57 = vpop.f32.mrf.mxu1 }
 0x2e4   : > { %v2459_v23 = vpop.f32.mrf.mxu0  ;;  %v2547_v59 = vpop.f32.mrf.mxu1 }
 0x2e5   : > { %v2460_v62 = vadd.f32 %v2459_v23, %v2383_v46 }
 0x2e6   : > { %v5097_v63 = vpop.f32.mrf.mxu0  ;;  %v5113_v0 = vpop.f32.mrf.mxu1 }
 0x2e7   : > { %v2553_v2 = vadd.f32 %v2547_v59, %v2460_v62 }
 0x2e8   : > { %v2462_v5 = vpop.f32.mrf.mxu0  ;;  %v2550_v16 = vpop.f32.mrf.mxu1 }
 0x2ea   : > { %v5098_v18 = vpop.f32.mrf.mxu0  ;;  %v5114_v30 = vpop.f32.mrf.mxu1 }
 0x2fc   : > { %v2636_v7 = vpop.f32.mrf.mxu0  ;;  %v2725_v9 = vpop.f32.mrf.mxu1 }
 0x2fd   : > { %v2642_v24 = vadd.f32 %v2636_v7, %v2553_v2  ;;  %v4248_v7 = vld [vmem:[%s7389_s4] ss:$0 sm:$0xff] }
 0x2fe   : > { %v5129_v25 = vpop.f32.mrf.mxu0  ;;  %v5145_v26 = vpop.f32.mrf.mxu1 }
 0x2ff   : > { %v7172_v31 = vadd.f32 %v2725_v9, %v2642_v24 }
 0x300   : > { %v2639_v37 = vpop.f32.mrf.mxu0  ;;  %v2728_v38 = vpop.f32.mrf.mxu1 }
 0x301   : > { %v3141_v19 = vmax.f32 %v7144_v50, %v7172_v31  ;;  %v5589_v37 = vld [vmem:[%s7390_s5 + $0x70] sm:$0xff]  }
 0x302   : > { %v5130_v3 = vpop.f32.mrf.mxu0  ;;  %v5146_v4 = vpop.f32.mrf.mxu1 }
 0x303   : > { %v5593_v3 = vld [vmem:[%s7390_s5 + $0x60] sm:$0xff]  }
 0x304   : > { %v5594_v4 = vld [vmem:[%s7390_s5 + $0x80] sm:$0xff]  }
 0x314   : > { %v2766_v29 = vpop.f32.mrf.mxu0  ;;  %v2806_v58 = vpop.f32.mrf.mxu1 }
 0x315   : > { %v2807_v60 = vadd.f32 %v2806_v58, %v2766_v29  ;;  %v5596_v29 = vld [vmem:[%s7390_s5 + $0x78] sm:$0xff]   ;;  %v5597_v58 = vld [vmem:[%s7390_s5 + $0x50] sm:$0xff]  }
 0x316   : > { %v5161_v6 = vpop.f32.mrf.mxu0  ;;  %v5177_v12 = vpop.f32.mrf.mxu1 }
 0x317   : > { %v5598_v6 = vld [vmem:[%s7390_s5 + $0xc0] sm:$0xff]  }
 0x318   : > { %v2769_v14 = vpop.f32.mrf.mxu0  ;;  %v2809_v15 = vpop.f32.mrf.mxu1 }
 0x319   : > { %v5599_v14 = vld [vmem:[%s7390_s5 + $0xb8] sm:$0xff]   ;;  %v5600_v15 = vld [vmem:[%s7390_s5 + $0xb0] sm:$0xff]  }
 0x31a   : > { %v5162_v33 = vpop.f32.mrf.mxu0  ;;  %v5178_v34 = vpop.f32.mrf.mxu1 }
 0x31b   : > { %v5601_v33 = vld [vmem:[%s7390_s5 + $0xa8] sm:$0xff]   ;;  %v5602_v34 = vld [vmem:[%s7390_s5 + $0xa0] sm:$0xff]  }
 0x32c   : > { %v2846_v11 = vpop.f32.mrf.mxu0  ;;  %v2887_v13 = vpop.f32.mrf.mxu1 }
 0x32d   : > { %v2852_v17 = vadd.f32 %v2846_v11, %v2807_v60 }
 0x32e   : > { %v5193_v22 = vpop.f32.mrf.mxu0  ;;  %v5209_v54 = vpop.f32.mrf.mxu1 }
 0x32f   : > { %v2893_v55 = vadd.f32 %v2887_v13, %v2852_v17  ;;  %v5603_v13 = vld [vmem:[%s7392_s7 + $0x38] sm:$0xff]   ;;  %v5604_v17 = vld [vmem:[%s7392_s7 + $0x30] sm:$0xff]   ;;  %v5605_v22 = vld [vmem:[%s7392_s7 + $0x28] sm:$0xff]  }
 0x330   : > { %v2849_v10 = vpop.f32.mrf.mxu0  ;;  %v2890_v35 = vpop.f32.mrf.mxu1  ;;  %v5606_v54 = vld [vmem:[%s7392_s7 + $0x20] sm:$0xff]  }
 0x331   : > { %v5608_v10 = vld [vmem:[%s7392_s7 + $0x10] sm:$0xff]   ;;  %v5609_v35 = vld [vmem:[%s7392_s7 + $0x8] sm:$0xff]  }
 0x332   : > { %v5194_v36 = vpop.f32.mrf.mxu0  ;;  %v5210_v39 = vpop.f32.mrf.mxu1 }
 0x333   : > { %v5610_v36 = vld [vmem:[%s7392_s7] sm:$0xff]   ;;  %v5611_v39 = vld [vmem:[%s7394_s9 + $0x38] sm:$0xff]  }
 0x344   : > { %v2931_v40 = vpop.f32.mrf.mxu0  ;;  %v2972_v41 = vpop.f32.mrf.mxu1 }
 0x345   : > { %v2937_v16 = vadd.f32 %v2931_v40, %v2893_v55  ;;  %v5607_v55 = vld [vmem:[%s7392_s7 + $0x18] sm:$0xff]   ;;  %v5612_v40 = vld [vmem:[%s7394_s9 + $0x30] sm:$0xff]  }
 0x346   : > { %v5225_v43 = vpop.f32.mrf.mxu0  ;;  %v5241_v44 = vpop.f32.mrf.mxu1 }
 0x347   : > { %v5614_v43 = vld [vmem:[%s7394_s9 + $0x20] sm:$0xff]   ;;  %v5615_v44 = vld [vmem:[%s7394_s9 + $0x18] sm:$0xff]  }
 0x348   : > { %v2934_v45 = vpop.f32.mrf.mxu0  ;;  %v2975_v46 = vpop.f32.mrf.mxu1 }
 0x349   : > { %v5616_v45 = vld [vmem:[%s7394_s9 + $0x10] sm:$0xff]  }
 0x34a   : > { %v5226_v50 = vpop.f32.mrf.mxu0  ;;  %v5242_v51 = vpop.f32.mrf.mxu1 }
 0x35c   : > { %v3012_v8 = vpop.f32.mrf.mxu0  ;;  %v3052_v52 = vpop.f32.mrf.mxu1 }
 0x35d   : > { %v3013_v59 = vadd.f32 %v3012_v8, %v2972_v41  ;;  %v5613_v41 = vld [vmem:[%s7394_s9 + $0x28] sm:$0xff]  }
 0x35e   : > { %v5257_v53 = vpop.f32.mrf.mxu0  ;;  %v5273_v56 = vpop.f32.mrf.mxu1 }
 0x35f   : > { %v3058_v61 = vadd.f32 %v3052_v52, %v3013_v59 }
 0x360   : > { %v3015_v57 = vpop.f32.mrf.mxu0  ;;  %v3055_v47 = vpop.f32.mrf.mxu1 }
 0x362   : > { %v5258_v20 = vpop.f32.mrf.mxu0  ;;  %v5274_v23 = vpop.f32.mrf.mxu1 }
 0x374   : > { %v3093_v62 = vpop.f32.mrf.mxu0  ;;  %v3134_v63 = vpop.f32.mrf.mxu1 }
 0x375   : > { %v3099_v0 = vadd.f32 %v3093_v62, %v3058_v61 }
 0x376   : > { %v5289_v2 = vpop.f32.mrf.mxu0  ;;  %v5305_v5 = vpop.f32.mrf.mxu1 }
 0x377   : > { %v3140_v18 = vadd.f32 %v3134_v63, %v3099_v0 }
 0x378   : > { %v3096_v30 = vpop.f32.mrf.mxu0  ;;  %v3137_v48 = vpop.f32.mrf.mxu1 }
 0x379   : > { %v3142_v32 = vmax.f32 %v2937_v16, %v3140_v18  ;;  %v3583_v30 = vld [vmem:[%s7391_s6] sm:$0x1] }
 0x37a   : > { %v5290_v9 = vpop.f32.mrf.mxu0  ;;  %v5306_v21 = vpop.f32.mrf.mxu1 }
 0x37b   : > { %v3143_v24 = vmax.f32 %v3141_v19, %v3142_v32  ;;  %v5591_v19 = vld [vmem:[%s7390_s5 + $0x68] sm:$0xff]  }
 0x37d   : > { %v3151_v25 = vadd.f32 %v4248_v7, %v3143_v24 }
 0x37f   : > { %v3152_v26 = vmax.f32 %v3151_v25, 0.0 }
 0x381   : > { %v3153_v31 = vpack.c.bf16 %v3152_v26, %v3152_v26  ;;  %v5617_v26 = vld [vmem:[%s7394_s9 + $0x8] sm:$0xff]  }
 0x383   : > { %5332 = vmatmul.mubr.msk.bf16.vlgmr.msra.gmra.mxu1 %vm3208_vm7, %v3153_v31  ;;  %v3176_v38 = vshrl.u32 %v3153_v31, 16  ;;  %v3336_v12 = vrot.slane %v3153_v31, 1  ;;  %v3508_v11 = vrot.slane %v3153_v31, 2  ;;  %v3603_v31 = vld [vmem:[%s7393_s8] sm:$0x1] }
 0x384   : > { %5350 = vmatpush3.bf16.msra.mxu1 %v5588_v27  ;;  %5359 = vmatprep.mubr.msk.bf16.mxu1 %vm5688_vm0, %v5687_v1  ;;  %v5618_v27 = vld [vmem:[%s7394_s9] sm:$0xff]  }
 0x385   : > { %5318 = vmatmul.mubr.msk.bf16.vlgmr.msra.gmra.mxu0 %vm3208_vm7, %v3176_v38  ;;  %5351 = vmatprep.subr.bf16.mxu1 %v5687_v1  ;;  %v3422_v60 = vrot.slane %v3176_v38, 1 }
 0x386   : > { %5336 = vmatpush3.bf16.msra.mxu0 %v5589_v37  ;;  %5345 = vmatprep.mubr.msk.bf16.mxu0 %vm5688_vm0, %v5687_v1 }
 0x387   : > { %5337 = vmatprep.subr.bf16.mxu0 %v5687_v1 }
 0x388   : > { %5352 = vmatpush3.bf16.msra.mxu1 %v5590_v42 }
 0x389   : > { %5353 = vmatprep.subr.bf16.mxu1 %v5687_v1 }
 0x38a   : > { %5338 = vmatpush3.bf16.msra.mxu0 %v5591_v19 }
 0x38b   : > { %5339 = vmatprep.subr.bf16.mxu0 %v5687_v1 }
 0x38c   : > { %5354 = vmatpush3.bf16.msra.mxu1 %v5592_v49 }
 0x38d   : > { %5355 = vmatprep.subr.bf16.mxu1 %v5687_v1 }
 0x38e   : > { %5340 = vmatpush3.bf16.msra.mxu0 %v5593_v3 }
 0x38f   : > { %5341 = vmatprep.subr.bf16.mxu0 %v5687_v1 }
 0x390   : > { %5356 = vmatpush3.bf16.msra.mxu1 %v5594_v4 }
 0x391   : > { %5357 = vmatprep.subr.bf16.mxu1 %v5687_v1 }
 0x392   : > { %5342 = vmatpush3.bf16.msra.mxu0 %v5595_v28 }
 0x393   : > { %5343 = vmatprep.subr.bf16.mxu0 %v5687_v1 }
 0x394   : > { %5358 = vmatpush3.bf16.msra.mxu1 %v5596_v29 }
 0x395   : > { %5377 = vmatprep.subr.bf16.mxu1 %v5687_v1 }
 0x396   : > { %5344 = vmatpush3.bf16.msra.mxu0 %v5597_v58 }
 0x397   : > { %5360 = vmatmul.mubr.msk.bf16.vlgmr.msra.gmra.mxu1 %vm3208_vm7, %v3422_v60  ;;  %5363 = vmatprep.subr.bf16.mxu0 %v5687_v1 }
 0x398   : > { %5393 = vmatprep.mubr.msk.bf16.mxu1 %vm5688_vm0, %v5687_v1  ;;  %5378 = vmatpush3.bf16.msra.mxu1 %v5603_v13 }
 0x399   : > { %5346 = vmatmul.mubr.msk.bf16.vlgmr.msra.gmra.mxu0 %vm3208_vm7, %v3336_v12  ;;  %5379 = vmatprep.subr.bf16.mxu1 %v5687_v1 }
 0x39a   : > { %5364 = vmatpush3.bf16.msra.mxu0 %v5598_v6  ;;  %5373 = vmatprep.mubr.msk.bf16.mxu0 %vm5688_vm0, %v5687_v1 }
 0x39b   : > { %5365 = vmatprep.subr.bf16.mxu0 %v5687_v1 }
 0x39c   : > { %5380 = vmatpush3.bf16.msra.mxu1 %v5604_v17 }
 0x39d   : > { %5381 = vmatprep.subr.bf16.mxu1 %v5687_v1 }
 0x39e   : > { %5366 = vmatpush3.bf16.msra.mxu0 %v5599_v14 }
 0x39f   : > { %5367 = vmatprep.subr.bf16.mxu0 %v5687_v1 }
 0x3a0   : > { %5382 = vmatpush3.bf16.msra.mxu1 %v5605_v22 }
 0x3a1   : > { %5383 = vmatprep.subr.bf16.mxu1 %v5687_v1 }
 0x3a2   : > { %5368 = vmatpush3.bf16.msra.mxu0 %v5600_v15 }
 0x3a3   : > { %5369 = vmatprep.subr.bf16.mxu0 %v5687_v1 }
 0x3a4   : > { %5384 = vmatpush3.bf16.msra.mxu1 %v5606_v54 }
 0x3a5   : > { %5385 = vmatprep.subr.bf16.mxu1 %v5687_v1 }
 0x3a6   : > { %5370 = vmatpush3.bf16.msra.mxu0 %v5601_v33 }
 0x3a7   : > { %5371 = vmatprep.subr.bf16.mxu0 %v5687_v1 }
 0x3a8   : > { %5386 = vmatpush3.bf16.msra.mxu1 %v5607_v55 }
 0x3a9   : > { %5387 = vmatprep.subr.bf16.mxu1 %v5687_v1 }
 0x3aa   : > { %5372 = vmatpush3.bf16.msra.mxu0 %v5602_v34 }
 0x3ab   : > { %5397 = vmatprep.subr.bf16.mxu0 %v5687_v1 }
 0x3ac   : > { %5388 = vmatpush3.bf16.msra.mxu1 %v5608_v10 }
 0x3ad   : > { %5374 = vmatmul.mubr.msk.bf16.vlgmr.msra.gmra.mxu0 %vm3208_vm7, %v3508_v11  ;;  %5389 = vmatprep.subr.bf16.mxu1 %v5687_v1 }
 0x3ae   : > { %5413 = vmatprep.mubr.msk.bf16.mxu0 %vm5688_vm0, %v5687_v1  ;;  %5398 = vmatpush3.bf16.msra.mxu0 %v5611_v39 }
 0x3af   : > { %5399 = vmatprep.subr.bf16.mxu0 %v5687_v1 }
 0x3b0   : > { %5390 = vmatpush3.bf16.msra.mxu1 %v5609_v35 }
 0x3b1   : > { %5391 = vmatprep.subr.bf16.mxu1 %v5687_v1 }
 0x3b2   : > { %5400 = vmatpush3.bf16.msra.mxu0 %v5612_v40 }
 0x3b3   : > { %5401 = vmatprep.subr.bf16.mxu0 %v5687_v1 }
 0x3b4   : > { %5392 = vmatpush3.bf16.msra.mxu1 %v5610_v36 }
 0x3b6   : > { %5402 = vmatpush3.bf16.msra.mxu0 %v5613_v41 }
 0x3b7   : > { %5403 = vmatprep.subr.bf16.mxu0 %v5687_v1 }
 0x3ba   : > { %5404 = vmatpush3.bf16.msra.mxu0 %v5614_v43 }
 0x3bb   : > { %5405 = vmatprep.subr.bf16.mxu0 %v5687_v1 }
 0x3be   : > { %5406 = vmatpush3.bf16.msra.mxu0 %v5615_v44 }
 0x3bf   : > { %5407 = vmatprep.subr.bf16.mxu0 %v5687_v1 }
 0x3c2   : > { %5408 = vmatpush3.bf16.msra.mxu0 %v5616_v45 }
 0x3c3   : > { %5409 = vmatprep.subr.bf16.mxu0 %v5687_v1 }
 0x3c6   : > { %5410 = vmatpush3.bf16.msra.mxu0 %v5617_v26 }
 0x3c7   : > { %5411 = vmatprep.subr.bf16.mxu0 %v5687_v1  ;;  %v3710_v1 = vld [vmem:[%s7395_s10] sm:$0x1] }
 0x3ca   : > { %5412 = vmatpush3.bf16.msra.mxu0 %v5618_v27 }
 0x443   : > { %v3318_v46 = vpop.f32.mrf.mxu1 }
 0x445   : > { %v3246_v50 = vpop.f32.mrf.mxu0  ;;  %v5333_v51 = vpop.f32.mrf.mxu1 }
 0x446   : > { %v3319_v2 = vadd.f32 %v3318_v46, %v3246_v50 }
 0x447   : > { %v5319_v8 = vpop.f32.mrf.mxu0  ;;  %v3321_v52 = vpop.f32.mrf.mxu1 }
 0x449   : > { %v3249_v53 = vpop.f32.mrf.mxu0  ;;  %v5334_v56 = vpop.f32.mrf.mxu1 }
 0x44b   : > { %v5320_v57 = vpop.f32.mrf.mxu0 }
 0x457   : > { %v3490_v47 = vpop.f32.mrf.mxu1 }
 0x459   : > { %v3404_v20 = vpop.f32.mrf.mxu0  ;;  %v5361_v23 = vpop.f32.mrf.mxu1 }
 0x45a   : > { %v3410_v5 = vadd.f32 %v3404_v20, %v3319_v2 }
 0x45b   : > { %v5347_v59 = vpop.f32.mrf.mxu0  ;;  %v3493_v61 = vpop.f32.mrf.mxu1 }
 0x45c   : > { %v3496_v16 = vadd.f32 %v3490_v47, %v3410_v5 }
 0x45d   : > { %v3407_v62 = vpop.f32.mrf.mxu0  ;;  %v5362_v63 = vpop.f32.mrf.mxu1 }
 0x45f   : > { %v5348_v0 = vpop.f32.mrf.mxu0 }
 0x46d   : > { %v3576_v18 = vpop.f32.mrf.mxu0 }
 0x46e   : > { %v3582_v48 = vadd.f32 %v3576_v18, %v3496_v16 }
 0x46f   : > { %v5375_v32 = vpop.f32.mrf.mxu0 }
 0x470   : > { %v3584_v7 = vadd.f32 %v3583_v30, %v3582_v48 }
 0x471   : > { %v3579_v9 = vpop.f32.mrf.mxu0 }
 0x472   : > { %v3585_v21 = vmax.f32 %v3584_v7, 0.0 }
 0x473   : > { %v5376_v24 = vpop.f32.mrf.mxu0 }
 0x474   : > { %v3586_v25 = vpack.c.bf16 %v3585_v21, %v3585_v21 }
 0x476   : > { %5394 = vmatmul.mubr.bf16.vlgmr.msra.gmra.mxu1 %v3586_v25 }
 0x536   : > { %v3686_v37 = vpop.f32.mrf.mxu1 }
 0x537   : > { %v3687_v38 = vadd.f32 %v3686_v37, %v3603_v31 }
 0x538   : > { %v5395_v42 = vpop.f32.mrf.mxu1 }
 0x539   : > { %v3692_v19 = vmax.f32 %v3687_v38, 0.0 }
 0x53a   : > { %v3689_v49 = vpop.f32.mrf.mxu1 }
 0x53b   : > { %v3693_v3 = vpack.c.bf16 %v3692_v19, %v3692_v19 }
 0x53c   : > { %v5396_v4 = vpop.f32.mrf.mxu1 }
 0x53d   : > { %5414 = vmatmul.mubr.bf16.vlgmr.msra.gmra.mxu0 %v3693_v3 }
 0x5fd   : > { %v3793_v28 = vpop.f32.mrf.mxu0 }
 0x5fe   : > { %v3794_v29 = vadd.f32 %v3793_v28, %v3710_v1 }
 0x5ff   : > { %v5415_v58 = vpop.f32.mrf.mxu0 }
 0x600   : > { %3799 = vst [vmem:[%s378_s13] sm:$0x1] %v3794_v29 }
 0x601   : > { %v3796_v60 = vpop.f32.mrf.mxu0 }
 0x602   : > { %5638 = shalt.err (!%p5635_p3)
}
 0x603   : > { %s5639_s12 = scalar_lea.hbm %s7344_s22, 16  ;;  %s5643_s16 = scalar_lea.hbm %s7396_s11, 32 }
 0x604   : > { %p5640_p4 = scmp.ne.s32.totalorder %s7344_s22, %s5639_s12  ;;  %p5644_p9 = scmp.lt.s32.totalorder %s7344_s22, %s7396_s11 }
 0x605   : > { %p5645_p10 = scmp.lt.s32.totalorder %s5643_s16, %s5639_s12 }
 0x606   : > { %p5641_p7 = pnand %p5640_p4, %p5788_p5 }
 0x607   : > { %p5646_p11 = por %p5645_p10, %p5644_p9 }
 0x608   : > { %p5642_p8 = pneg %p5641_p7 }
 0x60a   : > { %p5647_p12 = pnand %p5646_p11, %p5642_p8 }
 0x60c   : > { %5650 = shalt.err (!%p5647_p12)
}
 0x60d   : > { %5417 = dma.vmem_to_hbm [thread:$0]  (%p5788_p5), %s7346_s14, 16, %s7344_s22, %s3801_s24   ;;  %v5416_v6 = vpop.f32.mrf.mxu0 }
 0x60e PF: > { %p5423_p13 = scmp.ge.s32.totalorder %s5685_s20, 2  ;;  %s3825_s25 = sand.u32 1, %s5673_s17  }
 0x60f   : > { %s3826_s0 = scalar_lea.sflag [#allocation3], %s3825_s25 }
 0x610   : > { %p5420_p0 = pnand %p5423_p13, %p5792_p6 }
 0x612   : > { %p5421_p1 = pneg %p5420_p0 }
 0x614   : > { %5668 = dma.done.wait (%p5421_p1), %s3826_s0, 16  }
 0x615   : > { %5670 = vsyncadd (%p5421_p1), %s3826_s0, 4294967280  ;;  %p21_p2 = scmp.ge.s32.totalorder %s5775_s23, 4   ;;  %s7407_s17 = smov %s5677_s18 }
 0x616   : > { %s7408_s18 = smov %s5681_s19  ;;  %s7409_s19 = smov %s5786_s26 }
 0x617   : > { %s7410_s20 = smov %s5775_s23  ;;  %23 = sbr.rel (!%p21_p2) target bundleno = 5 (0x5), region = 122 }
 0x61c   :  { %3830 = vsyncpa [#allocation3], 1 }
 0x61d   :  { %3832 = vsyncpa [#allocation3 + $0x1], 1 }

</bundles_post_ra>
